<compile_context>
chip_gen: v6e
topology: v6e:2x2x1
jax: 0.10.0
libtpu: 0.0.40
codegen_flags: <defaults>
</compile_context>

<pallas_src>
import functools

import jax
import jax.numpy as jnp
from jax import lax
from jax.experimental import pallas as pl
from jax.experimental.pallas import tpu as pltpu


# ---------------------------------------------------------------------------
# Fused per-batch kernel.
#   x_ref:    (c, n)          channels on sublanes, spatial on lanes
#   wqkv_ref: (3*heads*d, c)  1x1-conv QKV weight
#   wout_ref: (dim, heads*d)  1x1-conv output weight
#   bout_ref: (dim, 1)        output bias
#   o_ref:    (dim, n)        output (reshapes straight back to NCHW)
# ---------------------------------------------------------------------------
def _attention_kernel(x_ref, wqkv_ref, wout_ref, bout_ref, o_ref, *,
                      heads, dim_head, scale):
    f32 = jnp.float32
    bf16 = jnp.bfloat16
    hidden = heads * dim_head

    x = x_ref[...].astype(bf16)                 # (c, n)
    wqkv = wqkv_ref[...].astype(bf16)           # (3*hidden, c)

    # Fused QKV projection for all heads in one matmul: (3h*d, c) @ (c, n)
    qkv = jnp.dot(wqkv, x, preferred_element_type=f32)      # (3*hidden, n), f32

    outs = []
    for hi in range(heads):                     # static, unrolled at trace time
        lo = hi * dim_head
        q = (qkv[lo:lo + dim_head, :] * scale).astype(bf16)                 # (d, n)
        k = qkv[hidden + lo:hidden + lo + dim_head, :].astype(bf16)         # (d, n)
        v = qkv[2 * hidden + lo:2 * hidden + lo + dim_head, :].astype(bf16) # (d, n)

        # simT[j, i] = sum_d k[d, j] * q[d, i]   (== sim[i, j] in the torch code)
        simT = lax.dot_general(k, q, (((0,), (0,)), ((), ())),
                               preferred_element_type=f32)                  # (n, n)

        # softmax over j (axis 0 of simT), numerically stabilized (f32 math)
        simT = simT - jnp.max(simT, axis=0, keepdims=True)
        p = jnp.exp(simT)
        p = p * pl.reciprocal(jnp.sum(p, axis=0, keepdims=True), approx=True)

        # outT[d, i] = sum_j v[d, j] * attn[i, j]
        outs.append(jnp.dot(v, p.astype(bf16),
                            preferred_element_type=f32))                    # (d, n)

    # Head-major channel concat -> matches rearrange('b h (x y) d -> b (h d) x y')
    y = jnp.concatenate(outs, axis=0)            # (hidden, n), f32

    # Output 1x1 conv with bias: (dim, hidden) @ (hidden, n) + (dim, 1)
    z = jnp.dot(wout_ref[...].astype(bf16), y.astype(bf16),
                preferred_element_type=f32) + bout_ref[...]
    o_ref[...] = z.astype(o_ref.dtype)


def attention_forward(x_nchw, params, *, heads, dim_head):
    """x_nchw: (b, dim, h, w).  Returns (b, dim, h, w), matching the PyTorch module."""
    b, c, h, w = x_nchw.shape
    n = h * w
    hidden = heads * dim_head
    scale = dim_head ** (-0.5)

    # NCHW flatten is a pure reshape (no transpose): (b, c, n)
    x_bcn = x_nchw.reshape(b, c, n)

    kernel = functools.partial(_attention_kernel, heads=heads,
                               dim_head=dim_head, scale=scale)
    out_bcn = pl.pallas_call(
        kernel,
        out_shape=jax.ShapeDtypeStruct((b, c, n), x_nchw.dtype),
        grid_spec=pltpu.PrefetchScalarGridSpec(
            num_scalar_prefetch=0,
            grid=(b,),
            in_specs=[
                pl.BlockSpec((None, c, n), lambda bi: (bi, 0, 0)),   # x (squeezed b)
                pl.BlockSpec((3 * hidden, c), lambda bi: (0, 0)),    # w_qkv (resident)
                pl.BlockSpec((c, hidden), lambda bi: (0, 0)),        # w_out (resident)
                pl.BlockSpec((c, 1), lambda bi: (0, 0)),             # b_out (resident)
            ],
            out_specs=pl.BlockSpec((None, c, n), lambda bi: (bi, 0, 0)),
        ),
        compiler_params=pltpu.CompilerParams(
            dimension_semantics=("parallel",)),
    )(x_bcn, params["w_qkv"], params["w_out"], params["b_out"])

    # Pure reshape back to NCHW
    return out_bcn.reshape(b, c, h, w)


# ---------------------------------------------------------------------------
# Pure-JAX reference (mirrors the PyTorch forward) for validation.
# ---------------------------------------------------------------------------
def reference_forward(x_nchw, params, *, heads, dim_head):
    b, c, h, w = x_nchw.shape
    n = h * w
    hidden = heads * dim_head
    scale = dim_head ** (-0.5)

    x = x_nchw.reshape(b, c, n)
    qkv = jnp.einsum("oc,bcn->bon", params["w_qkv"], x)      # (b, 3*hidden, n)
    q, k, v = jnp.split(qkv, 3, axis=1)
    q = q.reshape(b, heads, dim_head, n) * scale
    k = k.reshape(b, heads, dim_head, n)
    v = v.reshape(b, heads, dim_head, n)

    sim = jnp.einsum("bhdi,bhdj->bhij", q, k)
    sim = sim - jnp.max(sim, axis=-1, keepdims=True)
    attn = jax.nn.softmax(sim, axis=-1)
    out = jnp.einsum("bhij,bhdj->bhid", attn, v)             # (b, heads, n, d)

    # rearrange 'b h (x y) d -> b (h d) x y'
    y = jnp.transpose(out, (0, 1, 3, 2)).reshape(b, hidden, n)
    z = jnp.einsum("oc,bcn->bon", params["w_out"], y) + params["b_out"][None]
    return z.reshape(b, c, h, w)


def init_params(key, dim, heads, dim_head):
    hidden = heads * dim_head
    k1, k2, k3 = jax.random.split(key, 3)
    return {
        # to_qkv: Conv2d(dim, 3*hidden, 1, bias=False) -> (3*hidden, dim)
        "w_qkv": 0.1 * jax.random.normal(k1, (3 * hidden, dim), jnp.float32),
        # to_out: Conv2d(hidden, dim, 1) -> (dim, hidden) weight + (dim, 1) bias
        "w_out": 0.1 * jax.random.normal(k2, (dim, hidden), jnp.float32),
        "b_out": 0.1 * jax.random.normal(k3, (dim, 1), jnp.float32),
    }


if __name__ == "__main__":
    dim, heads, dim_head = 4, 4, 32
    b, h, w = 2, 16, 16

    key = jax.random.PRNGKey(0)
    kx, kp = jax.random.split(key)
    x = jax.random.normal(kx, (b, dim, h, w), jnp.float32)
    params = init_params(kp, dim, heads, dim_head)

    out = jax.block_until_ready(
        attention_forward(x, params, heads=heads, dim_head=dim_head))
    ref = jax.block_until_ready(
        reference_forward(x, params, heads=heads, dim_head=dim_head))

    assert out.shape == (b, dim, h, w)
    # bf16 matmul inputs (f32 accumulation / f32 softmax) -> loosen tolerance.
    max_err = float(jnp.max(jnp.abs(out - ref)))
    assert jnp.allclose(out, ref, rtol=2e-2, atol=2e-2), f"max_err={max_err}"
    print("KERNEL_OK")
</pallas_src>

<mosaic_0001>
module attributes {stable_mosaic.version = 11 : i64} {
  func.func @_attention_kernel(%arg0: i32, %arg1: memref<1x4x256xf32, #tpu.memory_space<vmem>>, %arg2: memref<384x4xf32, #tpu.memory_space<vmem>>, %arg3: memref<4x128xf32, #tpu.memory_space<vmem>>, %arg4: memref<4x1xf32, #tpu.memory_space<vmem>>, %arg5: memref<1x4x256xf32, #tpu.memory_space<vmem>>) attributes {dimension_semantics = [#tpu.dimension_semantics<parallel>], iteration_bounds = array<i64: 2>, scalar_prefetch = 0 : i64, scratch_operands = 0 : i64, tpu.core_type = #tpu.core_type<tc>, window_params = [{transform_indices = @transform_0, window_bounds = array<i64: 1, 4, 256>}, {pipeline_mode = #tpu.pipeline_mode<synchronous>, transform_indices = @transform_1, window_bounds = array<i64: 384, 4>}, {pipeline_mode = #tpu.pipeline_mode<synchronous>, transform_indices = @transform_2, window_bounds = array<i64: 4, 128>}, {pipeline_mode = #tpu.pipeline_mode<synchronous>, transform_indices = @transform_3, window_bounds = array<i64: 4, 1>}, {transform_indices = @transform_4, window_bounds = array<i64: 1, 4, 256>}]} {
    %c0 = arith.constant 0 : index
    %c0_0 = arith.constant 0 : index
    %c0_1 = arith.constant 0 : index
    %0 = vector.load %arg1[%c0, %c0_0, %c0_1] : memref<1x4x256xf32, #tpu.memory_space<vmem>>, vector<1x4x256xf32>
    %1 = vector.shape_cast %0 : vector<1x4x256xf32> to vector<4x256xf32>
    %2 = arith.truncf %1 : vector<4x256xf32> to vector<4x256xbf16>
    %c0_2 = arith.constant 0 : index
    %c0_3 = arith.constant 0 : index
    %3 = vector.load %arg2[%c0_2, %c0_3] : memref<384x4xf32, #tpu.memory_space<vmem>>, vector<384x4xf32>
    %4 = arith.truncf %3 : vector<384x4xf32> to vector<384x4xbf16>
    %cst = arith.constant dense<0.000000e+00> : vector<384x256xf32>
    %5 = tpu.matmul %4, %2, %cst {dimension_numbers = #tpu.dot_dimension_numbers<[1], [0], [0], [1], [0, 0, 1, 1], [], []>} : vector<384x4xbf16>, vector<4x256xbf16>, vector<384x256xf32> -> vector<384x256xf32>
    %6 = vector.extract_strided_slice %5 {offsets = [0, 0], sizes = [32, 256], strides = [1, 1]} : vector<384x256xf32> to vector<32x256xf32>
    %cst_4 = arith.constant 0.176776692 : f32
    %7 = vector.broadcast %cst_4 : f32 to vector<32x256xf32>
    %8 = arith.mulf %6, %7 : vector<32x256xf32>
    %9 = arith.truncf %8 : vector<32x256xf32> to vector<32x256xbf16>
    %10 = vector.extract_strided_slice %5 {offsets = [128, 0], sizes = [32, 256], strides = [1, 1]} : vector<384x256xf32> to vector<32x256xf32>
    %11 = arith.truncf %10 : vector<32x256xf32> to vector<32x256xbf16>
    %12 = vector.extract_strided_slice %5 {offsets = [256, 0], sizes = [32, 256], strides = [1, 1]} : vector<384x256xf32> to vector<32x256xf32>
    %13 = arith.truncf %12 : vector<32x256xf32> to vector<32x256xbf16>
    %cst_5 = arith.constant dense<0.000000e+00> : vector<256x256xf32>
    %14 = tpu.matmul %11, %9, %cst_5 {dimension_numbers = #tpu.dot_dimension_numbers<[0], [0], [1], [1], [0, 1, 1, 1], [], []>} : vector<32x256xbf16>, vector<32x256xbf16>, vector<256x256xf32> -> vector<256x256xf32>
    %cst_6 = arith.constant dense<0xFF800000> : vector<256xf32>
    %15 = vector.multi_reduction <maximumf>, %14, %cst_6 [0] : vector<256x256xf32> to vector<256xf32>
    %16 = vector.shape_cast %15 : vector<256xf32> to vector<1x256xf32>
    %17 = vector.broadcast %16 : vector<1x256xf32> to vector<256x256xf32>
    %18 = arith.subf %14, %17 : vector<256x256xf32>
    %19 = math.exp %18 : vector<256x256xf32>
    %cst_7 = arith.constant dense<0.000000e+00> : vector<256xf32>
    %20 = vector.multi_reduction <add>, %19, %cst_7 [0] : vector<256x256xf32> to vector<256xf32>
    %21 = vector.shape_cast %20 : vector<256xf32> to vector<1x256xf32>
    %22 = tpu.reciprocal %21 {approx = true} : vector<1x256xf32> -> vector<1x256xf32>
    %23 = vector.broadcast %22 : vector<1x256xf32> to vector<256x256xf32>
    %24 = arith.mulf %19, %23 : vector<256x256xf32>
    %25 = arith.truncf %24 : vector<256x256xf32> to vector<256x256xbf16>
    %cst_8 = arith.constant dense<0.000000e+00> : vector<32x256xf32>
    %26 = tpu.matmul %13, %25, %cst_8 {dimension_numbers = #tpu.dot_dimension_numbers<[1], [0], [0], [1], [0, 0, 1, 1], [], []>} : vector<32x256xbf16>, vector<256x256xbf16>, vector<32x256xf32> -> vector<32x256xf32>
    %27 = vector.extract_strided_slice %5 {offsets = [32, 0], sizes = [32, 256], strides = [1, 1]} : vector<384x256xf32> to vector<32x256xf32>
    %cst_9 = arith.constant 0.176776692 : f32
    %28 = vector.broadcast %cst_9 : f32 to vector<32x256xf32>
    %29 = arith.mulf %27, %28 : vector<32x256xf32>
    %30 = arith.truncf %29 : vector<32x256xf32> to vector<32x256xbf16>
    %31 = vector.extract_strided_slice %5 {offsets = [160, 0], sizes = [32, 256], strides = [1, 1]} : vector<384x256xf32> to vector<32x256xf32>
    %32 = arith.truncf %31 : vector<32x256xf32> to vector<32x256xbf16>
    %33 = vector.extract_strided_slice %5 {offsets = [288, 0], sizes = [32, 256], strides = [1, 1]} : vector<384x256xf32> to vector<32x256xf32>
    %34 = arith.truncf %33 : vector<32x256xf32> to vector<32x256xbf16>
    %cst_10 = arith.constant dense<0.000000e+00> : vector<256x256xf32>
    %35 = tpu.matmul %32, %30, %cst_10 {dimension_numbers = #tpu.dot_dimension_numbers<[0], [0], [1], [1], [0, 1, 1, 1], [], []>} : vector<32x256xbf16>, vector<32x256xbf16>, vector<256x256xf32> -> vector<256x256xf32>
    %cst_11 = arith.constant dense<0xFF800000> : vector<256xf32>
    %36 = vector.multi_reduction <maximumf>, %35, %cst_11 [0] : vector<256x256xf32> to vector<256xf32>
    %37 = vector.shape_cast %36 : vector<256xf32> to vector<1x256xf32>
    %38 = vector.broadcast %37 : vector<1x256xf32> to vector<256x256xf32>
    %39 = arith.subf %35, %38 : vector<256x256xf32>
    %40 = math.exp %39 : vector<256x256xf32>
    %cst_12 = arith.constant dense<0.000000e+00> : vector<256xf32>
    %41 = vector.multi_reduction <add>, %40, %cst_12 [0] : vector<256x256xf32> to vector<256xf32>
    %42 = vector.shape_cast %41 : vector<256xf32> to vector<1x256xf32>
    %43 = tpu.reciprocal %42 {approx = true} : vector<1x256xf32> -> vector<1x256xf32>
    %44 = vector.broadcast %43 : vector<1x256xf32> to vector<256x256xf32>
    %45 = arith.mulf %40, %44 : vector<256x256xf32>
    %46 = arith.truncf %45 : vector<256x256xf32> to vector<256x256xbf16>
    %cst_13 = arith.constant dense<0.000000e+00> : vector<32x256xf32>
    %47 = tpu.matmul %34, %46, %cst_13 {dimension_numbers = #tpu.dot_dimension_numbers<[1], [0], [0], [1], [0, 0, 1, 1], [], []>} : vector<32x256xbf16>, vector<256x256xbf16>, vector<32x256xf32> -> vector<32x256xf32>
    %48 = vector.extract_strided_slice %5 {offsets = [64, 0], sizes = [32, 256], strides = [1, 1]} : vector<384x256xf32> to vector<32x256xf32>
    %cst_14 = arith.constant 0.176776692 : f32
    %49 = vector.broadcast %cst_14 : f32 to vector<32x256xf32>
    %50 = arith.mulf %48, %49 : vector<32x256xf32>
    %51 = arith.truncf %50 : vector<32x256xf32> to vector<32x256xbf16>
    %52 = vector.extract_strided_slice %5 {offsets = [192, 0], sizes = [32, 256], strides = [1, 1]} : vector<384x256xf32> to vector<32x256xf32>
    %53 = arith.truncf %52 : vector<32x256xf32> to vector<32x256xbf16>
    %54 = vector.extract_strided_slice %5 {offsets = [320, 0], sizes = [32, 256], strides = [1, 1]} : vector<384x256xf32> to vector<32x256xf32>
    %55 = arith.truncf %54 : vector<32x256xf32> to vector<32x256xbf16>
    %cst_15 = arith.constant dense<0.000000e+00> : vector<256x256xf32>
    %56 = tpu.matmul %53, %51, %cst_15 {dimension_numbers = #tpu.dot_dimension_numbers<[0], [0], [1], [1], [0, 1, 1, 1], [], []>} : vector<32x256xbf16>, vector<32x256xbf16>, vector<256x256xf32> -> vector<256x256xf32>
    %cst_16 = arith.constant dense<0xFF800000> : vector<256xf32>
    %57 = vector.multi_reduction <maximumf>, %56, %cst_16 [0] : vector<256x256xf32> to vector<256xf32>
    %58 = vector.shape_cast %57 : vector<256xf32> to vector<1x256xf32>
    %59 = vector.broadcast %58 : vector<1x256xf32> to vector<256x256xf32>
    %60 = arith.subf %56, %59 : vector<256x256xf32>
    %61 = math.exp %60 : vector<256x256xf32>
    %cst_17 = arith.constant dense<0.000000e+00> : vector<256xf32>
    %62 = vector.multi_reduction <add>, %61, %cst_17 [0] : vector<256x256xf32> to vector<256xf32>
    %63 = vector.shape_cast %62 : vector<256xf32> to vector<1x256xf32>
    %64 = tpu.reciprocal %63 {approx = true} : vector<1x256xf32> -> vector<1x256xf32>
    %65 = vector.broadcast %64 : vector<1x256xf32> to vector<256x256xf32>
    %66 = arith.mulf %61, %65 : vector<256x256xf32>
    %67 = arith.truncf %66 : vector<256x256xf32> to vector<256x256xbf16>
    %cst_18 = arith.constant dense<0.000000e+00> : vector<32x256xf32>
    %68 = tpu.matmul %55, %67, %cst_18 {dimension_numbers = #tpu.dot_dimension_numbers<[1], [0], [0], [1], [0, 0, 1, 1], [], []>} : vector<32x256xbf16>, vector<256x256xbf16>, vector<32x256xf32> -> vector<32x256xf32>
    %69 = vector.extract_strided_slice %5 {offsets = [96, 0], sizes = [32, 256], strides = [1, 1]} : vector<384x256xf32> to vector<32x256xf32>
    %cst_19 = arith.constant 0.176776692 : f32
    %70 = vector.broadcast %cst_19 : f32 to vector<32x256xf32>
    %71 = arith.mulf %69, %70 : vector<32x256xf32>
    %72 = arith.truncf %71 : vector<32x256xf32> to vector<32x256xbf16>
    %73 = vector.extract_strided_slice %5 {offsets = [224, 0], sizes = [32, 256], strides = [1, 1]} : vector<384x256xf32> to vector<32x256xf32>
    %74 = arith.truncf %73 : vector<32x256xf32> to vector<32x256xbf16>
    %75 = vector.extract_strided_slice %5 {offsets = [352, 0], sizes = [32, 256], strides = [1, 1]} : vector<384x256xf32> to vector<32x256xf32>
    %76 = arith.truncf %75 : vector<32x256xf32> to vector<32x256xbf16>
    %cst_20 = arith.constant dense<0.000000e+00> : vector<256x256xf32>
    %77 = tpu.matmul %74, %72, %cst_20 {dimension_numbers = #tpu.dot_dimension_numbers<[0], [0], [1], [1], [0, 1, 1, 1], [], []>} : vector<32x256xbf16>, vector<32x256xbf16>, vector<256x256xf32> -> vector<256x256xf32>
    %cst_21 = arith.constant dense<0xFF800000> : vector<256xf32>
    %78 = vector.multi_reduction <maximumf>, %77, %cst_21 [0] : vector<256x256xf32> to vector<256xf32>
    %79 = vector.shape_cast %78 : vector<256xf32> to vector<1x256xf32>
    %80 = vector.broadcast %79 : vector<1x256xf32> to vector<256x256xf32>
    %81 = arith.subf %77, %80 : vector<256x256xf32>
    %82 = math.exp %81 : vector<256x256xf32>
    %cst_22 = arith.constant dense<0.000000e+00> : vector<256xf32>
    %83 = vector.multi_reduction <add>, %82, %cst_22 [0] : vector<256x256xf32> to vector<256xf32>
    %84 = vector.shape_cast %83 : vector<256xf32> to vector<1x256xf32>
    %85 = tpu.reciprocal %84 {approx = true} : vector<1x256xf32> -> vector<1x256xf32>
    %86 = vector.broadcast %85 : vector<1x256xf32> to vector<256x256xf32>
    %87 = arith.mulf %82, %86 : vector<256x256xf32>
    %88 = arith.truncf %87 : vector<256x256xf32> to vector<256x256xbf16>
    %cst_23 = arith.constant dense<0.000000e+00> : vector<32x256xf32>
    %89 = tpu.matmul %76, %88, %cst_23 {dimension_numbers = #tpu.dot_dimension_numbers<[1], [0], [0], [1], [0, 0, 1, 1], [], []>} : vector<32x256xbf16>, vector<256x256xbf16>, vector<32x256xf32> -> vector<32x256xf32>
    %90 = tpu.concatenate %26, %47, %68, %89 in 0 : vector<32x256xf32>, vector<32x256xf32>, vector<32x256xf32>, vector<32x256xf32> -> vector<128x256xf32>
    %c0_24 = arith.constant 0 : index
    %c0_25 = arith.constant 0 : index
    %91 = vector.load %arg3[%c0_24, %c0_25] : memref<4x128xf32, #tpu.memory_space<vmem>>, vector<4x128xf32>
    %92 = arith.truncf %91 : vector<4x128xf32> to vector<4x128xbf16>
    %93 = arith.truncf %90 : vector<128x256xf32> to vector<128x256xbf16>
    %cst_26 = arith.constant dense<0.000000e+00> : vector<4x256xf32>
    %94 = tpu.matmul %92, %93, %cst_26 {dimension_numbers = #tpu.dot_dimension_numbers<[1], [0], [0], [1], [0, 0, 1, 1], [], []>} : vector<4x128xbf16>, vector<128x256xbf16>, vector<4x256xf32> -> vector<4x256xf32>
    %c0_27 = arith.constant 0 : index
    %c0_28 = arith.constant 0 : index
    %95 = vector.load %arg4[%c0_27, %c0_28] : memref<4x1xf32, #tpu.memory_space<vmem>>, vector<4x1xf32>
    %96 = vector.broadcast %95 : vector<4x1xf32> to vector<4x256xf32>
    %97 = arith.addf %94, %96 : vector<4x256xf32>
    %c0_29 = arith.constant 0 : index
    %c0_30 = arith.constant 0 : index
    %c0_31 = arith.constant 0 : index
    %98 = vector.load %arg5[%c0_29, %c0_30, %c0_31] : memref<1x4x256xf32, #tpu.memory_space<vmem>>, vector<1x4x256xf32>
    %99 = vector.shape_cast %98 : vector<1x4x256xf32> to vector<4x256xf32>
    %100 = vector.shape_cast %97 : vector<4x256xf32> to vector<1x4x256xf32>
    tpu.vector_store %arg5[%c0_29, %c0_30, %c0_31], %100 {strides = array<i32>} : memref<1x4x256xf32, #tpu.memory_space<vmem>>, vector<1x4x256xf32>,
    return
  }
  func.func @transform_0(%arg0: i32) -> (i32, i32, i32) {
    %c0_i32 = arith.constant 0 : i32
    %c0_i32_0 = arith.constant 0 : i32
    %c0_i32_1 = arith.constant 0 : i32
    return %arg0, %c0_i32, %c0_i32_0 : i32, i32, i32
  }
  func.func @transform_1(%arg0: i32) -> (i32, i32) {
    %c0_i32 = arith.constant 0 : i32
    %c0_i32_0 = arith.constant 0 : i32
    %c0_i32_1 = arith.constant 0 : i32
    return %c0_i32, %c0_i32_0 : i32, i32
  }
  func.func @transform_2(%arg0: i32) -> (i32, i32) {
    %c0_i32 = arith.constant 0 : i32
    %c0_i32_0 = arith.constant 0 : i32
    %c0_i32_1 = arith.constant 0 : i32
    return %c0_i32, %c0_i32_0 : i32, i32
  }
  func.func @transform_3(%arg0: i32) -> (i32, i32) {
    %c0_i32 = arith.constant 0 : i32
    %c0_i32_0 = arith.constant 0 : i32
    %c0_i32_1 = arith.constant 0 : i32
    return %c0_i32, %c0_i32_0 : i32, i32
  }
  func.func @transform_4(%arg0: i32) -> (i32, i32, i32) {
    %c0_i32 = arith.constant 0 : i32
    %c0_i32_0 = arith.constant 0 : i32
    %c0_i32_1 = arith.constant 0 : i32
    return %arg0, %c0_i32, %c0_i32_0 : i32, i32, i32
  }
}

</mosaic_0001>

<bundles_post_ra>
// kernel: tpu_custom_call.1
= control target key start
LH: loop header
LB: loop body
LE: loop exit
PB: predicated region body
PF: predicated region fallthrough
CT: control target
= control target key end

     0   :  { %9 = vsyncpa [#allocation3], 0  ;;  %s8265_s0 = inlined_call_operand.vmem [shape: f32[2,4,256], index: 0, kind: input, shape index: {}]   ;;  %s8266_s1 = inlined_call_operand.vmem [shape: f32[384,4], index: 1, kind: input, shape index: {}]   ;;  %s8267_s2 = inlined_call_operand.vmem [shape: f32[4,128], index: 2, kind: input, shape index: {}]   ;;  %s8268_s3 = inlined_call_operand.vmem [shape: f32[4,1], index: 3, kind: input, shape index: {}]   ;;  %s8269_s4 = inlined_call_operand.hbm [shape: f32[2,4,256], index: 4, kind: output, shape index: {}]  }
   0x1   :  { %11 = vsyncpa [#allocation3 + $0x1], 0  ;;  %s4671_s15 = smov 0   ;;  %s4673_s16 = smov 0  }
   0x2   :  { %s4675_s17 = smov 0   ;;  %s4677_s18 = smov 0  }
   0x3 LB: > { %s4692_s19 = sadd.s32 4294967295, %s4642_s18   ;;  %s3909_s20 = sadd.s32 4294967294, %s4642_s18   ;;  %s4642_s18 = sphi %s4677_s18, %s8837_s18   ;;  %s4638_s17 = sphi %s4675_s17, %s8836_s17   ;;  %s4634_s16 = sphi %s4673_s16, %s8835_s16   ;;  %s4630_s15 = sphi %s4671_s15, %s8834_s15  }
   0x4   : > { %s4696_s21 = sadd.s32 1, %s4642_s18   ;;  %s113_s22 = sadd.s32 1, %s4638_s17 }
   0x5   : > { %s110_s23 = ssub.s32 %s4642_s18, %s4696_s21  ;;  %p123_p0 = scmp.ne.s32.totalorder %s4638_s17, %s4634_s16 }
   0x6   : > { %p111_p1 = scmp.eq.s32.totalorder %s110_s23, 0  ;;  %p124_p2 = scmp.eq.s32.totalorder %s4692_s19, 1 }
   0x7   : > { %p129_p3 = scmp.ne.s32.totalorder %s4634_s16, %s4630_s15  ;;  %p130_p4 = scmp.eq.s32.totalorder %s3909_s20, 1 }
   0x8   : > { %s4707_s24 = scalar_select %p111_p1, %s4638_s17, %s113_s22  }
   0x9   : > { %p4709_p5 = por %p124_p2, %p123_p0  ;;  %p4713_p6 = por %p130_p4, %p129_p3 }
   0xa   : > { %p3912_p7 = scmp.ge.s32.totalorder %s4642_s18, 1  ;;  %p165_p8 = scmp.lt.s32.totalorder %s4642_s18, 3 }
   0xc   : > { %p166_p9 = pnand %p3912_p7, %p165_p8 }
   0xe   : > { %169 = sbr.rel (%p166_p9) target bundleno = 3057 (0xbf1), region = 36 }
  0x13   : > { %p191_p10 = scmp.lt.s32.totalorder %s4692_s19, 1  ;;  %v8270_v0 = vmov 0   ;;  %vm348_vm0 = vcmask 1041408   ;;  %v203_v4 = vld [vmem:[%s8266_s1] sm:$0xff]  ;;  %v204_v5 = vld [vmem:[%s8266_s1 + $0x8] sm:$0xff]  ;;  %vm275_vm1 = vcmask 31744  }
  0x14   : > { %387 = vmatprep.mubr.bf16.mxu0 %v8270_v0  ;;  %761 = vmatprep.mubr.bf16.mxu1 %v8270_v0  ;;  %v251_v8 = vpack.c.bf16 %v204_v5, %v203_v4  ;;  %v205_v9 = vld [vmem:[%s8266_s1 + $0x10] sm:$0xff]  ;;  %v206_v10 = vld [vmem:[%s8266_s1 + $0x18] sm:$0xff]  ;;  %v207_v12 = vld [vmem:[%s8266_s1 + $0x20] sm:$0xff]  ;;  %vm680_vm2 = vcmask 261120   ;;  %s188_s30 = sand.u32 1, %s4634_s16   ;;  %s4011_s6 = sshll.u32 %s4692_s19, 7 }
  0x15   : > { %s192_s27 = scalar_select %p191_p10, %s4692_s19, 1  ;;  %v252_v11 = vpack.c.bf16 %v206_v10, %v205_v9  ;;  %v208_v13 = vld [vmem:[%s8266_s1 + $0x28] sm:$0xff]  ;;  %v209_v15 = vld [vmem:[%s8266_s1 + $0x30] sm:$0xff]  ;;  %v210_v16 = vld [vmem:[%s8266_s1 + $0x38] sm:$0xff] }
  0x16   : > { %v253_v14 = vpack.c.bf16 %v208_v13, %v207_v12  ;;  %v254_v17 = vpack.c.bf16 %v210_v16, %v209_v15  ;;  %v211_v18 = vld [vmem:[%s8266_s1 + $0x40] sm:$0xff]  ;;  %v212_v19 = vld [vmem:[%s8266_s1 + $0x48] sm:$0xff]  ;;  %v213_v21 = vld [vmem:[%s8266_s1 + $0x50] sm:$0xff]  ;;  %s8230_s11 = scalar_lea.hbm %s8269_s4, %s4011_s6  ;;  %s3836_s12 = scalar_lea.sflag [#allocation3], %s188_s30 }
  0x17   : > { %s4010_s28 = sshll.u32 %s192_s27, 3  ;;  %v255_v20 = vpack.c.bf16 %v212_v19, %v211_v18  ;;  %v214_v22 = vld [vmem:[%s8266_s1 + $0x58] sm:$0xff]  ;;  %v215_v24 = vld [vmem:[%s8266_s1 + $0x60] sm:$0xff]  ;;  %v216_v25 = vld [vmem:[%s8266_s1 + $0x68] sm:$0xff]  ;;  %s4645_s19 = smov [#allocation2]  }
  0x18   : > { %s195_s5 = scalar_lea.vmem %s8265_s0, %s4010_s28  ;;  %v256_v23 = vpack.c.bf16 %v214_v22, %v213_v21  ;;  %v257_v26 = vpack.c.bf16 %v216_v25, %v215_v24  ;;  %v217_v27 = vld [vmem:[%s8266_s1 + $0x70] sm:$0xff]  ;;  %v218_v28 = vld [vmem:[%s8266_s1 + $0x78] sm:$0xff]  ;;  %v219_v30 = vld [vmem:[%s8266_s1 + $0x80] sm:$0xff]  ;;  %s4586_s14 = sshll.u32 %s4645_s19, 4  ;;  %s4587_s14 = int_to_ptr.vmem [resolvable:$false] %s4586_s14 }
  0x19   : > { %v197_v1 = vld [vmem:[%s195_s5] sm:$0xff]  ;;  %v258_v29 = vpack.c.bf16 %v218_v28, %v217_v27  ;;  %v220_v31 = vld [vmem:[%s8266_s1 + $0x88] sm:$0xff]  ;;  %v221_v33 = vld [vmem:[%s8266_s1 + $0x90] sm:$0xff]  ;;  %s3913_s5 = sshll.u32 %s188_s30, 3  ;;  %s4588_s20 = scalar_lea.vmem %s4587_s14, 256 }
  0x1a   : > { %v199_v2 = vcombine.high %v197_v1, %v197_v1  ;;  %v201_v3 = vpack.c.bf16 %v197_v1, %v197_v1  ;;  %v259_v32 = vpack.c.bf16 %v220_v31, %v219_v30  ;;  %v222_v34 = vld [vmem:[%s8266_s1 + $0x98] sm:$0xff]  ;;  %s190_s7 = scalar_lea.vmem [#allocation2], %s3913_s5 }
  0x1b   : > { %v260_v35 = vpack.c.bf16 %v222_v34, %v221_v33  ;;  %s3850_s8 = sshll.u32 %s190_s7, 4  ;;  %s3851_s8 = int_to_ptr.vmem [resolvable:$true] %s3850_s8 }
  0x1c   : > { %v202_v6 = vpack.c.bf16 %v199_v2, %v199_v2  ;;  %v350_v7 = vsel %vm348_vm0, %v201_v3, 0  ;;  %s4582_s13 = scalar_lea.vmem %s3851_s8, 128  ;;  %p4589_p0 = scmp.lt.s32.totalorder %s3851_s8, %s4587_s14 }
  0x1d   : > { %p4583_p11 = scmp.ne.s32.totalorder %s3851_s8, %s4582_s13  ;;  %p4590_p1 = scmp.lt.s32.totalorder %s4588_s20, %s4582_s13 }
  0x1e   : > { %3916 = vmatprep.subr.msk.bf16.mxu0 %vm348_vm0, %v202_v6 }
  0x1f   : > { %370 = vmatpush1.bf16.msra.mxu0 %v350_v7  ;;  %p4584_p12 = pnand %p4583_p11, %p4709_p5  ;;  %p4591_p2 = por %p4590_p1, %p4589_p0 }
  0x21   : > { %p4585_p13 = pneg %p4584_p12 }
  0x22   : > { %3917 = vmatmul.mubr.msk.bf16.vlgmr.msra.gmra.mxu0 %vm275_vm1, %v251_v8 }
  0x23   : > { %397 = vmatprep.mubr.bf16.mxu0 %v8270_v0  ;;  %p4592_p3 = pnand %p4591_p2, %p4585_p13 }
  0x2a   : > { %3918 = vmatmul.mubr.msk.bf16.gmra.mxu0 %vm275_vm1, %v252_v11 }
  0x2b   : > { %407 = vmatprep.mubr.bf16.mxu0 %v8270_v0 }
  0x32   : > { %3919 = vmatmul.mubr.msk.bf16.gmra.mxu0 %vm275_vm1, %v253_v14 }
  0x33   : > { %417 = vmatprep.mubr.bf16.mxu0 %v8270_v0 }
  0x3a   : > { %3920 = vmatmul.mubr.msk.bf16.gmra.mxu0 %vm275_vm1, %v254_v17 }
  0x3b   : > { %427 = vmatprep.mubr.bf16.mxu0 %v8270_v0 }
  0x42   : > { %3921 = vmatmul.mubr.msk.bf16.gmra.mxu0 %vm275_vm1, %v255_v20 }
  0x43   : > { %437 = vmatprep.mubr.bf16.mxu0 %v8270_v0 }
  0x4a   : > { %3922 = vmatmul.mubr.msk.bf16.gmra.mxu0 %vm275_vm1, %v256_v23 }
  0x4b   : > { %447 = vmatprep.mubr.bf16.mxu0 %v8270_v0 }
  0x52   : > { %3923 = vmatmul.mubr.msk.bf16.gmra.mxu0 %vm275_vm1, %v257_v26 }
  0x53   : > { %457 = vmatprep.mubr.bf16.mxu0 %v8270_v0 }
  0x5a   : > { %3924 = vmatmul.mubr.msk.bf16.gmra.mxu0 %vm275_vm1, %v258_v29 }
  0x5b   : > { %467 = vmatprep.mubr.bf16.mxu0 %v8270_v0 }
  0x62   : > { %3925 = vmatmul.mubr.msk.bf16.gmra.mxu0 %vm275_vm1, %v259_v32 }
  0x63   : > { %477 = vmatprep.mubr.bf16.mxu0 %v8270_v0 }
  0x6a   : > { %3926 = vmatmul.mubr.msk.bf16.gmra.mxu0 %vm275_vm1, %v260_v35 }
  0x6b   : > { %487 = vmatprep.mubr.bf16.mxu0 %v8270_v0 }
  0xe2   : > { %v389_v36 = vpop.f32.mrf.mxu0 }
  0xe3   : > { %v628_v56 = vmul.f32 0.17677669, %v389_v36 }
  0xe4   : > { %v391_v37 = vpop.f32.mrf.mxu0 }
  0xe5   : > { %v629_v50 = vmul.f32 0.17677669, %v391_v37 }
  0xe6   : > { %v393_v38 = vpop.f32.mrf.mxu0 }
  0xe7   : > { %v630_v52 = vmul.f32 0.17677669, %v393_v38 }
  0xe8   : > { %v395_v39 = vpop.f32.mrf.mxu0 }
  0xe9   : > { %v631_v45 = vmul.f32 0.17677669, %v395_v39  ;;  %v636_v60 = vpack.c.bf16 %v630_v52, %v628_v56 }
  0xea   : > { %v399_v40 = vpop.f32.mrf.mxu0 }
  0xeb   : > { %v632_v48 = vmul.f32 0.17677669, %v399_v40  ;;  %v637_v55 = vpack.c.bf16 %v631_v45, %v629_v50 }
  0xec   : > { %v401_v41 = vpop.f32.mrf.mxu0 }
  0xed   : > { %v633_v46 = vmul.f32 0.17677669, %v401_v41 }
  0xee   : > { %v403_v42 = vpop.f32.mrf.mxu0 }
  0xef   : > { %v634_v43 = vmul.f32 0.17677669, %v403_v42 }
  0xf0   : > { %v405_v44 = vpop.f32.mrf.mxu0 }
  0xf1   : > { %v635_v47 = vmul.f32 0.17677669, %v405_v44  ;;  %v638_v54 = vpack.c.bf16 %v634_v43, %v632_v48 }
  0xf2   : > { %v409_v49 = vpop.f32.mrf.mxu0 }
  0xf3   : > { %v639_v51 = vpack.c.bf16 %v635_v47, %v633_v46  ;;  %v4808_v58 = vmul.f32 0.17677669, %v409_v49 }
  0xf4   : > { %v4806_v53 = vpop.f32.mrf.mxu0 }
  0xf5   : > { %8437 = vst [vmem:[#allocation5_spill] sm:$0xff] %v4806_v53  ;;  %741 = vmatprep.subr.bf16.mxu1 %v639_v51  ;;  %8438 = vst [vmem:[#allocation6_spill] sm:$0xff] %v4808_v58 }
  0xf6   : > { %v413_v57 = vpop.f32.mrf.mxu0  ;;  %742 = vmatpush1.bf16.msra.mxu1 %v638_v54 }
  0xf7   : > { %v4810_v59 = vmul.f32 0.17677669, %v413_v57  ;;  %743 = vmatprep.subr.bf16.mxu1 %v637_v55 }
  0xf8   : > { %v4812_v61 = vpop.f32.mrf.mxu0 }
  0xf9   : > { %8439 = vst [vmem:[#allocation7_spill] sm:$0xff] %v4810_v59  ;;  %8440 = vst [vmem:[#allocation8_spill] sm:$0xff] %v4812_v61 }
  0xfa   : > { %v419_v63 = vpop.f32.mrf.mxu0  ;;  %744 = vmatpush1.bf16.msra.mxu1 %v636_v60 }
  0xfb   : > { %v4818_v3 = vmul.f32 0.17677669, %v419_v63 }
  0xfc   : > { %v4816_v1 = vpop.f32.mrf.mxu0 }
  0xfd   : > { %8441 = vst [vmem:[#allocation9_spill] sm:$0xff] %v4816_v1  ;;  %8442 = vst [vmem:[#allocation10_spill] sm:$0xff] %v4818_v3 }
  0xfe   : > { %v423_v2 = vpop.f32.mrf.mxu0 }
  0xff   : > { %v4820_v4 = vmul.f32 0.17677669, %v423_v2  ;;  %v223_v2 = vld [vmem:[%s8266_s1 + $0xa0] sm:$0xff] }
 0x100   : > { %v4822_v5 = vpop.f32.mrf.mxu0 }
 0x101   : > { %8443 = vst [vmem:[#allocation11_spill] sm:$0xff] %v4820_v4  ;;  %8444 = vst [vmem:[#allocation12_spill] sm:$0xff] %v4822_v5 }
 0x102   : > { %v429_v7 = vpop.f32.mrf.mxu0 }
 0x103   : > { %v4828_v10 = vmul.f32 0.17677669, %v429_v7  ;;  %v224_v7 = vld [vmem:[%s8266_s1 + $0xa8] sm:$0xff] }
 0x104   : > { %v4826_v8 = vpop.f32.mrf.mxu0 }
 0x105   : > { %8445 = vst [vmem:[#allocation13_spill] sm:$0xff] %v4826_v8  ;;  %8446 = vst [vmem:[#allocation14_spill] sm:$0xff] %v4828_v10 }
 0x106   : > { %v433_v9 = vpop.f32.mrf.mxu0 }
 0x107   : > { %v4830_v11 = vmul.f32 0.17677669, %v433_v9  ;;  %v261_v9 = vpack.c.bf16 %v224_v7, %v223_v2 }
 0x108   : > { %v4832_v12 = vpop.f32.mrf.mxu0 }
 0x109   : > { %8447 = vst [vmem:[#allocation15_spill] sm:$0xff] %v4830_v11  ;;  %8448 = vst [vmem:[#allocation16_spill] sm:$0xff] %v4832_v12  ;;  %3927 = vmatmul.mubr.msk.bf16.gmra.mxu0 %vm275_vm1, %v261_v9 }
 0x10a   : > { %v439_v14 = vpop.f32.mrf.mxu0  ;;  %497 = vmatprep.mubr.bf16.mxu0 %v8270_v0 }
 0x10b   : > { %v4838_v17 = vmul.f32 0.17677669, %v439_v14 }
 0x10c   : > { %v4836_v15 = vpop.f32.mrf.mxu0 }
 0x10d   : > { %8449 = vst [vmem:[#allocation17_spill] sm:$0xff] %v4836_v15  ;;  %8450 = vst [vmem:[#allocation18_spill] sm:$0xff] %v4838_v17 }
 0x10e   : > { %v443_v16 = vpop.f32.mrf.mxu0 }
 0x10f   : > { %v4840_v18 = vmul.f32 0.17677669, %v443_v16  ;;  %v225_v16 = vld [vmem:[%s8266_s1 + $0xb0] sm:$0xff] }
 0x110   : > { %v4842_v19 = vpop.f32.mrf.mxu0 }
 0x111   : > { %8451 = vst [vmem:[#allocation19_spill] sm:$0xff] %v4840_v18  ;;  %8452 = vst [vmem:[#allocation20_spill] sm:$0xff] %v4842_v19 }
 0x112   : > { %v449_v21 = vpop.f32.mrf.mxu0 }
 0x113   : > { %v4848_v24 = vmul.f32 0.17677669, %v449_v21  ;;  %v226_v21 = vld [vmem:[%s8266_s1 + $0xb8] sm:$0xff] }
 0x114   : > { %v4846_v22 = vpop.f32.mrf.mxu0 }
 0x115   : > { %8453 = vst [vmem:[#allocation21_spill] sm:$0xff] %v4846_v22  ;;  %8454 = vst [vmem:[#allocation22_spill] sm:$0xff] %v4848_v24 }
 0x116   : > { %v453_v23 = vpop.f32.mrf.mxu0 }
 0x117   : > { %v4850_v25 = vmul.f32 0.17677669, %v453_v23  ;;  %v262_v23 = vpack.c.bf16 %v226_v21, %v225_v16 }
 0x118   : > { %v4852_v26 = vpop.f32.mrf.mxu0 }
 0x119   : > { %8455 = vst [vmem:[#allocation23_spill] sm:$0xff] %v4850_v25  ;;  %8456 = vst [vmem:[#allocation24_spill] sm:$0xff] %v4852_v26  ;;  %3928 = vmatmul.mubr.msk.bf16.gmra.mxu0 %vm275_vm1, %v262_v23 }
 0x11a   : > { %v459_v28 = vpop.f32.mrf.mxu0  ;;  %507 = vmatprep.mubr.bf16.mxu0 %v8270_v0 }
 0x11b   : > { %v4858_v31 = vmul.f32 0.17677669, %v459_v28 }
 0x11c   : > { %v4856_v29 = vpop.f32.mrf.mxu0 }
 0x11d   : > { %8457 = vst [vmem:[#allocation25_spill] sm:$0xff] %v4856_v29  ;;  %8458 = vst [vmem:[#allocation26_spill] sm:$0xff] %v4858_v31 }
 0x11e   : > { %v463_v30 = vpop.f32.mrf.mxu0 }
 0x11f   : > { %v4860_v32 = vmul.f32 0.17677669, %v463_v30 }
 0x120   : > { %v4862_v33 = vpop.f32.mrf.mxu0 }
 0x121   : > { %8459 = vst [vmem:[#allocation27_spill] sm:$0xff] %v4860_v32  ;;  %8460 = vst [vmem:[#allocation28_spill] sm:$0xff] %v4862_v33 }
 0x122   : > { %v469_v35 = vpop.f32.mrf.mxu0 }
 0x124   : > { %v471_v36 = vpop.f32.mrf.mxu0 }
 0x126   : > { %v473_v37 = vpop.f32.mrf.mxu0 }
 0x127   : > { %v640_v38 = vpack.c.bf16 %v473_v37, %v469_v35  ;;  %v228_v37 = vld [vmem:[%s8266_s1 + $0xc8] sm:$0xff] }
 0x128   : > { %v475_v39 = vpop.f32.mrf.mxu0 }
 0x129   : > { %648 = vxpose.xlu0.c.b16.start [1/2] (short) %v640_v38, 128  ;;  %v641_v40 = vpack.c.bf16 %v475_v39, %v471_v36  ;;  %v227_v36 = vld [vmem:[%s8266_s1 + $0xc0] sm:$0xff]  ;;  %v229_v39 = vld [vmem:[%s8266_s1 + $0xd0] sm:$0xff] }
 0x12a   : > { %v479_v41 = vpop.f32.mrf.mxu0  ;;  %v263_v38 = vpack.c.bf16 %v228_v37, %v227_v36 }
 0x12b   : > { %664 = vxpose.xlu1.c.b16.start [1/2] (short) %v641_v40, 128  ;;  %v230_v40 = vld [vmem:[%s8266_s1 + $0xd8] sm:$0xff] }
 0x12c   : > { %v481_v42 = vpop.f32.mrf.mxu0  ;;  %3929 = vmatmul.mubr.msk.bf16.gmra.mxu0 %vm275_vm1, %v263_v38 }
 0x12d   : > { %517 = vmatprep.mubr.bf16.mxu0 %v8270_v0 }
 0x12e   : > { %v483_v43 = vpop.f32.mrf.mxu0 }
 0x12f   : > { %v642_v44 = vpack.c.bf16 %v483_v43, %v479_v41  ;;  %v264_v41 = vpack.c.bf16 %v230_v40, %v229_v39  ;;  %v232_v43 = vld [vmem:[%s8266_s1 + $0xe8] sm:$0xff] }
 0x130   : > { %v485_v45 = vpop.f32.mrf.mxu0 }
 0x131   : > { %649 = vxpose.xlu0.c.b16.end [2/2] (short) %v642_v44, 128  ;;  %v643_v46 = vpack.c.bf16 %v485_v45, %v481_v42  ;;  %v231_v42 = vld [vmem:[%s8266_s1 + $0xe0] sm:$0xff]  ;;  %v233_v45 = vld [vmem:[%s8266_s1 + $0xf0] sm:$0xff] }
 0x132   : > { %v265_v44 = vpack.c.bf16 %v232_v43, %v231_v42 }
 0x133   : > { %665 = vxpose.xlu1.c.b16.end [2/2] (short) %v643_v46, 128  ;;  %v234_v46 = vld [vmem:[%s8266_s1 + $0xf8] sm:$0xff] }
 0x134   : > { %3930 = vmatmul.mubr.msk.bf16.gmra.mxu0 %vm275_vm1, %v264_v41 }
 0x135   : > { %527 = vmatprep.mubr.bf16.mxu0 %v8270_v0 }
 0x13c   : > { %3931 = vmatmul.mubr.msk.bf16.gmra.mxu0 %vm275_vm1, %v265_v44 }
 0x13d   : > { %537 = vmatprep.mubr.bf16.mxu0 %v8270_v0 }
 0x18f   : > { %v656_v47 = vpop.trf.xlu0 }
 0x190   : > { %3941 = vmatmul.mubr.msk.bf16.vlgmr.msra.gmra.mxu1 %vm680_vm2, %v656_v47  ;;  %v266_v47 = vpack.c.bf16 %v234_v46, %v233_v45 }
 0x191   : > { %771 = vmatprep.mubr.bf16.mxu1 %v8270_v0  ;;  %v672_v56 = vpop.trf.xlu1 }
 0x192   : > { %3932 = vmatmul.mubr.msk.bf16.gmra.mxu0 %vm275_vm1, %v266_v47 }
 0x193   : > { %v657_v48 = vpop.trf.xlu0  ;;  %547 = vmatprep.mubr.bf16.mxu0 %v8270_v0 }
 0x195   : > { %v673_v57 = vpop.trf.xlu1 }
 0x197   : > { %v658_v49 = vpop.trf.xlu0 }
 0x198   : > { %3942 = vmatmul.mubr.msk.bf16.gmra.mxu1 %vm680_vm2, %v657_v48  ;;  %v235_v48 = vld [vmem:[%s8266_s1 + $0x100] sm:$0xff] }
 0x199   : > { %781 = vmatprep.mubr.bf16.mxu1 %v8270_v0  ;;  %v674_v60 = vpop.trf.xlu1 }
 0x19b   : > { %v659_v50 = vpop.trf.xlu0 }
 0x19d   : > { %v675_v63 = vpop.trf.xlu1 }
 0x19f   : > { %v660_v51 = vpop.trf.xlu0 }
 0x1a0   : > { %3943 = vmatmul.mubr.msk.bf16.gmra.mxu1 %vm680_vm2, %v658_v49  ;;  %v236_v49 = vld [vmem:[%s8266_s1 + $0x108] sm:$0xff] }
 0x1a1   : > { %791 = vmatprep.mubr.bf16.mxu1 %v8270_v0  ;;  %v676_v14 = vpop.trf.xlu1 }
 0x1a3   : > { %v661_v52 = vpop.trf.xlu0 }
 0x1a5   : > { %v677_v28 = vpop.trf.xlu1 }
 0x1a7   : > { %v662_v54 = vpop.trf.xlu0 }
 0x1a8   : > { %3944 = vmatmul.mubr.msk.bf16.gmra.mxu1 %vm680_vm2, %v659_v50  ;;  %v267_v50 = vpack.c.bf16 %v236_v49, %v235_v48 }
 0x1a9   : > { %801 = vmatprep.mubr.bf16.mxu1 %v8270_v0  ;;  %v678_v30 = vpop.trf.xlu1 }
 0x1aa   : > { %3933 = vmatmul.mubr.msk.bf16.gmra.mxu0 %vm275_vm1, %v267_v50 }
 0x1ab   : > { %v663_v55 = vpop.trf.xlu0  ;;  %557 = vmatprep.mubr.bf16.mxu0 %v8270_v0 }
 0x1ad   : > { %v679_v35 = vpop.trf.xlu1 }
 0x1b0   : > { %3945 = vmatmul.mubr.msk.bf16.gmra.mxu1 %vm680_vm2, %v660_v51  ;;  %v237_v51 = vld [vmem:[%s8266_s1 + $0x110] sm:$0xff] }
 0x1b1   : > { %811 = vmatprep.mubr.bf16.mxu1 %v8270_v0 }
 0x1b8   : > { %3946 = vmatmul.mubr.msk.bf16.gmra.mxu1 %vm680_vm2, %v661_v52  ;;  %v238_v52 = vld [vmem:[%s8266_s1 + $0x118] sm:$0xff] }
 0x1b9   : > { %821 = vmatprep.mubr.bf16.mxu1 %v8270_v0 }
 0x1c0   : > { %3947 = vmatmul.mubr.msk.bf16.gmra.mxu1 %vm680_vm2, %v662_v54  ;;  %v268_v54 = vpack.c.bf16 %v238_v52, %v237_v51 }
 0x1c1   : > { %831 = vmatprep.mubr.bf16.mxu1 %v8270_v0 }
 0x1c2   : > { %3934 = vmatmul.mubr.msk.bf16.gmra.mxu0 %vm275_vm1, %v268_v54 }
 0x1c3   : > { %567 = vmatprep.mubr.bf16.mxu0 %v8270_v0 }
 0x1c8   : > { %3948 = vmatmul.mubr.msk.bf16.gmra.mxu1 %vm680_vm2, %v663_v55 }
 0x1c9   : > { %841 = vmatprep.mubr.bf16.mxu1 %v8270_v0 }
 0x1d0   : > { %3949 = vmatmul.mubr.msk.bf16.gmra.mxu1 %vm680_vm2, %v672_v56 }
 0x1d1   : > { %851 = vmatprep.mubr.bf16.mxu1 %v8270_v0 }
 0x1d8   : > { %3950 = vmatmul.mubr.msk.bf16.gmra.mxu1 %vm680_vm2, %v673_v57 }
 0x1d9   : > { %861 = vmatprep.mubr.bf16.mxu1 %v8270_v0 }
 0x1e0   : > { %3951 = vmatmul.mubr.msk.bf16.gmra.mxu1 %vm680_vm2, %v674_v60 }
 0x1e1   : > { %871 = vmatprep.mubr.bf16.mxu1 %v8270_v0 }
 0x1e8   : > { %3952 = vmatmul.mubr.msk.bf16.gmra.mxu1 %vm680_vm2, %v675_v63 }
 0x1e9   : > { %881 = vmatprep.mubr.bf16.mxu1 %v8270_v0 }
 0x1f0   : > { %3953 = vmatmul.mubr.msk.bf16.gmra.mxu1 %vm680_vm2, %v676_v14 }
 0x1f1   : > { %891 = vmatprep.mubr.bf16.mxu1 %v8270_v0 }
 0x1f8   : > { %3954 = vmatmul.mubr.msk.bf16.gmra.mxu1 %vm680_vm2, %v677_v28 }
 0x1f9   : > { %901 = vmatprep.mubr.bf16.mxu1 %v8270_v0 }
 0x200   : > { %3955 = vmatmul.mubr.msk.bf16.gmra.mxu1 %vm680_vm2, %v678_v30 }
 0x201   : > { %911 = vmatprep.mubr.bf16.mxu1 %v8270_v0 }
 0x208   : > { %3956 = vmatmul.mubr.msk.bf16.gmra.mxu1 %vm680_vm2, %v679_v35 }
 0x250   : > { %v4961_v55 = vpop.f32.mrf.mxu1 }
 0x252   : > { %v4963_v56 = vpop.f32.mrf.mxu1 }
 0x254   : > { %v4965_v57 = vpop.f32.mrf.mxu1 }
 0x256   : > { %v4967_v60 = vpop.f32.mrf.mxu1 }
 0x258   : > { %v4969_v63 = vpop.f32.mrf.mxu1 }
 0x259   : > { %v922_v11 = vmax.f32 %v4961_v55, %v4969_v63 }
 0x25a   : > { %v4971_v2 = vpop.f32.mrf.mxu1 }
 0x25c   : > { %v4973_v7 = vpop.f32.mrf.mxu1 }
 0x25d   : > { %v923_v17 = vmax.f32 %v4965_v57, %v4973_v7 }
 0x25e   : > { %v4975_v9 = vpop.f32.mrf.mxu1 }
 0x25f   : > { %8461 = vst [vmem:[#allocation29_spill] sm:$0xff] %v4975_v9 }
 0x260   : > { %v4977_v14 = vpop.f32.mrf.mxu1 }
 0x261   : > { %v924_v8 = vmax.f32 %v922_v11, %v4977_v14 }
 0x262   : > { %v4979_v16 = vpop.f32.mrf.mxu1 }
 0x264   : > { %v4981_v21 = vpop.f32.mrf.mxu1 }
 0x265   : > { %v925_v12 = vmax.f32 %v923_v17, %v4981_v21 }
 0x266   : > { %v4983_v23 = vpop.f32.mrf.mxu1 }
 0x268   : > { %v4985_v28 = vpop.f32.mrf.mxu1 }
 0x269   : > { %v926_v19 = vmax.f32 %v924_v8, %v4985_v28 }
 0x26a   : > { %v4987_v30 = vpop.f32.mrf.mxu1 }
 0x26c   : > { %v4989_v35 = vpop.f32.mrf.mxu1 }
 0x26d   : > { %v927_v58 = vmax.f32 %v925_v12, %v4989_v35 }
 0x26e   : > { %v4991_v36 = vpop.f32.mrf.mxu1 }
 0x270   : > { %v4993_v37 = vpop.f32.mrf.mxu1 }
 0x271   : > { %8462 = vst [vmem:[#allocation30_spill] sm:$0xff] %v4993_v37  ;;  %v928_v3 = vmax.f32 %v926_v19, %v4993_v37 }
 0x272   : > { %v4995_v38 = vpop.f32.mrf.mxu1 }
 0x274   : > { %v4997_v39 = vpop.f32.mrf.mxu1 }
 0x275   : > { %v929_v4 = vmax.f32 %v927_v58, %v4997_v39 }
 0x276   : > { %v4999_v40 = vpop.f32.mrf.mxu1 }
 0x278   : > { %v5001_v41 = vpop.f32.mrf.mxu1 }
 0x279   : > { %8463 = vst [vmem:[#allocation31_spill] sm:$0xff] %v5001_v41  ;;  %v930_v61 = vmax.f32 %v928_v3, %v5001_v41 }
 0x27a   : > { %v5003_v42 = vpop.f32.mrf.mxu1 }
 0x27c   : > { %v5005_v43 = vpop.f32.mrf.mxu1 }
 0x27d   : > { %v931_v11 = vmax.f32 %v929_v4, %v5005_v43 }
 0x27e   : > { %v5007_v44 = vpop.f32.mrf.mxu1 }
 0x280   : > { %v5009_v45 = vpop.f32.mrf.mxu1 }
 0x281   : > { %8464 = vst [vmem:[#allocation32_spill] sm:$0xff] %v5009_v45  ;;  %v932_v17 = vmax.f32 %v930_v61, %v5009_v45 }
 0x282   : > { %v5011_v46 = vpop.f32.mrf.mxu1 }
 0x284   : > { %v5013_v47 = vpop.f32.mrf.mxu1 }
 0x285   : > { %v933_v8 = vmax.f32 %v931_v11, %v5013_v47  ;;  %v960_v11 = vmax.f32 %v4967_v60, %v4975_v9 }
 0x286   : > { %v5015_v48 = vpop.f32.mrf.mxu1 }
 0x288   : > { %v5017_v49 = vpop.f32.mrf.mxu1 }
 0x289   : > { %v934_v12 = vmax.f32 %v932_v17, %v5017_v49 }
 0x28a   : > { %v5019_v50 = vpop.f32.mrf.mxu1 }
 0x28c   : > { %v5021_v51 = vpop.f32.mrf.mxu1 }
 0x28d   : > { %8465 = vst [vmem:[#allocation33_spill] sm:$0xff] %v5021_v51  ;;  %v935_v19 = vmax.f32 %v933_v8, %v5021_v51 }
 0x28e   : > { %v5023_v52 = vpop.f32.mrf.mxu1 }
 0x290   : > { %v5025_v54 = vpop.f32.mrf.mxu1 }
 0x291   : > { %v936_v58 = vmax.f32 %v934_v12, %v5025_v54  ;;  %v959_v12 = vmax.f32 %v4963_v56, %v4971_v2 }
 0x292   : > { %v5027_v27 = vpop.f32.mrf.mxu1 }
 0x294   : > { %v5029_v34 = vpop.f32.mrf.mxu1 }
 0x295   : > { %v937_v3 = vmax.f32 %v935_v19, %v5029_v34  ;;  %v962_v19 = vmax.f32 %v960_v11, %v4983_v23 }
 0x296   : > { %v5031_v13 = vpop.f32.mrf.mxu1 }
 0x297   : > { %v964_v9 = vmax.f32 %v962_v19, %v4991_v36 }
 0x298   : > { %v5033_v20 = vpop.f32.mrf.mxu1 }
 0x299   : > { %8466 = vst [vmem:[#allocation34_spill] sm:$0xff] %v5033_v20  ;;  %v938_v4 = vmax.f32 %v936_v58, %v5033_v20  ;;  %v961_v20 = vmax.f32 %v959_v12, %v4979_v16  ;;  %v966_v11 = vmax.f32 %v964_v9, %v4999_v40 }
 0x29a   : > { %v5035_v62 = vpop.f32.mrf.mxu1 }
 0x29b   : > { %v968_v19 = vmax.f32 %v966_v11, %v5007_v44 }
 0x29c   : > { %v5037_v6 = vpop.f32.mrf.mxu1 }
 0x29d   : > { %8467 = vst [vmem:[#allocation35_spill] sm:$0xff] %v5037_v6  ;;  %v939_v61 = vmax.f32 %v937_v3, %v5037_v6  ;;  %v970_v9 = vmax.f32 %v968_v19, %v5015_v48 }
 0x29e   : > { %v5039_v0 = vpop.f32.mrf.mxu1 }
 0x2a0   : > { %v5041_v24 = vpop.f32.mrf.mxu1 }
 0x2a1   : > { %8468 = vst [vmem:[#allocation36_spill] sm:$0xff] %v5041_v24  ;;  %v940_v17 = vmax.f32 %v938_v4, %v5041_v24  ;;  %v963_v24 = vmax.f32 %v961_v20, %v4987_v30 }
 0x2a2   : > { %v5043_v25 = vpop.f32.mrf.mxu1 }
 0x2a3   : > { %v965_v12 = vmax.f32 %v963_v24, %v4995_v38  ;;  %v972_v24 = vmax.f32 %v970_v9, %v5023_v52 }
 0x2a4   : > { %v5045_v31 = vpop.f32.mrf.mxu1 }
 0x2a5   : > { %8469 = vst [vmem:[#allocation37_spill] sm:$0xff] %v5045_v31  ;;  %v941_v8 = vmax.f32 %v939_v61, %v5045_v31  ;;  %v967_v20 = vmax.f32 %v965_v12, %v5003_v42 }
 0x2a6   : > { %v5047_v32 = vpop.f32.mrf.mxu1 }
 0x2a8   : > { %v5049_v22 = vpop.f32.mrf.mxu1 }
 0x2a9   : > { %v942_v58 = vmax.f32 %v940_v17, %v5049_v22 }
 0x2aa   : > { %v5051_v26 = vpop.f32.mrf.mxu1 }
 0x2ac   : > { %v5053_v29 = vpop.f32.mrf.mxu1 }
 0x2ad   : > { %8470 = vst [vmem:[#allocation38_spill] sm:$0xff] %v5053_v29  ;;  %v943_v3 = vmax.f32 %v941_v8, %v5053_v29 }
 0x2ae   : > { %v5055_v33 = vpop.f32.mrf.mxu1 }
 0x2b0   : > { %v5057_v10 = vpop.f32.mrf.mxu1 }
 0x2b1   : > { %v944_v4 = vmax.f32 %v942_v58, %v5057_v10 }
 0x2b2   : > { %v5063_v18 = vpop.f32.mrf.mxu1 }
 0x2b4   : > { %v5067_v15 = vpop.f32.mrf.mxu1 }
 0x2b5   : > { %8471 = vst [vmem:[#allocation39_spill] sm:$0xff] %v5067_v15  ;;  %v945_v61 = vmax.f32 %v943_v3, %v5067_v15 }
 0x2b6   : > { %v5071_v59 = vpop.f32.mrf.mxu1 }
 0x2b8   : > { %v5075_v53 = vpop.f32.mrf.mxu1 }
 0x2b9   : > { %8472 = vst [vmem:[#allocation40_spill] sm:$0xff] %v5075_v53  ;;  %v946_v17 = vmax.f32 %v944_v4, %v5075_v53 }
 0x2ba   : > { %v5079_v1 = vpop.f32.mrf.mxu1 }
 0x2bc   : > { %v5083_v5 = vpop.f32.mrf.mxu1 }
 0x2bd   : > { %8473 = vst [vmem:[#allocation41_spill] sm:$0xff] %v5083_v5  ;;  %v947_v8 = vmax.f32 %v945_v61, %v5083_v5  ;;  %v969_v5 = vmax.f32 %v967_v20, %v5011_v46 }
 0x2be   : > { %v5087_v37 = vpop.f32.mrf.mxu1 }
 0x2bf   : > { %v971_v11 = vmax.f32 %v969_v5, %v5019_v50 }
 0x2c0   : > { %v5091_v41 = vpop.f32.mrf.mxu1 }
 0x2c1   : > { %8474 = vst [vmem:[#allocation42_spill] sm:$0xff] %v5091_v41  ;;  %v948_v58 = vmax.f32 %v946_v17, %v5091_v41  ;;  %v974_v17 = vmax.f32 %v972_v24, %v5031_v13 }
 0x2c2   : > { %v5095_v45 = vpop.f32.mrf.mxu1 }
 0x2c3   : > { %v976_v12 = vmax.f32 %v974_v17, %v5039_v0 }
 0x2c4   : > { %v5101_v51 = vpop.f32.mrf.mxu1 }
 0x2c5   : > { %8475 = vst [vmem:[#allocation43_spill] sm:$0xff] %v5101_v51  ;;  %v949_v3 = vmax.f32 %v947_v8, %v5101_v51  ;;  %v973_v51 = vmax.f32 %v971_v11, %v5027_v27 }
 0x2c6   : > { %v5108_v6 = vpop.f32.mrf.mxu1 }
 0x2c7   : > { %8476 = vst [vmem:[#allocation44_spill] sm:$0xff] %v5108_v6  ;;  %v975_v19 = vmax.f32 %v973_v51, %v5035_v62 }
 0x2c8   : > { %v5114_v31 = vpop.f32.mrf.mxu1 }
 0x2c9   : > { %v950_v4 = vmax.f32 %v948_v58, %v5114_v31  ;;  %v978_v58 = vmax.f32 %v976_v12, %v5047_v32  ;;  %v977_v20 = vmax.f32 %v975_v19, %v5043_v25 }
 0x2ca   : > { %v5120_v29 = vpop.f32.mrf.mxu1 }
 0x2cb   : > { %8477 = vst [vmem:[#allocation45_spill] sm:$0xff] %v5120_v29  ;;  %v980_v9 = vmax.f32 %v978_v58, %v5055_v33  ;;  %v979_v5 = vmax.f32 %v977_v20, %v5051_v26  ;;  %v489_v58 = vpop.f32.mrf.mxu0 }
 0x2cc   : > { %v5126_v15 = vpop.f32.mrf.mxu1 }
 0x2cd   : > { %v951_v61 = vmax.f32 %v949_v3, %v5126_v15  ;;  %v981_v11 = vmax.f32 %v979_v5, %v5063_v18 }
 0x2cf   : > { %v952_v53 = vmax.f32 %v950_v4, %v951_v61  ;;  %v982_v61 = vmax.f32 %v980_v9, %v5071_v59  ;;  %v983_v51 = vmax.f32 %v981_v11, %v5079_v1 }
 0x2d1   : > { %v953_v8 = vrot.slane %v952_v53, 4  ;;  %v984_v17 = vmax.f32 %v982_v61, %v5087_v37  ;;  %v985_v19 = vmax.f32 %v983_v51, %v5095_v45  ;;  %v5161_v61 = vpop.f32.mrf.mxu0 }
 0x2d3   : > { %v954_v41 = vmax.f32 %v952_v53, %v953_v8  ;;  %v5146_v53 = vpop.f32.mrf.mxu1  ;;  %v986_v8 = vmax.f32 %v984_v17, %v5108_v6  ;;  %v493_v11 = vpop.f32.mrf.mxu0 }
 0x2d4   : > { %8478 = vst [vmem:[#allocation46_spill] sm:$0xff] %v5146_v53 }
 0x2d5   : > { %v955_v3 = vrot.slane %v954_v41, 2 }
 0x2d7   : > { %v956_v4 = vmax.f32 %v954_v41, %v955_v3  ;;  %v988_v41 = vmax.f32 %v986_v8, %v5146_v53  ;;  %v987_v3 = vmax.f32 %v985_v19, %v5120_v29  ;;  %v5167_v53 = vpop.f32.mrf.mxu0 }
 0x2d9   : > { %v957_v24 = vrot.slane %v956_v4, 1 }
 0x2db   : > { %v5150_v12 = vmax.f32 %v956_v4, %v957_v24  ;;  %v989_v4 = vmax.f32 %v987_v3, %v988_v41  ;;  %v5171_v3 = vpop.f32.mrf.mxu0 }
 0x2dd   : > { %v996_v20 = vsub.f32 %v4961_v55, %v5150_v12  ;;  %v998_v9 = vsub.f32 %v4965_v57, %v5150_v12  ;;  %v1000_v5 = vsub.f32 %v4969_v63, %v5150_v12  ;;  %v1002_v24 = vsub.f32 %v4973_v7, %v5150_v12 }
 0x2de   : > { %v1004_v8 = vsub.f32 %v4977_v14, %v5150_v12  ;;  %v1425_v55 = vpack.c.bf16 %v493_v11, %v489_v58  ;;  %v990_v57 = vrot.slane %v989_v4, 4  ;;  %v1006_v63 = vsub.f32 %v4981_v21, %v5150_v12  ;;  %v5175_v14 = vpop.f32.mrf.mxu0  ;;  %v8479_v21 = vld [vmem:[#allocation30_spill] sm:$0xff] }
 0x2df   : > { %v1060_v17 = vmul.f32 1.442695, %v996_v20  ;;  %v1064_v51 = vmul.f32 1.442695, %v998_v9  ;;  %v1068_v19 = vmul.f32 1.442695, %v1000_v5  ;;  %v1008_v7 = vsub.f32 %v4985_v28, %v5150_v12 }
 0x2e0   : > { %v1072_v41 = vmul.f32 1.442695, %v1002_v24  ;;  %1433 = vxpose.xlu0.c.b16.start [1/2] (short) %v1425_v55, 128  ;;  %v1076_v20 = vmul.f32 1.442695, %v1004_v8  ;;  %v991_v58 = vmax.f32 %v989_v4, %v990_v57  ;;  %v1010_v9 = vsub.f32 %v4989_v35, %v5150_v12  ;;  %v5179_v11 = vpop.f32.mrf.mxu0  ;;  %v8480_v4 = vld [vmem:[#allocation31_spill] sm:$0xff] }
 0x2e1   : > { %4054 = vpow2.f32 %v1060_v17  ;;  %v1080_v5 = vmul.f32 1.442695, %v1006_v63  ;;  %v1012_v24 = vsub.f32 %v8479_v21, %v5150_v12  ;;  %v1084_v17 = vmul.f32 1.442695, %v1008_v7 }
 0x2e2   : > { %4056 = vpow2.f32 %v1064_v51  ;;  %v992_v51 = vrot.slane %v991_v58, 2  ;;  %v1014_v28 = vsub.f32 %v4997_v39, %v5150_v12  ;;  %v1088_v8 = vmul.f32 1.442695, %v1010_v9  ;;  %v8483_v9 = vld [vmem:[#allocation32_spill] sm:$0xff] }
 0x2e3   : > { %4058 = vpow2.f32 %v1068_v19  ;;  %v5185_v19 = vpop.f32.mrf.mxu0  ;;  %v1016_v35 = vsub.f32 %v8480_v4, %v5150_v12  ;;  %v1092_v55 = vmul.f32 1.442695, %v1012_v24  ;;  %v1018_v7 = vsub.f32 %v5005_v43, %v5150_v12 }
 0x2e4   : > { %4060 = vpow2.f32 %v1072_v41  ;;  %v993_v63 = vmax.f32 %v991_v58, %v992_v51  ;;  %v1022_v43 = vsub.f32 %v5013_v47, %v5150_v12  ;;  %v8487_v47 = vld [vmem:[#allocation33_spill] sm:$0xff] }
 0x2e5   : > { %4062 = vpow2.f32 %v1076_v20  ;;  %v5189_v57 = vpop.f32.mrf.mxu0  ;;  %v1096_v20 = vmul.f32 1.442695, %v1014_v28  ;;  %v1100_v21 = vmul.f32 1.442695, %v1016_v35  ;;  %v1104_v28 = vmul.f32 1.442695, %v1018_v7 }
 0x2e6   : > { %4064 = vpow2.f32 %v1080_v5  ;;  %v1020_v5 = vsub.f32 %v8483_v9, %v5150_v12  ;;  %v994_v51 = vrot.slane %v993_v63, 1  ;;  %v1024_v35 = vsub.f32 %v5017_v49, %v5150_v12 }
 0x2e7   : > { %4066 = vpow2.f32 %v1084_v17  ;;  %v5201_v17 = vpop.f32.mrf.mxu0  ;;  %v1026_v7 = vsub.f32 %v8487_v47, %v5150_v12  ;;  %v1028_v49 = vsub.f32 %v5025_v54, %v5150_v12 }
 0x2e8   : > { %4068 = vpow2.f32 %v1088_v8  ;;  %v5217_v29 = vmax.f32 %v993_v63, %v994_v51 }
 0x2e9   : > { %4070 = vpow2.f32 %v1092_v55  ;;  %v1108_v55 = vmul.f32 1.442695, %v1020_v5  ;;  %v1030_v5 = vsub.f32 %v5029_v34, %v5150_v12  ;;  %v8491_v34 = vld [vmem:[#allocation34_spill] sm:$0xff] }
 0x2ea   : > { %4072 = vpow2.f32 %v1096_v20  ;;  %v1112_v20 = vmul.f32 1.442695, %v1022_v43  ;;  %v997_v43 = vsub.f32 %v4963_v56, %v5217_v29  ;;  %v999_v54 = vsub.f32 %v4967_v60, %v5217_v29 }
 0x2eb   : > { %4074 = vpow2.f32 %v1100_v21  ;;  %v1116_v21 = vmul.f32 1.442695, %v1024_v35  ;;  %v1032_v35 = vsub.f32 %v8491_v34, %v5150_v12  ;;  %v1001_v56 = vsub.f32 %v4971_v2, %v5217_v29  ;;  %v8496_v34 = vld [vmem:[#allocation37_spill] sm:$0xff] }
 0x2ec   : > { %4076 = vpow2.f32 %v1104_v28  ;;  %v1120_v28 = vmul.f32 1.442695, %v1026_v7 }
 0x2ed   : > { %4078 = vpow2.f32 %v1108_v55  ;;  %v1124_v55 = vmul.f32 1.442695, %v1028_v49  ;;  %v1132_v6 = vmul.f32 1.442695, %v1032_v35  ;;  %v1426_v35 = vpack.c.bf16 %v5167_v53, %v5161_v61 }
 0x2ee   : > { %v5191_v41 = vpop.eup %4054  ;;  %4080 = vpow2.f32 %v1112_v20  ;;  %v1428_v53 = vpack.c.bf16 %v5185_v19, %v5175_v14  ;;  %v1044_v14 = vsub.f32 %v5057_v10, %v5150_v12 }
 0x2ef   : > { %8481 = vst [vmem:[#allocation30_spill] sm:$0xff] %v5191_v41  ;;  %v5195_v39 = vpop.eup %4056  ;;  %4082 = vpow2.f32 %v1116_v21  ;;  %1449 = vxpose.xlu1.c.b16.start [1/2] (short) %v1426_v35, 128 }
 0x2f0   : > { %8482 = vst [vmem:[#allocation31_spill] sm:$0xff] %v5195_v39  ;;  %v1188_v24 = vadd.f32 %v5195_v39, %v5191_v41  ;;  %v5203_v58 = vpop.eup %4058  ;;  %v5213_v39 = vpop.f32.mrf.mxu0  ;;  %4084 = vpow2.f32 %v1120_v28 }
 0x2f1   : > { %8484 = vst [vmem:[#allocation32_spill] sm:$0xff] %v5203_v58  ;;  %v5208_v4 = vpop.eup %4060  ;;  %4086 = vpow2.f32 %v1124_v55 }
 0x2f2   : > { %v1189_v8 = vadd.f32 %v5203_v58, %v1188_v24  ;;  %8485 = vst [vmem:[#allocation47_spill] sm:$0xff] %v5208_v4  ;;  %v5215_v41 = vpop.eup %4062  ;;  %v5229_v51 = vpop.f32.mrf.mxu0 }
 0x2f3   : > { %8486 = vst [vmem:[#allocation48_spill] sm:$0xff] %v5215_v41  ;;  %v5222_v58 = vpop.eup %4064  ;;  %1450 = vxpose.xlu1.c.b16.end [2/2] (short) %v1428_v53, 128 }
 0x2f4   : > { %v1190_v9 = vadd.f32 %v5208_v4, %v1189_v8  ;;  %8488 = vst [vmem:[#allocation33_spill] sm:$0xff] %v5222_v58  ;;  %v5231_v8 = vpop.eup %4066  ;;  %v5245_v20 = vpop.f32.mrf.mxu0 }
 0x2f5   : > { %8489 = vst [vmem:[#allocation49_spill] sm:$0xff] %v5231_v8  ;;  %v5238_v47 = vpop.eup %4068 }
 0x2f6   : > { %v1191_v24 = vadd.f32 %v5215_v41, %v1190_v9  ;;  %8490 = vst [vmem:[#allocation50_spill] sm:$0xff] %v5238_v47  ;;  %v5247_v7 = vpop.eup %4070  ;;  %v5263_v28 = vpop.f32.mrf.mxu0 }
 0x2f7   : > { %8492 = vst [vmem:[#allocation34_spill] sm:$0xff] %v5247_v7  ;;  %v5254_v21 = vpop.eup %4072 }
 0x2f8   : > { %v1192_v63 = vadd.f32 %v5222_v58, %v1191_v24  ;;  %v1128_v24 = vmul.f32 1.442695, %v1030_v5  ;;  %v8494_v58 = vld [vmem:[#allocation29_spill] sm:$0xff]  ;;  %v1066_v5 = vmul.f32 1.442695, %v999_v54  ;;  %v5283_v61 = vpop.f32.mrf.mxu0 }
 0x2f9   : > { %v1003_v41 = vsub.f32 %v8494_v58, %v5217_v29  ;;  %v1005_v58 = vsub.f32 %v4979_v16, %v5217_v29  ;;  %v1427_v16 = vpack.c.bf16 %v5179_v11, %v5171_v3 }
 0x2fa   : > { %v1193_v9 = vadd.f32 %v5231_v8, %v1192_v63  ;;  %v8493_v63 = vld [vmem:[#allocation35_spill] sm:$0xff]  ;;  %v1062_v8 = vmul.f32 1.442695, %v997_v43  ;;  %4088 = vpow2.f32 %v1128_v24  ;;  %v1070_v43 = vmul.f32 1.442695, %v1001_v56 }
 0x2fb   : > { %v1034_v60 = vsub.f32 %v8493_v63, %v5150_v12  ;;  %v1040_v56 = vsub.f32 %v5049_v22, %v5150_v12  ;;  %1434 = vxpose.xlu0.c.b16.end [2/2] (short) %v1427_v16, 128  ;;  %v8497_v22 = vld [vmem:[#allocation38_spill] sm:$0xff]  ;;  %v8499_v16 = vld [vmem:[#allocation40_spill] sm:$0xff] }
 0x2fc   : > { %v1194_v4 = vadd.f32 %v5238_v47, %v1193_v9  ;;  %v8495_v9 = vld [vmem:[#allocation36_spill] sm:$0xff]  ;;  %v1038_v47 = vsub.f32 %v8496_v34, %v5150_v12  ;;  %4090 = vpow2.f32 %v1062_v8  ;;  %v1078_v8 = vmul.f32 1.442695, %v1005_v58  ;;  %v5299_v58 = vpop.f32.mrf.mxu0 }
 0x2fd   : > { %v1036_v2 = vsub.f32 %v8495_v9, %v5150_v12  ;;  %v1136_v54 = vmul.f32 1.442695, %v1034_v60  ;;  %v1007_v9 = vsub.f32 %v4983_v23, %v5217_v29  ;;  %4092 = vpow2.f32 %v1066_v5 }
 0x2fe   : > { %v1195_v49 = vadd.f32 %v5247_v7, %v1194_v4  ;;  %v5265_v4 = vpop.eup %4074  ;;  %v1074_v7 = vmul.f32 1.442695, %v1003_v41  ;;  %4094 = vpow2.f32 %v1132_v6  ;;  %v1009_v23 = vsub.f32 %v4987_v30, %v5217_v29 }
 0x2ff   : > { %v5274_v24 = vpop.eup %4076  ;;  %v1140_v60 = vmul.f32 1.442695, %v1036_v2  ;;  %4096 = vpow2.f32 %v1070_v43  ;;  %v1042_v6 = vsub.f32 %v8497_v22, %v5150_v12  ;;  %v1144_v11 = vmul.f32 1.442695, %v1038_v47  ;;  %v8502_v22 = vld [vmem:[#allocation41_spill] sm:$0xff] }
 0x300   : > { %v1196_v63 = vadd.f32 %v5254_v21, %v1195_v49  ;;  %v5285_v3 = vpop.eup %4078  ;;  %4098 = vpow2.f32 %v1136_v54  ;;  %v1011_v49 = vsub.f32 %v4991_v36, %v5217_v29  ;;  %v1082_v5 = vmul.f32 1.442695, %v1007_v9 }
 0x301   : > { %4100 = vpow2.f32 %v1074_v7  ;;  %v5292_v2 = vpop.eup %4080  ;;  %v1148_v19 = vmul.f32 1.442695, %v1040_v56  ;;  %v1086_v47 = vmul.f32 1.442695, %v1009_v23  ;;  %v8498_v7 = vld [vmem:[#allocation39_spill] sm:$0xff]  ;;  %v1015_v9 = vsub.f32 %v4999_v40, %v5217_v29 }
 0x302   : > { %v1197_v55 = vadd.f32 %v5265_v4, %v1196_v63  ;;  %4102 = vpow2.f32 %v1140_v60  ;;  %v1013_v63 = vsub.f32 %v4995_v38, %v5217_v29  ;;  %v5301_v36 = vpop.eup %4082  ;;  %v1046_v43 = vsub.f32 %v8498_v7, %v5150_v12  ;;  %v5308_v38 = vpop.f32.mrf.mxu0 }
 0x303   : > { %4104 = vpow2.f32 %v1078_v8  ;;  %v1152_v54 = vmul.f32 1.442695, %v1042_v6  ;;  %v5310_v35 = vpop.eup %4084  ;;  %v1048_v56 = vsub.f32 %v8499_v16, %v5150_v12  ;;  %v1156_v60 = vmul.f32 1.442695, %v1044_v14  ;;  %v8507_v16 = vld [vmem:[#allocation43_spill] sm:$0xff] }
 0x304   : > { %v1198_v41 = vadd.f32 %v5274_v24, %v1197_v55  ;;  %4106 = vpow2.f32 %v1144_v11  ;;  %v1090_v55 = vmul.f32 1.442695, %v1011_v49  ;;  %v5314_v23 = vpop.eup %4086  ;;  %v1017_v8 = vsub.f32 %v5003_v42, %v5217_v29 }
 0x305   : > { %4108 = vpow2.f32 %v1082_v5  ;;  %8500 = vst [vmem:[#allocation35_spill] sm:$0xff] %v5314_v23  ;;  %v1094_v40 = vmul.f32 1.442695, %v1013_v63  ;;  %v1050_v6 = vsub.f32 %v8502_v22, %v5150_v12  ;;  %v1160_v11 = vmul.f32 1.442695, %v1046_v43 }
 0x306   : > { %v1199_v30 = vadd.f32 %v5285_v3, %v1198_v41  ;;  %4110 = vpow2.f32 %v1148_v19  ;;  %v1019_v14 = vsub.f32 %v5007_v44, %v5217_v29  ;;  %v1098_v42 = vmul.f32 1.442695, %v1015_v9 }
 0x307   : > { %4112 = vpow2.f32 %v1086_v47  ;;  %v5319_v53 = vpop.eup %4088  ;;  %v1164_v47 = vmul.f32 1.442695, %v1048_v56  ;;  %v1021_v7 = vsub.f32 %v5011_v46, %v5217_v29  ;;  %v1102_v44 = vmul.f32 1.442695, %v1017_v8 }
 0x308   : > { %v1200_v34 = vadd.f32 %v5292_v2, %v1199_v30  ;;  %8501 = vst [vmem:[#allocation29_spill] sm:$0xff] %v5319_v53  ;;  %4114 = vpow2.f32 %v1152_v54  ;;  %v5323_v30 = vpop.f32.mrf.mxu0  ;;  %v1168_v56 = vmul.f32 1.442695, %v1050_v6  ;;  %v1023_v46 = vsub.f32 %v5015_v48, %v5217_v29 }
 0x309   : > { %v5325_v49 = vpop.eup %4090  ;;  %4116 = vpow2.f32 %v1090_v55  ;;  %v1106_v8 = vmul.f32 1.442695, %v1019_v14  ;;  %v1025_v48 = vsub.f32 %v5019_v50, %v5217_v29  ;;  %v1110_v14 = vmul.f32 1.442695, %v1021_v7 }
 0x30a   : > { %v1201_v10 = vadd.f32 %v5301_v36, %v1200_v34  ;;  %8503 = vst [vmem:[#allocation36_spill] sm:$0xff] %v5325_v49  ;;  %v5330_v19 = vpop.eup %4092  ;;  %v8505_v34 = vld [vmem:[#allocation42_spill] sm:$0xff]  ;;  %4118 = vpow2.f32 %v1156_v60  ;;  %v5336_v43 = vpop.f32.mrf.mxu0  ;;  %v1054_v60 = vsub.f32 %v8507_v16, %v5150_v12  ;;  %v1056_v16 = vsub.f32 %v5114_v31, %v5150_v12 }
 0x30b   : > { %8504 = vst [vmem:[#allocation37_spill] sm:$0xff] %v5330_v19  ;;  %v1052_v63 = vsub.f32 %v8505_v34, %v5150_v12  ;;  %v5338_v54 = vpop.eup %4094  ;;  %4120 = vpow2.f32 %v1094_v40  ;;  %v1225_v9 = vadd.f32 %v5330_v19, %v5325_v49  ;;  %v1058_v31 = vsub.f32 %v5126_v15, %v5150_v12 }
 0x30c   : > { %v1202_v41 = vadd.f32 %v5310_v35, %v1201_v10  ;;  %v5343_v55 = vpop.eup %4096  ;;  %4122 = vpow2.f32 %v1160_v11  ;;  %v1027_v50 = vsub.f32 %v5023_v52, %v5217_v29  ;;  %v1114_v7 = vmul.f32 1.442695, %v1023_v46 }
 0x30d   : > { %8506 = vst [vmem:[#allocation38_spill] sm:$0xff] %v5343_v55  ;;  %v5351_v22 = vpop.eup %4098  ;;  %4124 = vpow2.f32 %v1098_v42  ;;  %v1172_v6 = vmul.f32 1.442695, %v1052_v63  ;;  %v1176_v63 = vmul.f32 1.442695, %v1054_v60  ;;  %v1029_v15 = vsub.f32 %v5027_v27, %v5217_v29 }
 0x30e   : > { %v1203_v5 = vadd.f32 %v5314_v23, %v1202_v41  ;;  %v5349_v41 = vpop.f32.mrf.mxu0  ;;  %v5355_v34 = vpop.eup %4100  ;;  %4126 = vpow2.f32 %v1164_v47  ;;  %v1180_v19 = vmul.f32 1.442695, %v1056_v16  ;;  %v1031_v16 = vsub.f32 %v5031_v13, %v5217_v29 }
 0x30f   : > { %8508 = vst [vmem:[#allocation39_spill] sm:$0xff] %v5355_v34  ;;  %4128 = vpow2.f32 %v1102_v44  ;;  %v2209_v27 = vpack.c.bf16 %v5213_v39, %v5189_v57  ;;  %v1126_v39 = vmul.f32 1.442695, %v1029_v15 }
 0x310   : > { %v1204_v10 = vadd.f32 %v5319_v53, %v1203_v5  ;;  %v1226_v5 = vadd.f32 %v5343_v55, %v1225_v9  ;;  %v5361_v11 = vpop.f32.mrf.mxu0  ;;  %v5363_v53 = vpop.eup %4102  ;;  %4130 = vpow2.f32 %v1168_v56  ;;  %v1118_v56 = vmul.f32 1.442695, %v1025_v48 }
 0x311   : > { %v5367_v9 = vpop.eup %4104  ;;  %4132 = vpow2.f32 %v1106_v8  ;;  %v1122_v48 = vmul.f32 1.442695, %v1027_v50  ;;  %v1035_v50 = vsub.f32 %v5039_v0, %v5217_v29  ;;  %v1037_v0 = vsub.f32 %v5043_v25, %v5217_v29 }
 0x312   : > { %v1205_v40 = vadd.f32 %v5338_v54, %v1204_v10  ;;  %v1227_v42 = vadd.f32 %v5355_v34, %v1226_v5  ;;  %v5373_v47 = vpop.f32.mrf.mxu0  ;;  %v5375_v23 = vpop.eup %4106  ;;  %4134 = vpow2.f32 %v1172_v6  ;;  %v2212_v25 = vpack.c.bf16 %v5299_v58, %v5263_v28 }
 0x313   : > { %v5379_v5 = vpop.eup %4108  ;;  %4136 = vpow2.f32 %v1110_v14  ;;  %v1142_v28 = vmul.f32 1.442695, %v1037_v0  ;;  %v1045_v0 = vsub.f32 %v5063_v18, %v5217_v29 }
 0x314   : > { %v1206_v10 = vadd.f32 %v5351_v22, %v1205_v40  ;;  %v1228_v44 = vadd.f32 %v5367_v9, %v1227_v42  ;;  %v5383_v12 = vpop.f32.mrf.mxu0  ;;  %v5385_v52 = vpop.eup %4110  ;;  %4138 = vpow2.f32 %v1176_v63  ;;  %2217 = vxpose.xlu0.c.b16.start [1/2] (short) %v2209_v27, 128 }
 0x315   : > { %v5389_v46 = vpop.eup %4112  ;;  %4140 = vpow2.f32 %v1114_v7 }
 0x316   : > { %v1207_v40 = vadd.f32 %v5363_v53, %v1206_v10  ;;  %v1229_v8 = vadd.f32 %v5379_v5, %v1228_v44  ;;  %v1184_v10 = vmul.f32 1.442695, %v1058_v31  ;;  %v5395_v6 = vpop.f32.mrf.mxu0  ;;  %v5397_v42 = vpop.eup %4114  ;;  %4142 = vpow2.f32 %v1180_v19 }
 0x317   : > { %v5401_v44 = vpop.eup %4116  ;;  %v1033_v31 = vsub.f32 %v5035_v62, %v5217_v29  ;;  %4144 = vpow2.f32 %v1118_v56  ;;  %v2211_v19 = vpack.c.bf16 %v5283_v61, %v5245_v20  ;;  %v2210_v62 = vpack.c.bf16 %v5229_v51, %v5201_v17 }
 0x318   : > { %v1208_v60 = vadd.f32 %v5375_v23, %v1207_v40  ;;  %v1230_v14 = vadd.f32 %v5389_v46, %v1229_v8  ;;  %v5405_v13 = vpop.f32.mrf.mxu0  ;;  %v5407_v63 = vpop.eup %4118  ;;  %4146 = vpow2.f32 %v1184_v10  ;;  %v1130_v56 = vmul.f32 1.442695, %v1031_v16 }
 0x319   : > { %8509 = vst [vmem:[#allocation40_spill] sm:$0xff] %v5405_v13  ;;  %v5411_v7 = vpop.eup %4120  ;;  %4148 = vpow2.f32 %v1122_v48  ;;  %v1039_v48 = vsub.f32 %v5047_v32, %v5217_v29  ;;  %2233 = vxpose.xlu1.c.b16.start [1/2] (short) %v2210_v62, 128  ;;  %2218 = vxpose.xlu0.c.b16.end [2/2] (short) %v2211_v19, 128  ;;  %v1041_v32 = vsub.f32 %v5051_v26, %v5217_v29 }
 0x31a   : > { %v1209_v40 = vadd.f32 %v5385_v52, %v1208_v60  ;;  %v1231_v60 = vadd.f32 %v5401_v44, %v1230_v14  ;;  %v551_v8 = vpop.f32.mrf.mxu0  ;;  %v5419_v49 = vpop.eup %4122  ;;  %v1134_v14 = vmul.f32 1.442695, %v1033_v31  ;;  %4150 = vpow2.f32 %v1126_v39 }
 0x31b   : > { %v5423_v10 = vpop.eup %4124  ;;  %4152 = vpow2.f32 %v1130_v56  ;;  %v1043_v56 = vsub.f32 %v5055_v33, %v5217_v29  ;;  %v1146_v26 = vmul.f32 1.442695, %v1039_v48  ;;  %v1150_v33 = vmul.f32 1.442695, %v1041_v32 }
 0x31c   : > { %v1210_v57 = vadd.f32 %v5397_v42, %v1209_v40  ;;  %v1232_v40 = vadd.f32 %v5411_v7, %v1231_v60  ;;  %v5427_v20 = vpop.f32.mrf.mxu0  ;;  %v5429_v61 = vpop.eup %4126  ;;  %4154 = vpow2.f32 %v1134_v14  ;;  %v1047_v48 = vsub.f32 %v5071_v59, %v5217_v29 }
 0x31d   : > { %8510 = vst [vmem:[#allocation41_spill] sm:$0xff] %v5427_v20  ;;  %v5435_v27 = vpop.eup %4128  ;;  %2234 = vxpose.xlu1.c.b16.end [2/2] (short) %v2212_v25, 128  ;;  %v1049_v32 = vsub.f32 %v5079_v1, %v5217_v29  ;;  %v1053_v1 = vsub.f32 %v5095_v45, %v5217_v29  ;;  %v8513_v20 = vld [vmem:[#allocation44_spill] sm:$0xff] }
 0x31e   : > { %v1211_v15 = vadd.f32 %v5407_v63, %v1210_v57  ;;  %v1233_v51 = vadd.f32 %v5423_v10, %v1232_v40  ;;  %v1138_v57 = vmul.f32 1.442695, %v1035_v50  ;;  %v555_v31 = vpop.f32.mrf.mxu0  ;;  %v5441_v60 = vpop.eup %4130 }
 0x31f   : > { %v645_v40 = vpack.c.bf16 %v555_v31, %v551_v8  ;;  %v5445_v16 = vpop.eup %4132 }
 0x320   : > { %v1212_v17 = vadd.f32 %v5419_v49, %v1211_v15  ;;  %v1234_v15 = vadd.f32 %v5435_v27, %v1233_v51  ;;  %v5449_v50 = vpop.eup %4134  ;;  %4156 = vpow2.f32 %v1138_v57 }
 0x321   : > { %1392 = vmatprep.mubr.bf16.mxu1 %v645_v40  ;;  %v5453_v19 = vpop.eup %4136  ;;  %4158 = vpow2.f32 %v1142_v28 }
 0x322   : > { %v1213_v39 = vadd.f32 %v5429_v61, %v1212_v17  ;;  %v1235_v58 = vadd.f32 %v5445_v16, %v1234_v15  ;;  %v5457_v8 = vpop.eup %4138  ;;  %4160 = vpow2.f32 %v1146_v26 }
 0x323   : > { %v5461_v31 = vpop.eup %4140  ;;  %4162 = vpow2.f32 %v1150_v33 }
 0x324   : > { %v1214_v62 = vadd.f32 %v5441_v60, %v1213_v39  ;;  %v1236_v51 = vadd.f32 %v5453_v19, %v1235_v58  ;;  %v5465_v14 = vpop.eup %4142 }
 0x325   : > { %v5469_v15 = vpop.eup %4144 }
 0x326   : > { %v1215_v17 = vadd.f32 %v5449_v50, %v1214_v62  ;;  %v1237_v25 = vadd.f32 %v5461_v31, %v1236_v51  ;;  %v5473_v57 = vpop.eup %4146  ;;  %v1154_v62 = vmul.f32 1.442695, %v1043_v56  ;;  %v1162_v56 = vmul.f32 1.442695, %v1047_v48 }
 0x327   : > { %v5477_v58 = vpop.eup %4148 }
 0x328   : > { %v1216_v39 = vadd.f32 %v5457_v8, %v1215_v17  ;;  %v1238_v18 = vadd.f32 %v5469_v15, %v1237_v25  ;;  %v1158_v17 = vmul.f32 1.442695, %v1045_v0  ;;  %v5483_v59 = vpop.eup %4150  ;;  %4164 = vpow2.f32 %v1154_v62 }
 0x329   : > { %8511 = vst [vmem:[#allocation42_spill] sm:$0xff] %v5483_v59  ;;  %v5488_v13 = vpop.eup %4152  ;;  %v1166_v0 = vmul.f32 1.442695, %v1049_v32  ;;  %v1174_v32 = vmul.f32 1.442695, %v1053_v1 }
 0x32a   : > { %v1217_v40 = vadd.f32 %v5465_v14, %v1216_v39  ;;  %v1239_v51 = vadd.f32 %v5477_v58, %v1238_v18  ;;  %v1051_v39 = vsub.f32 %v5087_v37, %v5217_v29  ;;  %8512 = vst [vmem:[#allocation43_spill] sm:$0xff] %v5488_v13  ;;  %4166 = vpow2.f32 %v1158_v17  ;;  %v5493_v18 = vpop.eup %4154 }
 0x32b   : > { %v1055_v37 = vsub.f32 %v8513_v20, %v5217_v29  ;;  %4168 = vpow2.f32 %v1162_v56 }
 0x32c   : > { %v1218_v28 = vadd.f32 %v5473_v57, %v1217_v40  ;;  %v1240_v25 = vadd.f32 %v5483_v59, %v1239_v51  ;;  %v1170_v48 = vmul.f32 1.442695, %v1051_v39  ;;  %v8514_v59 = vld [vmem:[#allocation45_spill] sm:$0xff]  ;;  %4170 = vpow2.f32 %v1166_v0 }
 0x32d   : > { %v5498_v51 = vpop.eup %4156  ;;  %v1057_v45 = vsub.f32 %v8514_v59, %v5217_v29 }
 0x32e   : > { %v1219_v26 = vrot.slane %v1218_v28, 4  ;;  %v1241_v33 = vadd.f32 %v5488_v13, %v1240_v25  ;;  %v8515_v25 = vld [vmem:[#allocation46_spill] sm:$0xff]  ;;  %v1178_v13 = vmul.f32 1.442695, %v1055_v37  ;;  %4172 = vpow2.f32 %v1170_v48 }
 0x32f   : > { %v1059_v20 = vsub.f32 %v8515_v25, %v5217_v29  ;;  %4174 = vpow2.f32 %v1174_v32  ;;  %v1182_v59 = vmul.f32 1.442695, %v1057_v45  ;;  %v2994_v37 = vpack.c.bf16 %v5349_v41, %v5323_v30 }
 0x330   : > { %v1220_v40 = vadd.f32 %v1219_v26, %v1218_v28  ;;  %v1242_v62 = vadd.f32 %v5493_v18, %v1241_v33  ;;  %v5503_v26 = vpop.eup %4158  ;;  %v2993_v33 = vpack.c.bf16 %v5336_v43, %v5308_v38  ;;  %4176 = vpow2.f32 %v1178_v13 }
 0x331   : > { %v5510_v55 = vpop.eup %4160  ;;  %v1186_v0 = vmul.f32 1.442695, %v1059_v20  ;;  %v2995_v38 = vpack.c.bf16 %v5383_v12, %v5361_v11  ;;  %v2996_v45 = vpack.c.bf16 %v5395_v6, %v5373_v47  ;;  %v8516_v47 = vmov 0  }
 0x332   : > { %v1221_v34 = vrot.slane %v1220_v40, 2  ;;  %v1243_v17 = vadd.f32 %v5498_v51, %v1242_v62  ;;  %3001 = vxpose.xlu0.c.b16.start [1/2] (short) %v2993_v33, 128 }
 0x334   : > { %v1222_v28 = vadd.f32 %v1221_v34, %v1220_v40  ;;  %v1244_v39 = vadd.f32 %v5503_v26, %v1243_v17  ;;  %v5513_v40 = vpop.eup %4162 }
 0x335   : > { %v5520_v43 = vpop.eup %4164 }
 0x336   : > { %v1223_v56 = vrot.slane %v1222_v28, 1  ;;  %v1245_v1 = vadd.f32 %v5510_v55, %v1244_v39  ;;  %3017 = vxpose.xlu1.c.b16.start [1/2] (short) %v2994_v37, 128  ;;  %3002 = vxpose.xlu0.c.b16.end [2/2] (short) %v2995_v38, 128 }
 0x337   : > { %v5523_v62 = vpop.eup %4166 }
 0x338   : > { %v1224_v34 = vadd.f32 %v1223_v56, %v1222_v28  ;;  %v1246_v29 = vadd.f32 %v5513_v40, %v1245_v1  ;;  %v5528_v28 = vpop.eup %4168 }
 0x339   : > { %v5531_v41 = vpop.eup %4170 }
 0x33a   : > { %4178 = vrcp.f32 %v1224_v34  ;;  %v1247_v48 = vadd.f32 %v5520_v43, %v1246_v29  ;;  %3018 = vxpose.xlu1.c.b16.end [2/2] (short) %v2996_v45, 128 }
 0x33b   : > { %4180 = vpow2.f32 %v1182_v59  ;;  %v5534_v12 = vpop.eup %4172 }
 0x33c   : > { %4182 = vpow2.f32 %v1186_v0  ;;  %v1248_v13 = vadd.f32 %v5523_v62, %v1247_v48  ;;  %v4175_v17 = vpop.eup %4174 }
 0x33d   : > { %v4177_v25 = vpop.eup %4176 }
 0x33e   : > { %v1249_v30 = vadd.f32 %v5528_v28, %v1248_v13 }
 0x33f   : > { %4052 = vset.pattern.permute.xlu0 %v8516_v47 }
 0x340   : > { %v1250_v11 = vadd.f32 %v5531_v41, %v1249_v30 }
 0x342   : > { %v1251_v32 = vadd.f32 %v5534_v12, %v1250_v11 }
 0x344   : > { %v1252_v20 = vadd.f32 %v4175_v17, %v1251_v32 }
 0x346   : > { %v1253_v6 = vadd.f32 %v4177_v25, %v1252_v20 }
 0x347   : > { %v5537_v56 = vpop.eup %4178 }
 0x348   : > { %v1292_v39 = vmul.f32 %v5537_v56, %v5301_v36  ;;  %v1294_v33 = vmul.f32 %v5537_v56, %v5310_v35  ;;  %v4181_v34 = vpop.eup %4180  ;;  %v5546_v38 = vmul.f32 %v5537_v56, %v5465_v14  ;;  %v5550_v48 = vmul.f32 %v5537_v56, %v5473_v57 }
 0x349   : > { %v1254_v59 = vadd.f32 %v4181_v34, %v1253_v6  ;;  %v4183_v0 = vpop.eup %4182  ;;  %v5554_v36 = vmul.f32 %v5537_v56, %v5449_v50  ;;  %v5558_v35 = vmul.f32 %v5537_v56, %v5457_v8  ;;  %v5564_v14 = vmul.f32 %v5537_v56, %v5429_v61 }
 0x34a   : > { %v1342_v1 = vpack.c.bf16 %v1294_v33, %v1292_v39  ;;  %v1358_v45 = vpack.c.bf16 %v5550_v48, %v5546_v38  ;;  %v5568_v57 = vmul.f32 %v5537_v56, %v5441_v60  ;;  %v5574_v30 = vmul.f32 %v5537_v56, %v5407_v63  ;;  %v8530_v48 = vld [vmem:[#allocation42_spill] sm:$0xff] }
 0x34b   : > { %v1255_v29 = vadd.f32 %v4183_v0, %v1254_v59  ;;  %v1356_v50 = vpack.c.bf16 %v5558_v35, %v5554_v36  ;;  %v5578_v8 = vmul.f32 %v5537_v56, %v5419_v49  ;;  %v5582_v11 = vmul.f32 %v5537_v56, %v5385_v52  ;;  %v8531_v35 = vld [vmem:[#allocation43_spill] sm:$0xff] }
 0x34c   : > { %v1354_v60 = vpack.c.bf16 %v5568_v57, %v5564_v14  ;;  %v5588_v32 = vmul.f32 %v5537_v56, %v5397_v42  ;;  %v5592_v63 = vmul.f32 %v5537_v56, %v5363_v53  ;;  %v5598_v20 = vmul.f32 %v5537_v56, %v5375_v23  ;;  %v8532_v57 = vld [vmem:[#allocation35_spill] sm:$0xff] }
 0x34d   : > { %v1256_v37 = vrot.slane %v1255_v29, 4  ;;  %v1352_v49 = vpack.c.bf16 %v5578_v8, %v5574_v30  ;;  %v5602_v52 = vmul.f32 %v5537_v56, %v5338_v54  ;;  %v5606_v6 = vmul.f32 %v5537_v56, %v5351_v22  ;;  %v8533_v30 = vld [vmem:[#allocation29_spill] sm:$0xff] }
 0x34e   : > { %v1350_v53 = vpack.c.bf16 %v5588_v32, %v5582_v11  ;;  %v1348_v39 = vpack.c.bf16 %v5598_v20, %v5592_v63  ;;  %v1298_v8 = vmul.f32 %v5537_v56, %v8533_v30  ;;  %v8534_v11 = vld [vmem:[#allocation12_spill] sm:$0xff] }
 0x34f   : > { %v1257_v13 = vadd.f32 %v1256_v37, %v1255_v29  ;;  %v1346_v33 = vpack.c.bf16 %v5606_v6, %v5602_v52  ;;  %v8541_v52 = vld [vmem:[#allocation11_spill] sm:$0xff]  ;;  %v8542_v6 = vld [vmem:[#allocation10_spill] sm:$0xff] }
 0x351   : > { %v1258_v61 = vrot.slane %v1257_v13, 2 }
 0x353   : > { %v1259_v42 = vadd.f32 %v1258_v61, %v1257_v13  ;;  %v1288_v61 = vmul.f32 %v5537_v56, %v5285_v3 }
 0x355   : > { %v1260_v23 = vrot.slane %v1259_v42, 1 }
 0x357   : > { %v1261_v59 = vadd.f32 %v1260_v23, %v1259_v42  ;;  %v1290_v42 = vmul.f32 %v5537_v56, %v5292_v2 }
 0x359   : > { %4184 = vrcp.f32 %v1261_v59  ;;  %v1340_v3 = vpack.c.bf16 %v1290_v42, %v1288_v61  ;;  %v8517_v42 = vld [vmem:[#allocation34_spill] sm:$0xff] }
 0x366   : > { %v5614_v29 = vpop.eup %4184 }
 0x367   : > { %v1293_v54 = vmul.f32 %v5614_v29, %v5469_v15  ;;  %v1295_v22 = vmul.f32 %v5614_v29, %v5477_v58  ;;  %v1289_v37 = vmul.f32 %v5614_v29, %v5453_v19  ;;  %v1291_v13 = vmul.f32 %v5614_v29, %v5461_v31 }
 0x368   : > { %v1285_v15 = vmul.f32 %v5614_v29, %v5435_v27  ;;  %v1287_v58 = vmul.f32 %v5614_v29, %v5445_v16  ;;  %v1284_v19 = vmul.f32 %v5537_v56, %v5265_v4  ;;  %v1286_v31 = vmul.f32 %v5537_v56, %v5274_v24 }
 0x369   : > { %v1343_v23 = vpack.c.bf16 %v1295_v22, %v1293_v54  ;;  %v1341_v59 = vpack.c.bf16 %v1291_v13, %v1289_v37  ;;  %v1281_v2 = vmul.f32 %v5614_v29, %v5411_v7  ;;  %v5639_v54 = vmul.f32 %v5614_v29, %v4181_v34 }
 0x36a   : > { %v5642_v27 = vmul.f32 %v5614_v29, %v4183_v0  ;;  %v1283_v16 = vmul.f32 %v5614_v29, %v5423_v10  ;;  %v5647_v4 = vmul.f32 %v5614_v29, %v4175_v17  ;;  %v5650_v24 = vmul.f32 %v5614_v29, %v4177_v25 }
 0x36b   : > { %1360 = vmatprep.subr.bf16.mxu1 %v1343_v23  ;;  %v1339_v7 = vpack.c.bf16 %v1287_v58, %v1285_v15  ;;  %v1319_v0 = vmul.f32 %v5614_v29, %v5534_v12  ;;  %v1313_v10 = vmul.f32 %v5614_v29, %v5523_v62  ;;  %v1315_v25 = vmul.f32 %v5614_v29, %v5528_v28 }
 0x36c   : > { %1361 = vmatpush1.bf16.msra.mxu1 %v1342_v1  ;;  %v5654_v1 = vmul.f32 %v5614_v29, %v5531_v41  ;;  %v1359_v34 = vpack.c.bf16 %v5642_v27, %v5639_v54  ;;  %v1357_v17 = vpack.c.bf16 %v5650_v24, %v5647_v4  ;;  %v1309_v41 = vmul.f32 %v5614_v29, %v5513_v40  ;;  %v8520_v27 = vld [vmem:[#allocation48_spill] sm:$0xff]  ;;  %v8521_v4 = vld [vmem:[#allocation33_spill] sm:$0xff] }
 0x36d   : > { %1362 = vmatprep.subr.bf16.mxu1 %v1341_v59  ;;  %v1311_v22 = vmul.f32 %v5614_v29, %v5520_v43  ;;  %v1305_v12 = vmul.f32 %v5614_v29, %v5503_v26  ;;  %v1307_v62 = vmul.f32 %v5614_v29, %v5510_v55  ;;  %v5677_v13 = vmul.f32 %v5614_v29, %v5493_v18 }
 0x36e   : > { %v1355_v37 = vpack.c.bf16 %v1319_v0, %v5654_v1  ;;  %v1353_v28 = vpack.c.bf16 %v1315_v25, %v1313_v10  ;;  %v1303_v40 = vmul.f32 %v5614_v29, %v5498_v51  ;;  %v1338_v43 = vpack.c.bf16 %v1286_v31, %v1284_v19  ;;  %v8518_v19 = vld [vmem:[#allocation49_spill] sm:$0xff]  ;;  %v8523_v10 = vld [vmem:[#allocation39_spill] sm:$0xff] }
 0x36f   : > { %v1351_v61 = vpack.c.bf16 %v1311_v22, %v1309_v41  ;;  %v1280_v23 = vmul.f32 %v5537_v56, %v8517_v42  ;;  %v1282_v26 = vmul.f32 %v5537_v56, %v5254_v21  ;;  %v1349_v59 = vpack.c.bf16 %v1307_v62, %v1305_v12  ;;  %v8525_v22 = vld [vmem:[#allocation47_spill] sm:$0xff] }
 0x370   : > { %1363 = vmatpush1.bf16.msra.mxu1 %v1340_v3  ;;  %v1337_v15 = vpack.c.bf16 %v1283_v16, %v1281_v2  ;;  %v1277_v55 = vmul.f32 %v5614_v29, %v5389_v46  ;;  %v1279_v18 = vmul.f32 %v5614_v29, %v5401_v44  ;;  %v1347_v58 = vpack.c.bf16 %v1303_v40, %v5677_v13  ;;  %v8519_v3 = vld [vmem:[#allocation50_spill] sm:$0xff]  ;;  %v8526_v13 = vld [vmem:[#allocation36_spill] sm:$0xff] }
 0x371   : > { %1364 = vmatprep.subr.bf16.mxu1 %v1339_v7  ;;  %v1336_v51 = vpack.c.bf16 %v1282_v26, %v1280_v23  ;;  %v1276_v31 = vmul.f32 %v5537_v56, %v8518_v19  ;;  %v1278_v54 = vmul.f32 %v5537_v56, %v8519_v3  ;;  %v1273_v2 = vmul.f32 %v5614_v29, %v5367_v9  ;;  %v8522_v7 = vld [vmem:[#allocation38_spill] sm:$0xff]  ;;  %v8544_v3 = vld [vmem:[#allocation7_spill] sm:$0xff] }
 0x372   : > { %v1335_v21 = vpack.c.bf16 %v1279_v18, %v1277_v55  ;;  %v1275_v46 = vmul.f32 %v5614_v29, %v5379_v5  ;;  %v1272_v16 = vmul.f32 %v5537_v56, %v8520_v27  ;;  %v1274_v24 = vmul.f32 %v5537_v56, %v8521_v4  ;;  %v8524_v5 = vld [vmem:[#allocation32_spill] sm:$0xff]  ;;  %v8528_v26 = vld [vmem:[#allocation30_spill] sm:$0xff]  ;;  %v8529_v55 = vld [vmem:[#allocation31_spill] sm:$0xff] }
 0x373   : > { %v1334_v44 = vpack.c.bf16 %v1278_v54, %v1276_v31  ;;  %v1269_v0 = vmul.f32 %v5614_v29, %v8522_v7  ;;  %v1271_v25 = vmul.f32 %v5614_v29, %v8523_v10  ;;  %v1268_v41 = vmul.f32 %v5537_v56, %v8524_v5  ;;  %v8545_v54 = vld [vmem:[#allocation6_spill] sm:$0xff] }
 0x374   : > { %1365 = vmatpush1.bf16.msra.mxu1 %v1338_v43  ;;  %v1333_v1 = vpack.c.bf16 %v1275_v46, %v1273_v2  ;;  %v1332_v9 = vpack.c.bf16 %v1274_v24, %v1272_v16  ;;  %v1270_v12 = vmul.f32 %v5537_v56, %v8525_v22  ;;  %v1265_v40 = vmul.f32 %v5614_v29, %v8526_v13  ;;  %v8527_v43 = vld [vmem:[#allocation37_spill] sm:$0xff]  ;;  %v1441_v46 = vpop.trf.xlu0 }
 0x375   : > { %1366 = vmatprep.subr.bf16.mxu1 %v1337_v15  ;;  %v1331_v62 = vpack.c.bf16 %v1271_v25, %v1269_v0  ;;  %v1267_v42 = vmul.f32 %v5614_v29, %v8527_v43  ;;  %v1264_v15 = vmul.f32 %v5537_v56, %v8528_v26  ;;  %v1266_v18 = vmul.f32 %v5537_v56, %v8529_v55  ;;  %v1457_v0 = vpop.trf.xlu1  ;;  %v240_v43 = vld [vmem:[%s8266_s1 + $0x128] sm:$0xff] }
 0x376   : > { %v1330_v23 = vpack.c.bf16 %v1270_v12, %v1268_v41  ;;  %v1297_v36 = vmul.f32 %v5614_v29, %v8530_v48 }
 0x377   : > { %v1328_v19 = vpack.c.bf16 %v1266_v18, %v1264_v15 }
 0x378   : > { %1367 = vmatpush1.bf16.msra.mxu1 %v1336_v51  ;;  %v1329_v51 = vpack.c.bf16 %v1267_v42, %v1265_v40  ;;  %v239_v40 = vld [vmem:[%s8266_s1 + $0x120] sm:$0xff] }
 0x379   : > { %1368 = vmatprep.subr.bf16.mxu1 %v1335_v21  ;;  %v8546_v21 = vpack.c.bf16 %v8544_v3, %v8545_v54  ;;  %v1458_v10 = vpop.trf.xlu1 }
 0x37c   : > { %1369 = vmatpush1.bf16.msra.mxu1 %v1334_v44  ;;  %v1442_v44 = vpop.trf.xlu0 }
 0x37d   : > { %1370 = vmatprep.subr.bf16.mxu1 %v1333_v1  ;;  %v1459_v25 = vpop.trf.xlu1 }
 0x380   : > { %1371 = vmatpush1.bf16.msra.mxu1 %v1332_v9  ;;  %v1443_v27 = vpop.trf.xlu0 }
 0x381   : > { %1372 = vmatprep.subr.bf16.mxu1 %v1331_v62  ;;  %v1460_v9 = vpop.trf.xlu1 }
 0x384   : > { %1373 = vmatpush1.bf16.msra.mxu1 %v1330_v23  ;;  %v1444_v16 = vpop.trf.xlu0  ;;  %v269_v23 = vpack.c.bf16 %v240_v43, %v239_v40 }
 0x385   : > { %1374 = vmatprep.subr.bf16.mxu1 %v1329_v51  ;;  %v1461_v5 = vpop.trf.xlu1  ;;  %v241_v51 = vld [vmem:[%s8266_s1 + $0x130] sm:$0xff] }
 0x386   : > { %3935 = vmatmul.mubr.msk.bf16.gmra.mxu0 %vm275_vm1, %v269_v23 }
 0x387   : > { %577 = vmatprep.mubr.bf16.mxu0 %v8516_v47 }
 0x388   : > { %1375 = vmatpush1.bf16.msra.mxu1 %v1328_v19  ;;  %v1445_v4 = vpop.trf.xlu0  ;;  %v242_v19 = vld [vmem:[%s8266_s1 + $0x138] sm:$0xff] }
 0x389   : > { %1376 = vmatprep.subr.bf16.mxu1 %v1359_v34  ;;  %v559_v34 = vpop.f32.mrf.mxu0  ;;  %v1462_v41 = vpop.trf.xlu1 }
 0x38b   : > { %v561_v38 = vpop.f32.mrf.mxu0 }
 0x38c   : > { %1377 = vmatpush2.bf16.msra.mxu1 %v1358_v45  ;;  %v1299_v45 = vmul.f32 %v5614_v29, %v8531_v35  ;;  %v1446_v24 = vpop.trf.xlu0 }
 0x38d   : > { %1378 = vmatprep.subr.bf16.mxu1 %v1357_v17  ;;  %v563_v14 = vpop.f32.mrf.mxu0  ;;  %v1463_v22 = vpop.trf.xlu1 }
 0x38e   : > { %v1345_v32 = vpack.c.bf16 %v1299_v45, %v1297_v36  ;;  %v646_v2 = vpack.c.bf16 %v563_v14, %v559_v34 }
 0x38f   : > { %v565_v63 = vpop.f32.mrf.mxu0 }
 0x390   : > { %1379 = vmatpush2.bf16.msra.mxu1 %v1356_v50  ;;  %v1296_v50 = vmul.f32 %v5537_v56, %v8532_v57  ;;  %v1447_v1 = vpop.trf.xlu0 }
 0x391   : > { %1380 = vmatprep.subr.bf16.mxu1 %v1355_v37  ;;  %v647_v37 = vpack.c.bf16 %v565_v63, %v561_v38  ;;  %v1464_v12 = vpop.trf.xlu1  ;;  %v270_v38 = vpack.c.bf16 %v242_v19, %v241_v51 }
 0x392   : > { %v1344_v20 = vpack.c.bf16 %v1298_v8, %v1296_v50 }
 0x393   : > { %3936 = vmatmul.mubr.msk.bf16.gmra.mxu0 %vm275_vm1, %v270_v38 }
 0x394   : > { %1381 = vmatpush2.bf16.msra.mxu1 %v1354_v60  ;;  %v1420_v60 = vmul.f32 0.17677669, %v8534_v11  ;;  %v1448_v7 = vpop.trf.xlu0  ;;  %587 = vmatprep.mubr.bf16.mxu0 %v8516_v47 }
 0x395   : > { %1382 = vmatprep.subr.bf16.mxu1 %v1353_v28  ;;  %v8537_v28 = vld [vmem:[#allocation5_spill] sm:$0xff] }
 0x398   : > { %1383 = vmatpush2.bf16.msra.mxu1 %v1352_v49  ;;  %v8535_v49 = vld [vmem:[#allocation9_spill] sm:$0xff] }
 0x399   : > { %1384 = vmatprep.subr.bf16.mxu1 %v1351_v61  ;;  %v1414_v61 = vmul.f32 0.17677669, %v8537_v28 }
 0x39c   : > { %1385 = vmatpush2.bf16.msra.mxu1 %v1350_v53  ;;  %v1418_v53 = vmul.f32 0.17677669, %v8535_v49 }
 0x39d   : > { %1386 = vmatprep.subr.bf16.mxu1 %v1349_v59  ;;  %v8538_v59 = vld [vmem:[#allocation41_spill] sm:$0xff] }
 0x39e   : > { %v1424_v17 = vpack.c.bf16 %v1420_v60, %v1418_v53 }
 0x3a0   : > { %1387 = vmatpush2.bf16.msra.mxu1 %v1348_v39  ;;  %v8536_v39 = vld [vmem:[#allocation8_spill] sm:$0xff] }
 0x3a1   : > { %1388 = vmatprep.subr.bf16.mxu1 %v1347_v58  ;;  %v1416_v29 = vmul.f32 0.17677669, %v8536_v39  ;;  %v8539_v58 = vld [vmem:[#allocation40_spill] sm:$0xff] }
 0x3a2   : > { %v8540_v31 = vpack.c.bf16 %v8538_v59, %v8539_v58 }
 0x3a3   : > { %v1422_v56 = vpack.c.bf16 %v1416_v29, %v1414_v61 }
 0x3a4   : > { %1389 = vmatpush2.bf16.msra.mxu1 %v1346_v33  ;;  %v8543_v33 = vpack.c.bf16 %v8541_v52, %v8542_v6 }
 0x3a5   : > { %1390 = vmatprep.subr.bf16.mxu1 %v1345_v32 }
 0x3a8   : > { %1391 = vmatpush2.bf16.msra.mxu1 %v1344_v20 }
 0x3a9   : > { %1525 = vmatprep.subr.bf16.mxu1 %v1424_v17 }
 0x3ab   : > { %1393 = vmatmul.mubr.bf16.vlgmr.msra.gmra.mxu1 %v8540_v31 }
 0x3ac   : > { %1402 = vmatprep.mubr.bf16.mxu1 %v647_v37  ;;  %1526 = vmatpush1.bf16.msra.mxu1 %v8543_v33 }
 0x3ad   : > { %1527 = vmatprep.subr.bf16.mxu1 %v1422_v56 }
 0x3b0   : > { %1528 = vmatpush1.bf16.msra.mxu1 %v8546_v21 }
 0x3b3   : > { %1403 = vmatmul.mubr.bf16.gmra.mxu1 %v646_v2 }
 0x3b4   : > { %1545 = vmatprep.mubr.bf16.mxu1 %v8516_v47 }
 0x3bb   : > { %3957 = vmatmul.mubr.msk.bf16.vlgmr.msra.gmra.mxu1 %vm680_vm2, %v1441_v46 }
 0x3bc   : > { %1555 = vmatprep.mubr.bf16.mxu1 %v8516_v47 }
 0x3c3   : > { %3958 = vmatmul.mubr.msk.bf16.gmra.mxu1 %vm680_vm2, %v1442_v44 }
 0x3c4   : > { %1565 = vmatprep.mubr.bf16.mxu1 %v8516_v47 }
 0x3cb   : > { %3959 = vmatmul.mubr.msk.bf16.gmra.mxu1 %vm680_vm2, %v1443_v27 }
 0x3cc   : > { %1575 = vmatprep.mubr.bf16.mxu1 %v8516_v47 }
 0x3d3   : > { %3960 = vmatmul.mubr.msk.bf16.gmra.mxu1 %vm680_vm2, %v1444_v16 }
 0x3d4   : > { %1585 = vmatprep.mubr.bf16.mxu1 %v8516_v47 }
 0x3db   : > { %3961 = vmatmul.mubr.msk.bf16.gmra.mxu1 %vm680_vm2, %v1445_v4 }
 0x3dc   : > { %1595 = vmatprep.mubr.bf16.mxu1 %v8516_v47 }
 0x3e3   : > { %3962 = vmatmul.mubr.msk.bf16.gmra.mxu1 %vm680_vm2, %v1446_v24 }
 0x3e4   : > { %1605 = vmatprep.mubr.bf16.mxu1 %v8516_v47 }
 0x3eb   : > { %3963 = vmatmul.mubr.msk.bf16.gmra.mxu1 %vm680_vm2, %v1447_v1 }
 0x3ec   : > { %1615 = vmatprep.mubr.bf16.mxu1 %v8516_v47 }
 0x3f3   : > { %3964 = vmatmul.mubr.msk.bf16.gmra.mxu1 %vm680_vm2, %v1448_v7 }
 0x3f4   : > { %1625 = vmatprep.mubr.bf16.mxu1 %v8516_v47 }
 0x3fb   : > { %3965 = vmatmul.mubr.msk.bf16.gmra.mxu1 %vm680_vm2, %v1457_v0 }
 0x3fc   : > { %1635 = vmatprep.mubr.bf16.mxu1 %v8516_v47 }
 0x403   : > { %3966 = vmatmul.mubr.msk.bf16.gmra.mxu1 %vm680_vm2, %v1458_v10 }
 0x404   : > { %1645 = vmatprep.mubr.bf16.mxu1 %v8516_v47 }
 0x40b   : > { %3967 = vmatmul.mubr.msk.bf16.gmra.mxu1 %vm680_vm2, %v1459_v25 }
 0x40c   : > { %1655 = vmatprep.mubr.bf16.mxu1 %v8516_v47 }
 0x413   : > { %3968 = vmatmul.mubr.msk.bf16.gmra.mxu1 %vm680_vm2, %v1460_v9 }
 0x414   : > { %1665 = vmatprep.mubr.bf16.mxu1 %v8516_v47 }
 0x41b   : > { %3969 = vmatmul.mubr.msk.bf16.gmra.mxu1 %vm680_vm2, %v1461_v5 }
 0x41c   : > { %1675 = vmatprep.mubr.bf16.mxu1 %v8516_v47 }
 0x423   : > { %3970 = vmatmul.mubr.msk.bf16.gmra.mxu1 %vm680_vm2, %v1462_v41 }
 0x424   : > { %1685 = vmatprep.mubr.bf16.mxu1 %v8516_v47 }
 0x42b   : > { %3971 = vmatmul.mubr.msk.bf16.gmra.mxu1 %vm680_vm2, %v1463_v22 }
 0x42c   : > { %1695 = vmatprep.mubr.bf16.mxu1 %v8516_v47 }
 0x433   : > { %3972 = vmatmul.mubr.msk.bf16.gmra.mxu1 %vm680_vm2, %v1464_v12 }
 0x46b   : > { %v5792_v62 = vpop.f32.mrf.mxu1 }
 0x46c   : > { %8547 = vst [vmem:[#allocation44_spill] sm:$0xff] %v5792_v62 }
 0x46d   : > { %v5794_v13 = vpop.f32.mrf.mxu1 }
 0x46e   : > { %8548 = vst [vmem:[#allocation45_spill] sm:$0xff] %v5794_v13 }
 0x46f   : > { %v5802_v42 = vpop.f32.mrf.mxu1 }
 0x470   : > { %8549 = vst [vmem:[#allocation46_spill] sm:$0xff] %v5802_v42 }
 0x471   : > { %v5806_v15 = vpop.f32.mrf.mxu1 }
 0x472   : > { %8550 = vst [vmem:[#allocation34_spill] sm:$0xff] %v5806_v15 }
 0x473   : > { %v5810_v55 = vpop.f32.mrf.mxu1 }
 0x474   : > { %8551 = vst [vmem:[#allocation49_spill] sm:$0xff] %v5810_v55 }
 0x475   : > { %v5812_v18 = vpop.f32.mrf.mxu1 }
 0x476   : > { %8552 = vst [vmem:[#allocation50_spill] sm:$0xff] %v5812_v18 }
 0x477   : > { %v5820_v34 = vpop.f32.mrf.mxu1 }
 0x478   : > { %8553 = vst [vmem:[#allocation48_spill] sm:$0xff] %v5820_v34 }
 0x479   : > { %v5824_v36 = vpop.f32.mrf.mxu1 }
 0x47a   : > { %8554 = vst [vmem:[#allocation33_spill] sm:$0xff] %v5824_v36 }
 0x47b   : > { %v5828_v35 = vpop.f32.mrf.mxu1 }
 0x47d   : > { %v5830_v45 = vpop.f32.mrf.mxu1 }
 0x47f   : > { %v5832_v14 = vpop.f32.mrf.mxu1 }
 0x481   : > { %v5834_v57 = vpop.f32.mrf.mxu1 }
 0x483   : > { %v5836_v50 = vpop.f32.mrf.mxu1 }
 0x484   : > { %v1706_v23 = vmax.f32 %v5828_v35, %v5836_v50 }
 0x485   : > { %v5838_v30 = vpop.f32.mrf.mxu1 }
 0x487   : > { %v5840_v8 = vpop.f32.mrf.mxu1 }
 0x488   : > { %v1707_v51 = vmax.f32 %v5832_v14, %v5840_v8 }
 0x489   : > { %v5842_v11 = vpop.f32.mrf.mxu1 }
 0x48a   : > { %8555 = vst [vmem:[#allocation38_spill] sm:$0xff] %v5842_v11 }
 0x48b   : > { %v5844_v60 = vpop.f32.mrf.mxu1 }
 0x48c   : > { %v1708_v38 = vmax.f32 %v1706_v23, %v5844_v60 }
 0x48d   : > { %v5846_v32 = vpop.f32.mrf.mxu1 }
 0x48f   : > { %v5848_v49 = vpop.f32.mrf.mxu1 }
 0x490   : > { %v1709_v26 = vmax.f32 %v1707_v51, %v5848_v49 }
 0x491   : > { %v5850_v53 = vpop.f32.mrf.mxu1 }
 0x493   : > { %v5852_v63 = vpop.f32.mrf.mxu1 }
 0x494   : > { %v1710_v62 = vmax.f32 %v1708_v38, %v5852_v63 }
 0x495   : > { %v5854_v20 = vpop.f32.mrf.mxu1 }
 0x497   : > { %v5856_v39 = vpop.f32.mrf.mxu1 }
 0x498   : > { %v1711_v42 = vmax.f32 %v1709_v26, %v5856_v39 }
 0x499   : > { %v5858_v29 = vpop.f32.mrf.mxu1 }
 0x49b   : > { %v5860_v17 = vpop.f32.mrf.mxu1 }
 0x49c   : > { %8556 = vst [vmem:[#allocation39_spill] sm:$0xff] %v5860_v17  ;;  %v1712_v34 = vmax.f32 %v1710_v62, %v5860_v17 }
 0x49d   : > { %v5862_v37 = vpop.f32.mrf.mxu1 }
 0x49f   : > { %v5864_v28 = vpop.f32.mrf.mxu1 }
 0x4a0   : > { %v1713_v15 = vmax.f32 %v1711_v42, %v5864_v28 }
 0x4a1   : > { %v5866_v61 = vpop.f32.mrf.mxu1 }
 0x4a3   : > { %v5868_v56 = vpop.f32.mrf.mxu1 }
 0x4a4   : > { %8557 = vst [vmem:[#allocation32_spill] sm:$0xff] %v5868_v56  ;;  %v1714_v36 = vmax.f32 %v1712_v34, %v5868_v56 }
 0x4a5   : > { %v5870_v59 = vpop.f32.mrf.mxu1 }
 0x4a7   : > { %v5872_v58 = vpop.f32.mrf.mxu1 }
 0x4a8   : > { %v1715_v23 = vmax.f32 %v1713_v15, %v5872_v58 }
 0x4a9   : > { %v5874_v31 = vpop.f32.mrf.mxu1 }
 0x4aa   : > { %8558 = vst [vmem:[#allocation47_spill] sm:$0xff] %v5874_v31 }
 0x4ab   : > { %v5876_v52 = vpop.f32.mrf.mxu1 }
 0x4ac   : > { %8559 = vst [vmem:[#allocation36_spill] sm:$0xff] %v5876_v52  ;;  %v1716_v51 = vmax.f32 %v1714_v36, %v5876_v52 }
 0x4ad   : > { %v5878_v6 = vpop.f32.mrf.mxu1 }
 0x4af   : > { %v5880_v33 = vpop.f32.mrf.mxu1 }
 0x4b0   : > { %v1717_v38 = vmax.f32 %v1715_v23, %v5880_v33  ;;  %v1744_v23 = vmax.f32 %v5834_v57, %v5842_v11 }
 0x4b1   : > { %v5882_v3 = vpop.f32.mrf.mxu1 }
 0x4b3   : > { %v5884_v54 = vpop.f32.mrf.mxu1 }
 0x4b4   : > { %v1718_v26 = vmax.f32 %v1716_v51, %v5884_v54 }
 0x4b5   : > { %v5886_v21 = vpop.f32.mrf.mxu1 }
 0x4b7   : > { %v5888_v2 = vpop.f32.mrf.mxu1 }
 0x4b8   : > { %8560 = vst [vmem:[#allocation37_spill] sm:$0xff] %v5888_v2  ;;  %v1719_v62 = vmax.f32 %v1717_v38, %v5888_v2 }
 0x4b9   : > { %v5890_v46 = vpop.f32.mrf.mxu1 }
 0x4bb   : > { %v5892_v44 = vpop.f32.mrf.mxu1 }
 0x4bc   : > { %v1720_v42 = vmax.f32 %v1718_v26, %v5892_v44  ;;  %v1743_v26 = vmax.f32 %v5830_v45, %v5838_v30 }
 0x4bd   : > { %v5894_v27 = vpop.f32.mrf.mxu1 }
 0x4bf   : > { %v5896_v16 = vpop.f32.mrf.mxu1 }
 0x4c0   : > { %v1721_v34 = vmax.f32 %v1719_v62, %v5896_v16  ;;  %v1746_v62 = vmax.f32 %v1744_v23, %v5850_v53 }
 0x4c1   : > { %v5898_v4 = vpop.f32.mrf.mxu1 }
 0x4c2   : > { %v1748_v11 = vmax.f32 %v1746_v62, %v5858_v29 }
 0x4c3   : > { %v5900_v24 = vpop.f32.mrf.mxu1 }
 0x4c4   : > { %8561 = vst [vmem:[#allocation30_spill] sm:$0xff] %v5900_v24  ;;  %v1722_v15 = vmax.f32 %v1720_v42, %v5900_v24  ;;  %v1745_v24 = vmax.f32 %v1743_v26, %v5846_v32  ;;  %v1750_v23 = vmax.f32 %v1748_v11, %v5866_v61 }
 0x4c5   : > { %v5902_v1 = vpop.f32.mrf.mxu1 }
 0x4c6   : > { %v1752_v62 = vmax.f32 %v1750_v23, %v5874_v31 }
 0x4c7   : > { %v5904_v7 = vpop.f32.mrf.mxu1 }
 0x4c8   : > { %8562 = vst [vmem:[#allocation31_spill] sm:$0xff] %v5904_v7  ;;  %v1723_v36 = vmax.f32 %v1721_v34, %v5904_v7  ;;  %v1754_v11 = vmax.f32 %v1752_v62, %v5882_v3 }
 0x4c9   : > { %v5906_v0 = vpop.f32.mrf.mxu1 }
 0x4cb   : > { %v5908_v10 = vpop.f32.mrf.mxu1 }
 0x4cc   : > { %8563 = vst [vmem:[#allocation42_spill] sm:$0xff] %v5908_v10  ;;  %v1724_v51 = vmax.f32 %v1722_v15, %v5908_v10  ;;  %v1747_v10 = vmax.f32 %v1745_v24, %v5854_v20 }
 0x4cd   : > { %v5910_v25 = vpop.f32.mrf.mxu1 }
 0x4ce   : > { %v1749_v26 = vmax.f32 %v1747_v10, %v5862_v37  ;;  %v1756_v10 = vmax.f32 %v1754_v11, %v5890_v46 }
 0x4cf   : > { %v5912_v9 = vpop.f32.mrf.mxu1 }
 0x4d0   : > { %8564 = vst [vmem:[#allocation43_spill] sm:$0xff] %v5912_v9  ;;  %v1725_v38 = vmax.f32 %v1723_v36, %v5912_v9  ;;  %v1751_v24 = vmax.f32 %v1749_v26, %v5870_v59 }
 0x4d1   : > { %v5914_v5 = vpop.f32.mrf.mxu1 }
 0x4d3   : > { %v5916_v41 = vpop.f32.mrf.mxu1 }
 0x4d4   : > { %v1726_v42 = vmax.f32 %v1724_v51, %v5916_v41 }
 0x4d5   : > { %v5918_v22 = vpop.f32.mrf.mxu1 }
 0x4d7   : > { %v5920_v12 = vpop.f32.mrf.mxu1 }
 0x4d8   : > { %8565 = vst [vmem:[#allocation35_spill] sm:$0xff] %v5920_v12  ;;  %v1727_v34 = vmax.f32 %v1725_v38, %v5920_v12 }
 0x4d9   : > { %v5922_v40 = vpop.f32.mrf.mxu1 }
 0x4db   : > { %v5924_v43 = vpop.f32.mrf.mxu1 }
 0x4dc   : > { %v1728_v15 = vmax.f32 %v1726_v42, %v5924_v43 }
 0x4dd   : > { %v5930_v19 = vpop.f32.mrf.mxu1 }
 0x4df   : > { %v5934_v48 = vpop.f32.mrf.mxu1 }
 0x4e0   : > { %8566 = vst [vmem:[#allocation29_spill] sm:$0xff] %v5934_v48  ;;  %v1729_v36 = vmax.f32 %v1727_v34, %v5934_v48 }
 0x4e1   : > { %v5938_v55 = vpop.f32.mrf.mxu1 }
 0x4e3   : > { %v5942_v13 = vpop.f32.mrf.mxu1 }
 0x4e4   : > { %8567 = vst [vmem:[#allocation12_spill] sm:$0xff] %v5942_v13  ;;  %v1730_v51 = vmax.f32 %v1728_v15, %v5942_v13 }
 0x4e5   : > { %v5946_v18 = vpop.f32.mrf.mxu1 }
 0x4e7   : > { %v5950_v47 = vpop.f32.mrf.mxu1 }
 0x4e8   : > { %8568 = vst [vmem:[#allocation9_spill] sm:$0xff] %v5950_v47  ;;  %v1731_v38 = vmax.f32 %v1729_v36, %v5950_v47  ;;  %v1753_v47 = vmax.f32 %v1751_v24, %v5878_v6 }
 0x4e9   : > { %v5954_v17 = vpop.f32.mrf.mxu1 }
 0x4ea   : > { %v1755_v23 = vmax.f32 %v1753_v47, %v5886_v21 }
 0x4eb   : > { %v5958_v56 = vpop.f32.mrf.mxu1 }
 0x4ec   : > { %v1732_v42 = vmax.f32 %v1730_v51, %v5958_v56  ;;  %v1758_v51 = vmax.f32 %v1756_v10, %v5898_v4 }
 0x4ed   : > { %v5962_v52 = vpop.f32.mrf.mxu1 }
 0x4ee   : > { %v1760_v26 = vmax.f32 %v1758_v51, %v5906_v0 }
 0x4ef   : > { %v5968_v2 = vpop.f32.mrf.mxu1 }
 0x4f0   : > { %8569 = vst [vmem:[#allocation8_spill] sm:$0xff] %v5968_v2  ;;  %v1733_v34 = vmax.f32 %v1731_v38, %v5968_v2  ;;  %v1757_v2 = vmax.f32 %v1755_v23, %v5894_v27 }
 0x4f1   : > { %v5975_v7 = vpop.f32.mrf.mxu1 }
 0x4f2   : > { %v1759_v62 = vmax.f32 %v1757_v2, %v5902_v1 }
 0x4f3   : > { %v5981_v9 = vpop.f32.mrf.mxu1 }
 0x4f4   : > { %v1734_v15 = vmax.f32 %v1732_v42, %v5981_v9  ;;  %v1762_v42 = vmax.f32 %v1760_v26, %v5914_v5  ;;  %v1761_v24 = vmax.f32 %v1759_v62, %v5910_v25 }
 0x4f5   : > { %v5987_v12 = vpop.f32.mrf.mxu1 }
 0x4f6   : > { %v1764_v11 = vmax.f32 %v1762_v42, %v5922_v40  ;;  %v1763_v47 = vmax.f32 %v1761_v24, %v5918_v22 }
 0x4f7   : > { %v5993_v48 = vpop.f32.mrf.mxu1 }
 0x4f8   : > { %v1735_v36 = vmax.f32 %v1733_v34, %v5993_v48  ;;  %v1765_v23 = vmax.f32 %v1763_v47, %v5930_v19 }
 0x4fa   : > { %v1736_v13 = vmax.f32 %v1734_v15, %v1735_v36  ;;  %v1766_v36 = vmax.f32 %v1764_v11, %v5938_v55  ;;  %v1767_v2 = vmax.f32 %v1765_v23, %v5946_v18 }
 0x4fc   : > { %v1737_v38 = vrot.slane %v1736_v13, 4  ;;  %v1768_v51 = vmax.f32 %v1766_v36, %v5954_v17  ;;  %v1769_v62 = vmax.f32 %v1767_v2, %v5962_v52 }
 0x4fe   : > { %v1738_v31 = vmax.f32 %v1736_v13, %v1737_v38  ;;  %v6013_v13 = vpop.f32.mrf.mxu1  ;;  %v1770_v38 = vmax.f32 %v1768_v51, %v5975_v7  ;;  %v1771_v42 = vmax.f32 %v1769_v62, %v5987_v12 }
 0x500   : > { %v1739_v34 = vrot.slane %v1738_v31, 2 }
 0x502   : > { %v1740_v15 = vmax.f32 %v1738_v31, %v1739_v34  ;;  %v1772_v31 = vmax.f32 %v1770_v38, %v6013_v13 }
 0x504   : > { %v1741_v10 = vrot.slane %v1740_v15, 1  ;;  %v1773_v47 = vmax.f32 %v1771_v42, %v1772_v31 }
 0x506   : > { %v6017_v26 = vmax.f32 %v1740_v15, %v1741_v10  ;;  %v1774_v2 = vrot.slane %v1773_v47, 4 }
 0x508   : > { %v1780_v34 = vsub.f32 %v5828_v35, %v6017_v26  ;;  %v1782_v24 = vsub.f32 %v5832_v14, %v6017_v26  ;;  %v1784_v11 = vsub.f32 %v5836_v50, %v6017_v26  ;;  %v1786_v15 = vsub.f32 %v5840_v8, %v6017_v26 }
 0x509   : > { %v1788_v23 = vsub.f32 %v5844_v60, %v6017_v26  ;;  %v1790_v35 = vsub.f32 %v5848_v49, %v6017_v26  ;;  %v1792_v50 = vsub.f32 %v5852_v63, %v6017_v26  ;;  %v1775_v62 = vmax.f32 %v1773_v47, %v1774_v2  ;;  %v8570_v60 = vld [vmem:[#allocation39_spill] sm:$0xff]  ;;  %v8571_v63 = vld [vmem:[#allocation32_spill] sm:$0xff] }
 0x50a   : > { %v1844_v36 = vmul.f32 1.442695, %v1780_v34  ;;  %v1848_v10 = vmul.f32 1.442695, %v1782_v24  ;;  %v1852_v51 = vmul.f32 1.442695, %v1784_v11  ;;  %v1794_v8 = vsub.f32 %v5856_v39, %v6017_v26 }
 0x50b   : > { %v1856_v14 = vmul.f32 1.442695, %v1786_v15  ;;  %v1860_v38 = vmul.f32 1.442695, %v1788_v23  ;;  %v1864_v31 = vmul.f32 1.442695, %v1790_v35  ;;  %v1796_v42 = vsub.f32 %v8570_v60, %v6017_v26 }
 0x50c   : > { %4186 = vpow2.f32 %v1844_v36  ;;  %v1868_v34 = vmul.f32 1.442695, %v1792_v50  ;;  %v1776_v24 = vrot.slane %v1775_v62, 2  ;;  %v1798_v49 = vsub.f32 %v5864_v28, %v6017_v26  ;;  %v8574_v2 = vld [vmem:[#allocation36_spill] sm:$0xff] }
 0x50d   : > { %4188 = vpow2.f32 %v1848_v10  ;;  %v1872_v11 = vmul.f32 1.442695, %v1794_v8  ;;  %v1800_v15 = vsub.f32 %v8571_v63, %v6017_v26  ;;  %v1876_v47 = vmul.f32 1.442695, %v1796_v42 }
 0x50e   : > { %4190 = vpow2.f32 %v1852_v51  ;;  %v1777_v36 = vmax.f32 %v1775_v62, %v1776_v24  ;;  %v1802_v10 = vsub.f32 %v5872_v58, %v6017_v26  ;;  %v1880_v23 = vmul.f32 1.442695, %v1798_v49 }
 0x50f   : > { %4192 = vpow2.f32 %v1856_v14  ;;  %v1804_v28 = vsub.f32 %v8574_v2, %v6017_v26  ;;  %v1884_v35 = vmul.f32 1.442695, %v1800_v15  ;;  %v1806_v62 = vsub.f32 %v5880_v33, %v6017_v26 }
 0x510   : > { %4194 = vpow2.f32 %v1860_v38  ;;  %v1778_v38 = vrot.slane %v1777_v36, 1  ;;  %v1888_v58 = vmul.f32 1.442695, %v1802_v10  ;;  %v1808_v60 = vsub.f32 %v5884_v54, %v6017_v26 }
 0x511   : > { %4196 = vpow2.f32 %v1864_v31  ;;  %v1892_v42 = vmul.f32 1.442695, %v1804_v28  ;;  %v1896_v63 = vmul.f32 1.442695, %v1806_v62  ;;  %v1812_v54 = vsub.f32 %v5892_v44, %v6017_v26 }
 0x512   : > { %4198 = vpow2.f32 %v1868_v34  ;;  %v6066_v49 = vmax.f32 %v1777_v36, %v1778_v38  ;;  %v1814_v10 = vsub.f32 %v5896_v16, %v6017_v26  ;;  %v8578_v16 = vld [vmem:[#allocation30_spill] sm:$0xff] }
 0x513   : > { %4200 = vpow2.f32 %v1872_v11  ;;  %v8577_v11 = vld [vmem:[#allocation37_spill] sm:$0xff]  ;;  %v1816_v62 = vsub.f32 %v8578_v16, %v6017_v26 }
 0x514   : > { %4202 = vpow2.f32 %v1876_v47  ;;  %v1810_v33 = vsub.f32 %v8577_v11, %v6017_v26  ;;  %v1781_v28 = vsub.f32 %v5830_v45, %v6066_v49  ;;  %v1783_v38 = vsub.f32 %v5834_v57, %v6066_v49 }
 0x515   : > { %4204 = vpow2.f32 %v1880_v23  ;;  %v1900_v23 = vmul.f32 1.442695, %v1808_v60  ;;  %v1785_v45 = vsub.f32 %v5838_v30, %v6066_v49  ;;  %v1916_v30 = vmul.f32 1.442695, %v1816_v62 }
 0x516   : > { %4206 = vpow2.f32 %v1884_v35  ;;  %v1904_v35 = vmul.f32 1.442695, %v1810_v33  ;;  %v1846_v33 = vmul.f32 1.442695, %v1781_v28  ;;  %v1789_v28 = vsub.f32 %v5846_v32, %v6066_v49 }
 0x517   : > { %4208 = vpow2.f32 %v1888_v58  ;;  %v1908_v58 = vmul.f32 1.442695, %v1812_v54  ;;  %v1850_v54 = vmul.f32 1.442695, %v1783_v38  ;;  %v1824_v32 = vsub.f32 %v5916_v41, %v6017_v26 }
 0x518   : > { %4210 = vpow2.f32 %v1892_v42  ;;  %v1795_v41 = vsub.f32 %v5858_v29, %v6066_v49  ;;  %v8584_v29 = vld [vmem:[#allocation29_spill] sm:$0xff] }
 0x519   : > { %v6044_v39 = vpop.eup %4186  ;;  %4212 = vpow2.f32 %v1896_v63  ;;  %v8580_v63 = vld [vmem:[#allocation38_spill] sm:$0xff] }
 0x51a   : > { %8572 = vst [vmem:[#allocation5_spill] sm:$0xff] %v6044_v39  ;;  %v6048_v51 = vpop.eup %4188  ;;  %4214 = vpow2.f32 %v1900_v23 }
 0x51b   : > { %8573 = vst [vmem:[#allocation41_spill] sm:$0xff] %v6048_v51  ;;  %v1972_v14 = vadd.f32 %v6048_v51, %v6044_v39  ;;  %v6054_v50 = vpop.eup %4190  ;;  %4216 = vpow2.f32 %v1904_v35  ;;  %v1854_v35 = vmul.f32 1.442695, %v1785_v45  ;;  %v1842_v39 = vsub.f32 %v5993_v48, %v6017_v26 }
 0x51c   : > { %8575 = vst [vmem:[#allocation40_spill] sm:$0xff] %v6054_v50  ;;  %v6059_v31 = vpop.eup %4192  ;;  %4218 = vpow2.f32 %v1908_v58  ;;  %v1791_v58 = vsub.f32 %v5850_v53, %v6066_v49  ;;  %v8583_v53 = vld [vmem:[#allocation35_spill] sm:$0xff] }
 0x51d   : > { %v1973_v8 = vadd.f32 %v6054_v50, %v1972_v14  ;;  %8576 = vst [vmem:[#allocation11_spill] sm:$0xff] %v6059_v31  ;;  %v6064_v24 = vpop.eup %4194 }
 0x51e   : > { %v6071_v47 = vpop.eup %4196 }
 0x51f   : > { %v1974_v34 = vadd.f32 %v6059_v31, %v1973_v8  ;;  %v6078_v2 = vpop.eup %4198  ;;  %v1912_v8 = vmul.f32 1.442695, %v1814_v10  ;;  %v8581_v10 = vld [vmem:[#allocation42_spill] sm:$0xff] }
 0x520   : > { %v6085_v44 = vpop.eup %4200 }
 0x521   : > { %v1975_v15 = vadd.f32 %v6064_v24, %v1974_v34  ;;  %v6092_v42 = vpop.eup %4202  ;;  %v8579_v34 = vld [vmem:[#allocation31_spill] sm:$0xff]  ;;  %4220 = vpow2.f32 %v1912_v8 }
 0x522   : > { %v1818_v11 = vsub.f32 %v8579_v34, %v6017_v26  ;;  %v6099_v23 = vpop.eup %4204  ;;  %4222 = vpow2.f32 %v1846_v33  ;;  %v1862_v33 = vmul.f32 1.442695, %v1789_v28  ;;  %v1932_v28 = vmul.f32 1.442695, %v1824_v32 }
 0x523   : > { %v1976_v36 = vadd.f32 %v6071_v47, %v1975_v15  ;;  %v1787_v15 = vsub.f32 %v8580_v63, %v6066_v49  ;;  %v6106_v16 = vpop.eup %4206  ;;  %4224 = vpow2.f32 %v1850_v54  ;;  %v1826_v54 = vsub.f32 %v8583_v53, %v6017_v26 }
 0x524   : > { %v1920_v38 = vmul.f32 1.442695, %v1818_v11  ;;  %v6113_v8 = vpop.eup %4208  ;;  %4226 = vpow2.f32 %v1916_v30  ;;  %v1793_v11 = vsub.f32 %v5854_v20, %v6066_v49  ;;  %v1828_v20 = vsub.f32 %v5924_v43, %v6017_v26 }
 0x525   : > { %v1977_v14 = vadd.f32 %v6078_v2, %v1976_v36  ;;  %v1820_v36 = vsub.f32 %v8581_v10, %v6017_v26  ;;  %v1858_v62 = vmul.f32 1.442695, %v1787_v15  ;;  %4228 = vpow2.f32 %v1854_v35  ;;  %v6120_v10 = vpop.eup %4210 }
 0x526   : > { %4230 = vpow2.f32 %v1920_v38  ;;  %v6127_v30 = vpop.eup %4212  ;;  %v1799_v43 = vsub.f32 %v5866_v61, %v6066_v49  ;;  %v1874_v32 = vmul.f32 1.442695, %v1795_v41  ;;  %v1940_v53 = vmul.f32 1.442695, %v1828_v20 }
 0x527   : > { %v1978_v60 = vadd.f32 %v6085_v44, %v1977_v14  ;;  %v1924_v45 = vmul.f32 1.442695, %v1820_v36  ;;  %4232 = vpow2.f32 %v1858_v62  ;;  %v1866_v36 = vmul.f32 1.442695, %v1791_v58  ;;  %v6134_v38 = vpop.eup %4214 }
 0x528   : > { %v1936_v58 = vmul.f32 1.442695, %v1826_v54 }
 0x529   : > { %v1979_v57 = vadd.f32 %v6092_v42, %v1978_v60  ;;  %v8582_v60 = vld [vmem:[#allocation43_spill] sm:$0xff]  ;;  %4234 = vpow2.f32 %v1924_v45  ;;  %v244_v45 = vld [vmem:[%s8266_s1 + $0x148] sm:$0xff] }
 0x52a   : > { %v1822_v34 = vsub.f32 %v8582_v60, %v6017_v26  ;;  %v1797_v60 = vsub.f32 %v5862_v37, %v6066_v49  ;;  %4236 = vpow2.f32 %v1862_v33  ;;  %v243_v37 = vld [vmem:[%s8266_s1 + $0x140] sm:$0xff] }
 0x52b   : > { %v1980_v14 = vadd.f32 %v6099_v23, %v1979_v57  ;;  %v271_v54 = vpack.c.bf16 %v244_v45, %v243_v37  ;;  %v8591_v37 = vmov 0  }
 0x52c   : > { %v1928_v15 = vmul.f32 1.442695, %v1822_v34  ;;  %v1870_v34 = vmul.f32 1.442695, %v1793_v11  ;;  %v8585_v11 = vld [vmem:[#allocation12_spill] sm:$0xff] }
 0x52d   : > { %v1981_v63 = vadd.f32 %v6106_v16, %v1980_v14  ;;  %v1832_v33 = vsub.f32 %v8585_v11, %v6017_v26  ;;  %v1878_v41 = vmul.f32 1.442695, %v1797_v60  ;;  %v1836_v11 = vsub.f32 %v5958_v56, %v6017_v26  ;;  %3937 = vmatmul.mubr.msk.bf16.gmra.mxu0 %vm275_vm1, %v271_v54 }
 0x52e   : > { %4238 = vpow2.f32 %v1928_v15  ;;  %v1882_v60 = vmul.f32 1.442695, %v1799_v43  ;;  %597 = vmatprep.mubr.bf16.mxu0 %v8591_v37 }
 0x52f   : > { %v1982_v57 = vadd.f32 %v6113_v8, %v1981_v63  ;;  %v1830_v63 = vsub.f32 %v8584_v29, %v6017_v26  ;;  %4240 = vpow2.f32 %v1866_v36 }
 0x530   : > { %4242 = vpow2.f32 %v1932_v28 }
 0x531   : > { %v1983_v14 = vadd.f32 %v6120_v10, %v1982_v57  ;;  %v6147_v57 = vpop.eup %4216  ;;  %4244 = vpow2.f32 %v1870_v34  ;;  %v1944_v20 = vmul.f32 1.442695, %v1830_v63  ;;  %v1948_v63 = vmul.f32 1.442695, %v1832_v33 }
 0x532   : > { %v6151_v15 = vpop.eup %4218  ;;  %4246 = vpow2.f32 %v1936_v58  ;;  %v1805_v58 = vsub.f32 %v5878_v6, %v6066_v49  ;;  %v1807_v33 = vsub.f32 %v5882_v3, %v6066_v49  ;;  %v1956_v3 = vmul.f32 1.442695, %v1836_v11 }
 0x533   : > { %v1984_v35 = vadd.f32 %v6127_v30, %v1983_v14  ;;  %8586 = vst [vmem:[#allocation10_spill] sm:$0xff] %v6151_v15  ;;  %v1801_v14 = vsub.f32 %v5870_v59, %v6066_v49  ;;  %v6156_v36 = vpop.eup %4220  ;;  %v8590_v59 = vld [vmem:[#allocation47_spill] sm:$0xff]  ;;  %4248 = vpow2.f32 %v1874_v32  ;;  %v1811_v11 = vsub.f32 %v5890_v46, %v6066_v49 }
 0x534   : > { %8587 = vst [vmem:[#allocation7_spill] sm:$0xff] %v6156_v36  ;;  %v6163_v28 = vpop.eup %4222  ;;  %v1803_v34 = vsub.f32 %v8590_v59, %v6066_v49  ;;  %4250 = vpow2.f32 %v1940_v53 }
 0x535   : > { %v1985_v62 = vadd.f32 %v6134_v38, %v1984_v35  ;;  %v8588_v35 = vld [vmem:[#allocation9_spill] sm:$0xff]  ;;  %8589 = vst [vmem:[#allocation6_spill] sm:$0xff] %v6163_v28  ;;  %v6169_v45 = vpop.eup %4224  ;;  %4252 = vpow2.f32 %v1878_v41  ;;  %v1886_v59 = vmul.f32 1.442695, %v1801_v14 }
 0x536   : > { %v1834_v29 = vsub.f32 %v8588_v35, %v6017_v26  ;;  %8592 = vst [vmem:[#allocation39_spill] sm:$0xff] %v6169_v45  ;;  %v8593_v35 = vld [vmem:[#allocation8_spill] sm:$0xff]  ;;  %v6175_v54 = vpop.eup %4226  ;;  %v2009_v43 = vadd.f32 %v6169_v45, %v6163_v28  ;;  %4254 = vpow2.f32 %v1944_v20  ;;  %v1890_v41 = vmul.f32 1.442695, %v1803_v34 }
 0x537   : > { %v1986_v61 = vadd.f32 %v6147_v57, %v1985_v62  ;;  %v1838_v56 = vsub.f32 %v8593_v35, %v6017_v26  ;;  %v6180_v32 = vpop.eup %4228  ;;  %4256 = vpow2.f32 %v1882_v60  ;;  %v1809_v20 = vsub.f32 %v5886_v21, %v6066_v49 }
 0x538   : > { %v1952_v53 = vmul.f32 1.442695, %v1834_v29  ;;  %v6186_v6 = vpop.eup %4230  ;;  %v2010_v14 = vadd.f32 %v6180_v32, %v2009_v43  ;;  %4258 = vpow2.f32 %v1948_v63  ;;  %v1894_v43 = vmul.f32 1.442695, %v1805_v58 }
 0x539   : > { %v1987_v62 = vadd.f32 %v6151_v15, %v1986_v61  ;;  %v1840_v15 = vsub.f32 %v5981_v9, %v6017_v26  ;;  %v246_v9 = vld [vmem:[%s8266_s1 + $0x158] sm:$0xff]  ;;  %v6196_v29 = vpop.eup %4232  ;;  %4260 = vpow2.f32 %v1886_v59  ;;  %v1960_v63 = vmul.f32 1.442695, %v1838_v56 }
 0x53a   : > { %8594 = vst [vmem:[#allocation32_spill] sm:$0xff] %v6196_v29  ;;  %v6200_v60 = vpop.eup %4234  ;;  %4262 = vpow2.f32 %v1952_v53  ;;  %v1898_v58 = vmul.f32 1.442695, %v1807_v33  ;;  %v1813_v26 = vsub.f32 %v5894_v27, %v6066_v49  ;;  %v1902_v53 = vmul.f32 1.442695, %v1809_v20  ;;  %v247_v20 = vld [vmem:[%s8266_s1 + $0x160] sm:$0xff] }
 0x53b   : > { %v1988_v61 = vadd.f32 %v6156_v36, %v1987_v62  ;;  %v245_v62 = vld [vmem:[%s8266_s1 + $0x150] sm:$0xff]  ;;  %v2011_v36 = vadd.f32 %v6196_v29, %v2010_v14  ;;  %v6204_v51 = vpop.eup %4236  ;;  %4264 = vpow2.f32 %v1890_v41  ;;  %v1964_v48 = vmul.f32 1.442695, %v1840_v15 }
 0x53c   : > { %v6211_v21 = vpop.eup %4238  ;;  %4266 = vpow2.f32 %v1956_v3  ;;  %v1906_v27 = vmul.f32 1.442695, %v1811_v11  ;;  %v1910_v11 = vmul.f32 1.442695, %v1813_v26  ;;  %v1827_v45 = vsub.f32 %v5922_v40, %v6066_v49 }
 0x53d   : > { %v1989_v35 = vadd.f32 %v6175_v54, %v1988_v61  ;;  %v272_v61 = vpack.c.bf16 %v246_v9, %v245_v62  ;;  %v2012_v59 = vadd.f32 %v6204_v51, %v2011_v36  ;;  %v6216_v14 = vpop.eup %4240  ;;  %4268 = vpow2.f32 %v1894_v43 }
 0x53e   : > { %v6220_v46 = vpop.eup %4242  ;;  %4270 = vpow2.f32 %v1960_v63  ;;  %v1968_v36 = vmul.f32 1.442695, %v1842_v39  ;;  %v1815_v62 = vsub.f32 %v5898_v4, %v6066_v49  ;;  %v1817_v4 = vsub.f32 %v5902_v1, %v6066_v49 }
 0x53f   : > { %v1990_v34 = vadd.f32 %v6186_v6, %v1989_v35  ;;  %3938 = vmatmul.mubr.msk.bf16.gmra.mxu0 %vm275_vm1, %v272_v61  ;;  %v2013_v41 = vadd.f32 %v6216_v14, %v2012_v59  ;;  %v6224_v33 = vpop.eup %4244  ;;  %4272 = vpow2.f32 %v1898_v58  ;;  %v248_v61 = vld [vmem:[%s8266_s1 + $0x168] sm:$0xff]  ;;  %v1819_v59 = vsub.f32 %v5906_v0, %v6066_v49 }
 0x540   : > { %607 = vmatprep.mubr.bf16.mxu0 %v8591_v37  ;;  %v6228_v9 = vpop.eup %4246  ;;  %4274 = vpow2.f32 %v1964_v48  ;;  %v1829_v40 = vsub.f32 %v5930_v19, %v6066_v49  ;;  %v1938_v19 = vmul.f32 1.442695, %v1827_v45 }
 0x541   : > { %v1991_v35 = vadd.f32 %v6200_v60, %v1990_v34  ;;  %v2014_v3 = vadd.f32 %v6224_v33, %v2013_v41  ;;  %v6238_v39 = vpop.eup %4248  ;;  %v273_v34 = vpack.c.bf16 %v248_v61, %v247_v20  ;;  %4276 = vpow2.f32 %v1902_v53 }
 0x542   : > { %v6242_v43 = vpop.eup %4250  ;;  %4278 = vpow2.f32 %v1968_v36  ;;  %v1821_v53 = vsub.f32 %v5910_v25, %v6066_v49  ;;  %v1922_v25 = vmul.f32 1.442695, %v1819_v59 }
 0x543   : > { %v1992_v56 = vadd.f32 %v6211_v21, %v1991_v35  ;;  %v2015_v35 = vadd.f32 %v6238_v39, %v2014_v3  ;;  %v6246_v58 = vpop.eup %4252  ;;  %4280 = vpow2.f32 %v1906_v27  ;;  %v6268_v27 = vpop.f32.mrf.mxu0 }
 0x544   : > { %v6251_v48 = vpop.eup %4254  ;;  %4282 = vpow2.f32 %v1910_v11  ;;  %8595 = vst [vmem:[#allocation36_spill] sm:$0xff] %v6268_v27  ;;  %v250_v11 = vld [vmem:[%s8266_s1 + $0x178] sm:$0xff] }
 0x545   : > { %v1993_v15 = vadd.f32 %v6220_v46, %v1992_v56  ;;  %v1914_v56 = vmul.f32 1.442695, %v1815_v62  ;;  %v2016_v41 = vadd.f32 %v6246_v58, %v2015_v35  ;;  %v6256_v26 = vpop.eup %4256  ;;  %v1823_v62 = vsub.f32 %v5914_v5, %v6066_v49 }
 0x546   : > { %v6260_v36 = vpop.eup %4258  ;;  %v1825_v5 = vsub.f32 %v5918_v22, %v6066_v49 }
 0x547   : > { %v1994_v63 = vadd.f32 %v6228_v9, %v1993_v15  ;;  %3939 = vmatmul.mubr.msk.bf16.gmra.mxu0 %vm275_vm1, %v273_v34  ;;  %v1918_v15 = vmul.f32 1.442695, %v1817_v4  ;;  %v2017_v3 = vadd.f32 %v6256_v26, %v2016_v41  ;;  %v6264_v20 = vpop.eup %4260  ;;  %4284 = vpow2.f32 %v1914_v56  ;;  %v249_v4 = vld [vmem:[%s8266_s1 + $0x170] sm:$0xff] }
 0x548   : > { %617 = vmatprep.mubr.bf16.mxu0 %v8591_v37  ;;  %v6270_v61 = vpop.eup %4262  ;;  %v274_v41 = vpack.c.bf16 %v250_v11, %v249_v4  ;;  %v1926_v56 = vmul.f32 1.442695, %v1821_v53  ;;  %v1930_v28 = vmul.f32 1.442695, %v1823_v62  ;;  %v1934_v62 = vmul.f32 1.442695, %v1825_v5 }
 0x549   : > { %v1995_v1 = vadd.f32 %v6242_v43, %v1994_v63  ;;  %v2018_v63 = vadd.f32 %v6264_v20, %v2017_v3  ;;  %v6280_v35 = vpop.eup %4264  ;;  %4286 = vpow2.f32 %v1918_v15 }
 0x54a   : > { %4288 = vpow2.f32 %v1922_v25 }
 0x54b   : > { %v1996_v0 = vadd.f32 %v6251_v48, %v1995_v1  ;;  %v571_v1 = vpop.f32.mrf.mxu0  ;;  %v2019_v3 = vadd.f32 %v6280_v35, %v2018_v63  ;;  %4290 = vpow2.f32 %v1926_v56  ;;  %v1833_v56 = vsub.f32 %v5946_v18, %v6066_v49 }
 0x54c   : > { %4292 = vpow2.f32 %v1930_v28  ;;  %v1835_v28 = vsub.f32 %v5954_v17, %v6066_v49  ;;  %v1837_v18 = vsub.f32 %v5962_v52, %v6066_v49  ;;  %v1839_v17 = vsub.f32 %v5975_v7, %v6066_v49 }
 0x54d   : > { %v1997_v34 = vadd.f32 %v6260_v36, %v1996_v0  ;;  %v6284_v0 = vpop.eup %4266  ;;  %v6293_v31 = vpop.f32.mrf.mxu0  ;;  %4294 = vpow2.f32 %v1934_v62  ;;  %v1841_v52 = vsub.f32 %v5987_v12, %v6066_v49  ;;  %v1843_v7 = vsub.f32 %v6013_v13, %v6066_v49 }
 0x54e   : > { %v6288_v37 = vpop.eup %4268  ;;  %8596 = vst [vmem:[#allocation37_spill] sm:$0xff] %v6293_v31  ;;  %4296 = vpow2.f32 %v1938_v19 }
 0x54f   : > { %v1998_v59 = vadd.f32 %v6270_v61, %v1997_v34  ;;  %3940 = vmatmul.mubr.msk.bf16.gmra.mxu0 %vm275_vm1, %v274_v41  ;;  %v6295_v22 = vpop.eup %4270  ;;  %v2020_v15 = vadd.f32 %v6288_v37, %v2019_v3  ;;  %v575_v63 = vpop.f32.mrf.mxu0  ;;  %v1831_v3 = vsub.f32 %v5938_v55, %v6066_v49  ;;  %v1966_v12 = vmul.f32 1.442695, %v1841_v52 }
 0x550   : > { %v6301_v34 = vpop.eup %4272  ;;  %v1430_v25 = vpack.c.bf16 %v575_v63, %v571_v1 }
 0x551   : > { %v1999_v4 = vadd.f32 %v6284_v0, %v1998_v59  ;;  %v6305_v11 = vpop.eup %4274  ;;  %v2021_v59 = vadd.f32 %v6301_v34, %v2020_v15  ;;  %v1946_v63 = vmul.f32 1.442695, %v1831_v3  ;;  %v1954_v3 = vmul.f32 1.442695, %v1835_v28 }
 0x552   : > { %v6309_v50 = vpop.eup %4276  ;;  %2176 = vmatprep.mubr.bf16.mxu0 %v1430_v25 }
 0x553   : > { %v2000_v41 = vadd.f32 %v6295_v22, %v1999_v4  ;;  %v6313_v53 = vpop.eup %4278  ;;  %v2022_v5 = vadd.f32 %v6309_v50, %v2021_v59  ;;  %v1942_v4 = vmul.f32 1.442695, %v1829_v40  ;;  %v1950_v40 = vmul.f32 1.442695, %v1833_v56 }
 0x554   : > { %v6317_v31 = vpop.eup %4280  ;;  %v1958_v56 = vmul.f32 1.442695, %v1837_v18 }
 0x555   : > { %v2001_v27 = vadd.f32 %v6305_v11, %v2000_v41  ;;  %v2023_v55 = vadd.f32 %v6317_v31, %v2022_v5  ;;  %v6323_v15 = vpop.eup %4282  ;;  %4298 = vpow2.f32 %v1942_v4 }
 0x556   : > { %8597 = vst [vmem:[#allocation30_spill] sm:$0xff] %v6323_v15  ;;  %v6328_v59 = vpop.eup %4284  ;;  %4300 = vpow2.f32 %v1946_v63 }
 0x557   : > { %v2002_v1 = vadd.f32 %v6313_v53, %v2001_v27  ;;  %v2024_v41 = vadd.f32 %v6323_v15, %v2023_v55  ;;  %8598 = vst [vmem:[#allocation31_spill] sm:$0xff] %v6328_v59  ;;  %v6333_v25 = vpop.eup %4286  ;;  %4302 = vpow2.f32 %v1950_v40  ;;  %v1970_v40 = vmul.f32 1.442695, %v1843_v7 }
 0x558   : > { %v6338_v55 = vpop.eup %4288  ;;  %4304 = vpow2.f32 %v1954_v3 }
 0x559   : > { %v2003_v45 = vrot.slane %v2002_v1, 4  ;;  %v2025_v62 = vadd.f32 %v6328_v59, %v2024_v41  ;;  %v1962_v41 = vmul.f32 1.442695, %v1839_v17  ;;  %4306 = vpow2.f32 %v1958_v56 }
 0x55b   : > { %v2004_v27 = vadd.f32 %v2003_v45, %v2002_v1  ;;  %v2026_v19 = vadd.f32 %v6333_v25, %v2025_v62  ;;  %v6343_v45 = vpop.eup %4290  ;;  %4308 = vpow2.f32 %v1962_v41 }
 0x55c   : > { %v6348_v63 = vpop.eup %4292 }
 0x55d   : > { %v2005_v5 = vrot.slane %v2004_v27, 2  ;;  %v2027_v4 = vadd.f32 %v6338_v55, %v2026_v19  ;;  %v6351_v18 = vpop.eup %4294 }
 0x55f   : > { %v2006_v1 = vadd.f32 %v2005_v5, %v2004_v27  ;;  %v2028_v28 = vadd.f32 %v6343_v45, %v2027_v4  ;;  %v6354_v5 = vpop.eup %4296 }
 0x561   : > { %v2007_v59 = vrot.slane %v2006_v1, 1  ;;  %v2029_v27 = vadd.f32 %v6348_v63, %v2028_v28 }
 0x562   : > { %v6357_v49 = vpop.eup %4298 }
 0x563   : > { %v2008_v62 = vadd.f32 %v2007_v59, %v2006_v1  ;;  %v2030_v17 = vadd.f32 %v6351_v18, %v2029_v27  ;;  %v6360_v3 = vpop.eup %4300 }
 0x564   : > { %v6363_v52 = vpop.eup %4302 }
 0x565   : > { %4310 = vrcp.f32 %v2008_v62  ;;  %v2031_v13 = vadd.f32 %v6354_v5, %v2030_v17  ;;  %v6366_v56 = vpop.eup %4304 }
 0x566   : > { %4312 = vpow2.f32 %v1966_v12  ;;  %v4307_v41 = vpop.eup %4306 }
 0x567   : > { %4314 = vpow2.f32 %v1970_v40  ;;  %v2032_v59 = vadd.f32 %v6357_v49, %v2031_v13 }
 0x568   : > { %v4309_v7 = vpop.eup %4308 }
 0x569   : > { %v2033_v19 = vadd.f32 %v6360_v3, %v2032_v59 }
 0x56b   : > { %v2034_v1 = vadd.f32 %v6363_v52, %v2033_v19 }
 0x56d   : > { %v2035_v4 = vadd.f32 %v6366_v56, %v2034_v1 }
 0x56f   : > { %v2036_v28 = vadd.f32 %v4307_v41, %v2035_v4 }
 0x571   : > { %v2037_v12 = vadd.f32 %v4309_v7, %v2036_v28 }
 0x572   : > { %v6369_v62 = vpop.eup %4310 }
 0x573   : > { %v2076_v27 = vmul.f32 %v6369_v62, %v6134_v38  ;;  %v2078_v40 = vmul.f32 %v6369_v62, %v6147_v57  ;;  %v4313_v17 = vpop.eup %4312  ;;  %v6377_v1 = vmul.f32 %v6369_v62, %v6305_v11  ;;  %v6381_v4 = vmul.f32 %v6369_v62, %v6313_v53 }
 0x574   : > { %v2038_v13 = vadd.f32 %v4313_v17, %v2037_v12  ;;  %v4315_v19 = vpop.eup %4314  ;;  %v6385_v38 = vmul.f32 %v6369_v62, %v6284_v0  ;;  %v6389_v57 = vmul.f32 %v6369_v62, %v6295_v22  ;;  %v6395_v11 = vmul.f32 %v6369_v62, %v6260_v36 }
 0x575   : > { %v2126_v59 = vpack.c.bf16 %v2078_v40, %v2076_v27  ;;  %v6399_v53 = vmul.f32 %v6369_v62, %v6270_v61  ;;  %v6405_v27 = vmul.f32 %v6369_v62, %v6242_v43  ;;  %v6413_v22 = vmul.f32 %v6369_v62, %v6220_v46 }
 0x576   : > { %v2039_v15 = vadd.f32 %v4315_v19, %v2038_v13  ;;  %v6423_v43 = vmul.f32 %v6369_v62, %v6200_v60  ;;  %v6429_v40 = vmul.f32 %v6369_v62, %v6211_v21  ;;  %v6433_v46 = vmul.f32 %v6369_v62, %v6175_v54 }
 0x577   : > { %v6437_v13 = vmul.f32 %v6369_v62, %v6186_v6 }
 0x578   : > { %v2040_v29 = vrot.slane %v2039_v15, 4  ;;  %v2132_v61 = vpack.c.bf16 %v6429_v40, %v6423_v43  ;;  %v8617_v40 = vld [vmem:[#allocation16_spill] sm:$0xff] }
 0x57a   : > { %v2041_v28 = vadd.f32 %v2040_v29, %v2039_v15  ;;  %v6409_v29 = vmul.f32 %v6369_v62, %v6251_v48  ;;  %v6419_v15 = vmul.f32 %v6369_v62, %v6228_v9  ;;  %v2072_v48 = vmul.f32 %v6369_v62, %v6120_v10 }
 0x57c   : > { %v2042_v36 = vrot.slane %v2041_v28, 2  ;;  %v2134_v60 = vpack.c.bf16 %v6419_v15, %v6413_v22  ;;  %v8614_v15 = vld [vmem:[#allocation20_spill] sm:$0xff] }
 0x57e   : > { %v2043_v9 = vadd.f32 %v2042_v36, %v2041_v28 }
 0x580   : > { %v2044_v21 = vrot.slane %v2043_v9, 1 }
 0x582   : > { %v2045_v0 = vadd.f32 %v2044_v21, %v2043_v9 }
 0x584   : > { %4316 = vrcp.f32 %v2045_v0  ;;  %v2074_v0 = vmul.f32 %v6369_v62, %v6127_v30 }
 0x586   : > { %v2124_v10 = vpack.c.bf16 %v2074_v0, %v2072_v48  ;;  %v2064_v0 = vmul.f32 %v6369_v62, %v6092_v42  ;;  %v2062_v42 = vmul.f32 %v6369_v62, %v6085_v44 }
 0x591   : > { %v6445_v12 = vpop.eup %4316 }
 0x592   : > { %v2077_v54 = vmul.f32 %v6445_v12, %v6309_v50  ;;  %v2079_v6 = vmul.f32 %v6445_v12, %v6317_v31  ;;  %v2073_v28 = vmul.f32 %v6445_v12, %v6288_v37  ;;  %v2075_v36 = vmul.f32 %v6445_v12, %v6301_v34 }
 0x593   : > { %v2069_v50 = vmul.f32 %v6445_v12, %v6264_v20  ;;  %v2071_v31 = vmul.f32 %v6445_v12, %v6280_v35  ;;  %v2068_v37 = vmul.f32 %v6369_v62, %v6106_v16  ;;  %v2070_v34 = vmul.f32 %v6369_v62, %v6113_v8 }
 0x594   : > { %v2127_v9 = vpack.c.bf16 %v2079_v6, %v2077_v54  ;;  %v2125_v21 = vpack.c.bf16 %v2075_v36, %v2073_v28  ;;  %v2065_v30 = vmul.f32 %v6445_v12, %v6246_v58  ;;  %v6470_v54 = vmul.f32 %v6445_v12, %v4313_v17 }
 0x595   : > { %v6473_v20 = vmul.f32 %v6445_v12, %v4315_v19  ;;  %v2067_v35 = vmul.f32 %v6445_v12, %v6256_v26  ;;  %v6478_v16 = vmul.f32 %v6445_v12, %v4307_v41  ;;  %v6481_v8 = vmul.f32 %v6445_v12, %v4309_v7 }
 0x596   : > { %2144 = vmatprep.subr.bf16.mxu0 %v2127_v9  ;;  %v2123_v58 = vpack.c.bf16 %v2071_v31, %v2069_v50  ;;  %v2103_v19 = vmul.f32 %v6445_v12, %v6366_v56  ;;  %v2097_v26 = vmul.f32 %v6445_v12, %v6357_v49  ;;  %v2099_v7 = vmul.f32 %v6445_v12, %v6360_v3 }
 0x597   : > { %2145 = vmatpush1.bf16.msra.mxu0 %v2126_v59  ;;  %v6485_v59 = vmul.f32 %v6445_v12, %v6363_v52  ;;  %v2143_v17 = vpack.c.bf16 %v6473_v20, %v6470_v54  ;;  %v2141_v41 = vpack.c.bf16 %v6481_v8, %v6478_v16  ;;  %v2093_v52 = vmul.f32 %v6445_v12, %v6351_v18  ;;  %v8602_v8 = vld [vmem:[#allocation6_spill] sm:$0xff] }
 0x598   : > { %2146 = vmatprep.subr.bf16.mxu0 %v2125_v21  ;;  %v2095_v48 = vmul.f32 %v6445_v12, %v6354_v5  ;;  %v2089_v56 = vmul.f32 %v6445_v12, %v6343_v45  ;;  %v2091_v49 = vmul.f32 %v6445_v12, %v6348_v63  ;;  %v6508_v28 = vmul.f32 %v6445_v12, %v6333_v25 }
 0x599   : > { %v2139_v6 = vpack.c.bf16 %v2103_v19, %v6485_v59  ;;  %v2137_v3 = vpack.c.bf16 %v2099_v7, %v2097_v26  ;;  %v2087_v18 = vmul.f32 %v6445_v12, %v6338_v55  ;;  %v2122_v5 = vpack.c.bf16 %v2070_v34, %v2068_v37  ;;  %v8603_v59 = vld [vmem:[#allocation39_spill] sm:$0xff]  ;;  %v8604_v19 = vld [vmem:[#allocation5_spill] sm:$0xff] }
 0x59a   : > { %v2135_v36 = vpack.c.bf16 %v2095_v48, %v2093_v52  ;;  %v2066_v45 = vmul.f32 %v6369_v62, %v6099_v23  ;;  %v2133_v9 = vpack.c.bf16 %v2091_v49, %v2089_v56  ;;  %v2121_v21 = vpack.c.bf16 %v2067_v35, %v2065_v30  ;;  %v8599_v30 = vld [vmem:[#allocation32_spill] sm:$0xff]  ;;  %v8601_v35 = vld [vmem:[#allocation11_spill] sm:$0xff]  ;;  %v8605_v7 = vld [vmem:[#allocation41_spill] sm:$0xff] }
 0x59b   : > { %2147 = vmatpush1.bf16.msra.mxu0 %v2124_v10  ;;  %v2061_v63 = vmul.f32 %v6445_v12, %v6224_v33  ;;  %v2063_v25 = vmul.f32 %v6445_v12, %v6238_v39  ;;  %v2131_v50 = vpack.c.bf16 %v2087_v18, %v6508_v28  ;;  %v2060_v31 = vmul.f32 %v6369_v62, %v6078_v2 }
 0x59c   : > { %2148 = vmatprep.subr.bf16.mxu0 %v2123_v58  ;;  %v2120_v55 = vpack.c.bf16 %v2066_v45, %v2064_v0  ;;  %v2057_v37 = vmul.f32 %v6445_v12, %v6204_v51  ;;  %v2059_v33 = vmul.f32 %v6445_v12, %v6216_v14  ;;  %v2056_v34 = vmul.f32 %v6369_v62, %v6064_v24  ;;  %v8600_v14 = vld [vmem:[#allocation40_spill] sm:$0xff] }
 0x59d   : > { %v2119_v23 = vpack.c.bf16 %v2063_v25, %v2061_v63  ;;  %v2118_v39 = vpack.c.bf16 %v2062_v42, %v2060_v31  ;;  %v2058_v10 = vmul.f32 %v6369_v62, %v6071_v47  ;;  %v2053_v44 = vmul.f32 %v6445_v12, %v6180_v32  ;;  %v8619_v25 = vld [vmem:[#allocation37_spill] sm:$0xff]  ;;  %v8625_v42 = vld [vmem:[#allocation15_spill] sm:$0xff] }
 0x59e   : > { %v2117_v2 = vpack.c.bf16 %v2059_v33, %v2057_v37  ;;  %v2055_v54 = vmul.f32 %v6445_v12, %v8599_v30  ;;  %v2052_v20 = vmul.f32 %v6369_v62, %v8600_v14  ;;  %v2054_v16 = vmul.f32 %v6369_v62, %v8601_v35 }
 0x59f   : > { %2149 = vmatpush1.bf16.msra.mxu0 %v2122_v5  ;;  %v2116_v51 = vpack.c.bf16 %v2058_v10, %v2056_v34  ;;  %v2049_v47 = vmul.f32 %v6445_v12, %v8602_v8  ;;  %v2051_v58 = vmul.f32 %v6445_v12, %v8603_v59  ;;  %v2048_v26 = vmul.f32 %v6369_v62, %v8604_v19  ;;  %v2225_v34 = vpop.trf.xlu0 }
 0x5a0   : > { %2150 = vmatprep.subr.bf16.mxu0 %v2121_v21  ;;  %v2115_v24 = vpack.c.bf16 %v2055_v54, %v2053_v44  ;;  %v2114_v32 = vpack.c.bf16 %v2054_v16, %v2052_v20  ;;  %v2050_v52 = vmul.f32 %v6369_v62, %v8605_v7  ;;  %v8606_v49 = vpack.c.bf16 %v6381_v4, %v6377_v1  ;;  %v8610_v4 = vld [vmem:[#allocation30_spill] sm:$0xff]  ;;  %v8618_v21 = vld [vmem:[#allocation13_spill] sm:$0xff] }
 0x5a1   : > { %v2113_v48 = vpack.c.bf16 %v2051_v58, %v2049_v47  ;;  %v8607_v28 = vpack.c.bf16 %v6389_v57, %v6385_v38  ;;  %v8608_v18 = vpack.c.bf16 %v6399_v53, %v6395_v11  ;;  %v8609_v5 = vpack.c.bf16 %v6409_v29, %v6405_v27  ;;  %v8611_v57 = vld [vmem:[#allocation31_spill] sm:$0xff]  ;;  %v8612_v27 = vld [vmem:[#allocation10_spill] sm:$0xff] }
 0x5a2   : > { %v2112_v56 = vpack.c.bf16 %v2050_v52, %v2048_v26  ;;  %v2081_v38 = vmul.f32 %v6445_v12, %v8610_v4  ;;  %v2083_v11 = vmul.f32 %v6445_v12, %v8611_v57  ;;  %v2080_v29 = vmul.f32 %v6369_v62, %v8612_v27  ;;  %v8616_v12 = vld [vmem:[#allocation17_spill] sm:$0xff]  ;;  %v2241_v4 = vpop.trf.xlu1 }
 0x5a3   : > { %2151 = vmatpush1.bf16.msra.mxu0 %v2120_v55  ;;  %v2200_v0 = vmul.f32 0.17677669, %v8617_v40  ;;  %v2198_v63 = vmul.f32 0.17677669, %v8618_v21  ;;  %v2226_v10 = vpop.trf.xlu0 }
 0x5a4   : > { %2152 = vmatprep.subr.bf16.mxu0 %v2119_v23  ;;  %v8626_v23 = vld [vmem:[#allocation14_spill] sm:$0xff] }
 0x5a5   : > { %v8627_v37 = vpack.c.bf16 %v8625_v42, %v8626_v23 }
 0x5a7   : > { %2153 = vmatpush1.bf16.msra.mxu0 %v2118_v39  ;;  %v8628_v39 = vmov 0  }
 0x5a8   : > { %2154 = vmatprep.subr.bf16.mxu0 %v2117_v2  ;;  %v2227_v2 = vpop.trf.xlu0 }
 0x5ab   : > { %2155 = vmatpush1.bf16.msra.mxu0 %v2116_v51 }
 0x5ac   : > { %2156 = vmatprep.subr.bf16.mxu0 %v2115_v24  ;;  %v2228_v54 = vpop.trf.xlu0 }
 0x5af   : > { %2157 = vmatpush1.bf16.msra.mxu0 %v2114_v32 }
 0x5b0   : > { %2158 = vmatprep.subr.bf16.mxu0 %v2113_v48  ;;  %v2229_v8 = vpop.trf.xlu0 }
 0x5b3   : > { %2159 = vmatpush1.bf16.msra.mxu0 %v2112_v56 }
 0x5b4   : > { %2160 = vmatprep.subr.bf16.mxu0 %v2143_v17  ;;  %v579_v17 = vpop.f32.mrf.mxu0  ;;  %v2230_v7 = vpop.trf.xlu0 }
 0x5b6   : > { %v581_v1 = vpop.f32.mrf.mxu0 }
 0x5b7   : > { %2161 = vmatpush2.bf16.msra.mxu0 %v8606_v49 }
 0x5b8   : > { %2162 = vmatprep.subr.bf16.mxu0 %v2141_v41  ;;  %v583_v53 = vpop.f32.mrf.mxu0  ;;  %v8613_v41 = vld [vmem:[#allocation7_spill] sm:$0xff] }
 0x5b9   : > { %v2082_v22 = vmul.f32 %v6369_v62, %v8613_v41  ;;  %v2206_v62 = vpack.c.bf16 %v2200_v0, %v2198_v63  ;;  %v1431_v33 = vpack.c.bf16 %v583_v53, %v579_v17 }
 0x5ba   : > { %v585_v43 = vpop.f32.mrf.mxu0 }
 0x5bb   : > { %2163 = vmatpush2.bf16.msra.mxu0 %v8607_v28 }
 0x5bc   : > { %2164 = vmatprep.subr.bf16.mxu0 %v2139_v6  ;;  %v2129_v6 = vpack.c.bf16 %v2083_v11, %v2081_v38  ;;  %v2242_v38 = vpop.trf.xlu1 }
 0x5bf   : > { %2165 = vmatpush2.bf16.msra.mxu0 %v8608_v18  ;;  %v2231_v18 = vpop.trf.xlu0 }
 0x5c0   : > { %2166 = vmatprep.subr.bf16.mxu0 %v2137_v3  ;;  %v8615_v3 = vpack.c.bf16 %v6437_v13, %v6433_v46  ;;  %v8622_v46 = vld [vmem:[#allocation19_spill] sm:$0xff]  ;;  %v8623_v13 = vld [vmem:[#allocation18_spill] sm:$0xff]  ;;  %v2243_v57 = vpop.trf.xlu1 }
 0x5c1   : > { %v8624_v31 = vpack.c.bf16 %v8622_v46, %v8623_v13 }
 0x5c3   : > { %2167 = vmatpush2.bf16.msra.mxu0 %v8609_v5 }
 0x5c4   : > { %2168 = vmatprep.subr.bf16.mxu0 %v2135_v36  ;;  %v2202_v36 = vmul.f32 0.17677669, %v8616_v12  ;;  %v2244_v11 = vpop.trf.xlu1 }
 0x5c7   : > { %2169 = vmatpush2.bf16.msra.mxu0 %v2134_v60  ;;  %v2204_v60 = vmul.f32 0.17677669, %v8614_v15 }
 0x5c8   : > { %2170 = vmatprep.subr.bf16.mxu0 %v2133_v9  ;;  %v1432_v9 = vpack.c.bf16 %v585_v43, %v581_v1  ;;  %v2232_v1 = vpop.trf.xlu0  ;;  %v2245_v53 = vpop.trf.xlu1 }
 0x5c9   : > { %v2208_v45 = vpack.c.bf16 %v2204_v60, %v2202_v36 }
 0x5cb   : > { %2171 = vmatpush2.bf16.msra.mxu0 %v2132_v61  ;;  %v2128_v61 = vpack.c.bf16 %v2082_v22, %v2080_v29 }
 0x5cc   : > { %2172 = vmatprep.subr.bf16.mxu0 %v2131_v50  ;;  %v8620_v50 = vld [vmem:[#allocation36_spill] sm:$0xff]  ;;  %v2246_v27 = vpop.trf.xlu1 }
 0x5cd   : > { %v8621_v55 = vpack.c.bf16 %v8619_v25, %v8620_v50 }
 0x5cf   : > { %2173 = vmatpush2.bf16.msra.mxu0 %v8615_v3 }
 0x5d0   : > { %2174 = vmatprep.subr.bf16.mxu0 %v2129_v6  ;;  %v2247_v29 = vpop.trf.xlu1 }
 0x5d3   : > { %2175 = vmatpush2.bf16.msra.mxu0 %v2128_v61 }
 0x5d4   : > { %2309 = vmatprep.subr.bf16.mxu0 %v2208_v45  ;;  %v2248_v41 = vpop.trf.xlu1 }
 0x5d6   : > { %2177 = vmatmul.mubr.bf16.vlgmr.msra.gmra.mxu0 %v8621_v55 }
 0x5d7   : > { %2310 = vmatpush1.bf16.msra.mxu0 %v8624_v31  ;;  %2186 = vmatprep.mubr.bf16.mxu0 %v1432_v9 }
 0x5d8   : > { %2311 = vmatprep.subr.bf16.mxu0 %v2206_v62 }
 0x5db   : > { %2312 = vmatpush1.bf16.msra.mxu0 %v8627_v37 }
 0x5de   : > { %2187 = vmatmul.mubr.bf16.gmra.mxu0 %v1431_v33 }
 0x5df   : > { %2329 = vmatprep.mubr.bf16.mxu0 %v8628_v39 }
 0x5e6   : > { %3973 = vmatmul.mubr.msk.bf16.vlgmr.msra.gmra.mxu0 %vm680_vm2, %v2225_v34 }
 0x5e7   : > { %2339 = vmatprep.mubr.bf16.mxu0 %v8628_v39 }
 0x5ed   : > { %v6598_v44 = vpop.f32.mrf.mxu0 }
 0x5ee   : > { %3974 = vmatmul.mubr.msk.bf16.gmra.mxu0 %vm680_vm2, %v2226_v10  ;;  %8629 = vst [vmem:[#allocation38_spill] sm:$0xff] %v6598_v44 }
 0x5ef   : > { %2349 = vmatprep.mubr.bf16.mxu0 %v8628_v39  ;;  %v591_v30 = vpop.f32.mrf.mxu0 }
 0x5f1   : > { %v6600_v51 = vpop.f32.mrf.mxu0 }
 0x5f2   : > { %8630 = vst [vmem:[#allocation42_spill] sm:$0xff] %v6600_v51 }
 0x5f3   : > { %v595_v20 = vpop.f32.mrf.mxu0 }
 0x5f4   : > { %v2214_v35 = vpack.c.bf16 %v595_v20, %v591_v30 }
 0x5f6   : > { %3975 = vmatmul.mubr.msk.bf16.gmra.mxu0 %vm680_vm2, %v2227_v2  ;;  %2960 = vmatprep.mubr.bf16.mxu1 %v2214_v35 }
 0x5f7   : > { %2359 = vmatprep.mubr.bf16.mxu0 %v8628_v39 }
 0x5fe   : > { %3976 = vmatmul.mubr.msk.bf16.gmra.mxu0 %vm680_vm2, %v2228_v54 }
 0x5ff   : > { %2369 = vmatprep.mubr.bf16.mxu0 %v8628_v39  ;;  %v6606_v16 = vpop.f32.mrf.mxu0 }
 0x600   : > { %8631 = vst [vmem:[#allocation43_spill] sm:$0xff] %v6606_v16 }
 0x601   : > { %v6608_v24 = vpop.f32.mrf.mxu0 }
 0x602   : > { %8632 = vst [vmem:[#allocation35_spill] sm:$0xff] %v6608_v24 }
 0x603   : > { %v6610_v47 = vpop.f32.mrf.mxu0 }
 0x604   : > { %8633 = vst [vmem:[#allocation29_spill] sm:$0xff] %v6610_v47 }
 0x605   : > { %v6614_v58 = vpop.f32.mrf.mxu0 }
 0x606   : > { %8634 = vst [vmem:[#allocation12_spill] sm:$0xff] %v6614_v58  ;;  %3977 = vmatmul.mubr.msk.bf16.gmra.mxu0 %vm680_vm2, %v2229_v8 }
 0x607   : > { %2379 = vmatprep.mubr.bf16.mxu0 %v8628_v39  ;;  %v6620_v19 = vpop.f32.mrf.mxu0 }
 0x608   : > { %8635 = vst [vmem:[#allocation9_spill] sm:$0xff] %v6620_v19 }
 0x609   : > { %v611_v26 = vpop.f32.mrf.mxu0 }
 0x60b   : > { %v6622_v52 = vpop.f32.mrf.mxu0 }
 0x60c   : > { %8636 = vst [vmem:[#allocation47_spill] sm:$0xff] %v6622_v52 }
 0x60d   : > { %v615_v56 = vpop.f32.mrf.mxu0 }
 0x60e   : > { %3978 = vmatmul.mubr.msk.bf16.gmra.mxu0 %vm680_vm2, %v2230_v7  ;;  %v2998_v22 = vpack.c.bf16 %v615_v56, %v611_v26 }
 0x60f   : > { %2389 = vmatprep.mubr.bf16.mxu0 %v8628_v39  ;;  %v6628_v49 = vpop.f32.mrf.mxu0 }
 0x610   : > { %8637 = vst [vmem:[#allocation8_spill] sm:$0xff] %v6628_v49 }
 0x611   : > { %v6630_v28 = vpop.f32.mrf.mxu0 }
 0x612   : > { %8638 = vst [vmem:[#allocation32_spill] sm:$0xff] %v6630_v28 }
 0x613   : > { %v6632_v5 = vpop.f32.mrf.mxu0 }
 0x614   : > { %8639 = vst [vmem:[#allocation40_spill] sm:$0xff] %v6632_v5 }
 0x615   : > { %v6655_v15 = vpop.f32.mrf.mxu0 }
 0x616   : > { %3979 = vmatmul.mubr.msk.bf16.gmra.mxu0 %vm680_vm2, %v2231_v18  ;;  %8640 = vst [vmem:[#allocation11_spill] sm:$0xff] %v6655_v15 }
 0x617   : > { %2399 = vmatprep.mubr.bf16.mxu0 %v8628_v39 }
 0x61e   : > { %3980 = vmatmul.mubr.msk.bf16.gmra.mxu0 %vm680_vm2, %v2232_v1 }
 0x61f   : > { %2409 = vmatprep.mubr.bf16.mxu0 %v8628_v39 }
 0x626   : > { %3981 = vmatmul.mubr.msk.bf16.gmra.mxu0 %vm680_vm2, %v2241_v4 }
 0x627   : > { %2419 = vmatprep.mubr.bf16.mxu0 %v8628_v39 }
 0x62e   : > { %3982 = vmatmul.mubr.msk.bf16.gmra.mxu0 %vm680_vm2, %v2242_v38 }
 0x62f   : > { %2429 = vmatprep.mubr.bf16.mxu0 %v8628_v39 }
 0x636   : > { %3983 = vmatmul.mubr.msk.bf16.gmra.mxu0 %vm680_vm2, %v2243_v57 }
 0x637   : > { %2439 = vmatprep.mubr.bf16.mxu0 %v8628_v39 }
 0x63e   : > { %3984 = vmatmul.mubr.msk.bf16.gmra.mxu0 %vm680_vm2, %v2244_v11 }
 0x63f   : > { %2449 = vmatprep.mubr.bf16.mxu0 %v8628_v39 }
 0x646   : > { %3985 = vmatmul.mubr.msk.bf16.gmra.mxu0 %vm680_vm2, %v2245_v53 }
 0x647   : > { %2459 = vmatprep.mubr.bf16.mxu0 %v8628_v39 }
 0x64e   : > { %3986 = vmatmul.mubr.msk.bf16.gmra.mxu0 %vm680_vm2, %v2246_v27 }
 0x64f   : > { %2469 = vmatprep.mubr.bf16.mxu0 %v8628_v39 }
 0x656   : > { %3987 = vmatmul.mubr.msk.bf16.gmra.mxu0 %vm680_vm2, %v2247_v29 }
 0x657   : > { %2479 = vmatprep.mubr.bf16.mxu0 %v8628_v39 }
 0x65e   : > { %3988 = vmatmul.mubr.msk.bf16.gmra.mxu0 %vm680_vm2, %v2248_v41 }
 0x65f   : > { %3744 = vmatprep.mubr.bf16.mxu0 %v2998_v22 }
 0x696   : > { %v6657_v60 = vpop.f32.mrf.mxu0 }
 0x697   : > { %8641 = vst [vmem:[#allocation6_spill] sm:$0xff] %v6657_v60 }
 0x698   : > { %v6659_v6 = vpop.f32.mrf.mxu0 }
 0x699   : > { %8642 = vst [vmem:[#allocation39_spill] sm:$0xff] %v6659_v6 }
 0x69a   : > { %v6661_v3 = vpop.f32.mrf.mxu0 }
 0x69b   : > { %8643 = vst [vmem:[#allocation5_spill] sm:$0xff] %v6661_v3 }
 0x69c   : > { %v6665_v36 = vpop.f32.mrf.mxu0 }
 0x69d   : > { %8644 = vst [vmem:[#allocation41_spill] sm:$0xff] %v6665_v36 }
 0x69e   : > { %v6669_v61 = vpop.f32.mrf.mxu0 }
 0x69f   : > { %8645 = vst [vmem:[#allocation30_spill] sm:$0xff] %v6669_v61 }
 0x6a0   : > { %v6671_v40 = vpop.f32.mrf.mxu0 }
 0x6a1   : > { %8646 = vst [vmem:[#allocation31_spill] sm:$0xff] %v6671_v40 }
 0x6a2   : > { %v6673_v0 = vpop.f32.mrf.mxu0 }
 0x6a3   : > { %8647 = vst [vmem:[#allocation10_spill] sm:$0xff] %v6673_v0 }
 0x6a4   : > { %v6677_v9 = vpop.f32.mrf.mxu0 }
 0x6a5   : > { %8648 = vst [vmem:[#allocation7_spill] sm:$0xff] %v6677_v9 }
 0x6a6   : > { %v6681_v63 = vpop.f32.mrf.mxu0 }
 0x6a8   : > { %v6683_v62 = vpop.f32.mrf.mxu0 }
 0x6aa   : > { %v6685_v25 = vpop.f32.mrf.mxu0 }
 0x6ac   : > { %v6687_v50 = vpop.f32.mrf.mxu0 }
 0x6ae   : > { %v6689_v55 = vpop.f32.mrf.mxu0 }
 0x6af   : > { %v2490_v40 = vmax.f32 %v6681_v63, %v6689_v55 }
 0x6b0   : > { %v6691_v46 = vpop.f32.mrf.mxu0 }
 0x6b2   : > { %v6693_v13 = vpop.f32.mrf.mxu0 }
 0x6b3   : > { %v2491_v9 = vmax.f32 %v6685_v25, %v6693_v13 }
 0x6b4   : > { %v6695_v31 = vpop.f32.mrf.mxu0 }
 0x6b5   : > { %8649 = vst [vmem:[#allocation20_spill] sm:$0xff] %v6695_v31 }
 0x6b6   : > { %v6697_v42 = vpop.f32.mrf.mxu0 }
 0x6b7   : > { %v2492_v5 = vmax.f32 %v2490_v40, %v6697_v42 }
 0x6b8   : > { %v6699_v23 = vpop.f32.mrf.mxu0 }
 0x6ba   : > { %v6701_v37 = vpop.f32.mrf.mxu0 }
 0x6bb   : > { %v2493_v19 = vmax.f32 %v2491_v9, %v6701_v37 }
 0x6bc   : > { %v6703_v33 = vpop.f32.mrf.mxu0 }
 0x6be   : > { %v6705_v34 = vpop.f32.mrf.mxu0 }
 0x6bf   : > { %v2494_v15 = vmax.f32 %v2492_v5, %v6705_v34 }
 0x6c0   : > { %v6707_v10 = vpop.f32.mrf.mxu0 }
 0x6c2   : > { %v6709_v2 = vpop.f32.mrf.mxu0 }
 0x6c3   : > { %v2495_v28 = vmax.f32 %v2493_v19, %v6709_v2 }
 0x6c4   : > { %v6711_v30 = vpop.f32.mrf.mxu0 }
 0x6c6   : > { %v6713_v54 = vpop.f32.mrf.mxu0 }
 0x6c7   : > { %8650 = vst [vmem:[#allocation17_spill] sm:$0xff] %v6713_v54  ;;  %v2496_v16 = vmax.f32 %v2494_v15, %v6713_v54 }
 0x6c8   : > { %v6715_v20 = vpop.f32.mrf.mxu0 }
 0x6ca   : > { %v6717_v35 = vpop.f32.mrf.mxu0 }
 0x6cb   : > { %v2497_v47 = vmax.f32 %v2495_v28, %v6717_v35 }
 0x6cc   : > { %v6719_v8 = vpop.f32.mrf.mxu0 }
 0x6ce   : > { %v6721_v26 = vpop.f32.mrf.mxu0 }
 0x6cf   : > { %8651 = vst [vmem:[#allocation16_spill] sm:$0xff] %v6721_v26  ;;  %v2498_v58 = vmax.f32 %v2496_v16, %v6721_v26 }
 0x6d0   : > { %v6723_v7 = vpop.f32.mrf.mxu0 }
 0x6d2   : > { %v6725_v56 = vpop.f32.mrf.mxu0 }
 0x6d3   : > { %v2499_v40 = vmax.f32 %v2497_v47, %v6725_v56 }
 0x6d4   : > { %v6727_v18 = vpop.f32.mrf.mxu0 }
 0x6d6   : > { %v6729_v1 = vpop.f32.mrf.mxu0 }
 0x6d7   : > { %8652 = vst [vmem:[#allocation13_spill] sm:$0xff] %v6729_v1  ;;  %v2500_v9 = vmax.f32 %v2498_v58, %v6729_v1 }
 0x6d8   : > { %v6731_v4 = vpop.f32.mrf.mxu0 }
 0x6da   : > { %v6733_v38 = vpop.f32.mrf.mxu0 }
 0x6db   : > { %v2501_v5 = vmax.f32 %v2499_v40, %v6733_v38  ;;  %v2528_v40 = vmax.f32 %v6687_v50, %v6695_v31 }
 0x6dc   : > { %v6735_v57 = vpop.f32.mrf.mxu0 }
 0x6de   : > { %v6737_v11 = vpop.f32.mrf.mxu0 }
 0x6df   : > { %v2502_v19 = vmax.f32 %v2500_v9, %v6737_v11 }
 0x6e0   : > { %v6739_v53 = vpop.f32.mrf.mxu0 }
 0x6e2   : > { %v6741_v27 = vpop.f32.mrf.mxu0 }
 0x6e3   : > { %8653 = vst [vmem:[#allocation37_spill] sm:$0xff] %v6741_v27  ;;  %v2503_v15 = vmax.f32 %v2501_v5, %v6741_v27 }
 0x6e4   : > { %v6743_v29 = vpop.f32.mrf.mxu0 }
 0x6e6   : > { %v6745_v41 = vpop.f32.mrf.mxu0 }
 0x6e7   : > { %v2504_v28 = vmax.f32 %v2502_v19, %v6745_v41  ;;  %v2527_v19 = vmax.f32 %v6683_v62, %v6691_v46 }
 0x6e8   : > { %v6747_v22 = vpop.f32.mrf.mxu0 }
 0x6ea   : > { %v6749_v12 = vpop.f32.mrf.mxu0 }
 0x6eb   : > { %v2505_v16 = vmax.f32 %v2503_v15, %v6749_v12  ;;  %v2530_v15 = vmax.f32 %v2528_v40, %v6703_v33 }
 0x6ec   : > { %v6751_v43 = vpop.f32.mrf.mxu0 }
 0x6ed   : > { %v2532_v31 = vmax.f32 %v2530_v15, %v6711_v30 }
 0x6ee   : > { %v6753_v45 = vpop.f32.mrf.mxu0 }
 0x6ef   : > { %8654 = vst [vmem:[#allocation36_spill] sm:$0xff] %v6753_v45  ;;  %v2506_v47 = vmax.f32 %v2504_v28, %v6753_v45  ;;  %v2529_v45 = vmax.f32 %v2527_v19, %v6699_v23  ;;  %v2534_v40 = vmax.f32 %v2532_v31, %v6719_v8 }
 0x6f0   : > { %v6755_v21 = vpop.f32.mrf.mxu0 }
 0x6f1   : > { %v2536_v15 = vmax.f32 %v2534_v40, %v6727_v18 }
 0x6f2   : > { %v6757_v17 = vpop.f32.mrf.mxu0 }
 0x6f3   : > { %8655 = vst [vmem:[#allocation19_spill] sm:$0xff] %v6757_v17  ;;  %v2507_v58 = vmax.f32 %v2505_v16, %v6757_v17  ;;  %v2538_v31 = vmax.f32 %v2536_v15, %v6735_v57 }
 0x6f4   : > { %v6759_v48 = vpop.f32.mrf.mxu0 }
 0x6f6   : > { %v6761_v59 = vpop.f32.mrf.mxu0 }
 0x6f7   : > { %8656 = vst [vmem:[#allocation18_spill] sm:$0xff] %v6761_v59  ;;  %v2508_v9 = vmax.f32 %v2506_v47, %v6761_v59  ;;  %v2531_v59 = vmax.f32 %v2529_v45, %v6707_v10 }
 0x6f8   : > { %v6763_v32 = vpop.f32.mrf.mxu0 }
 0x6f9   : > { %v2533_v19 = vmax.f32 %v2531_v59, %v6715_v20  ;;  %v2540_v59 = vmax.f32 %v2538_v31, %v6743_v29 }
 0x6fa   : > { %v6765_v14 = vpop.f32.mrf.mxu0 }
 0x6fb   : > { %8657 = vst [vmem:[#allocation15_spill] sm:$0xff] %v6765_v14  ;;  %v2509_v5 = vmax.f32 %v2507_v58, %v6765_v14  ;;  %v2535_v45 = vmax.f32 %v2533_v19, %v6723_v7 }
 0x6fc   : > { %v6767_v60 = vpop.f32.mrf.mxu0 }
 0x6fe   : > { %v6769_v3 = vpop.f32.mrf.mxu0 }
 0x6ff   : > { %v2510_v28 = vmax.f32 %v2508_v9, %v6769_v3 }
 0x700   : > { %v6771_v6 = vpop.f32.mrf.mxu0 }
 0x702   : > { %v6773_v36 = vpop.f32.mrf.mxu0 }
 0x703   : > { %8658 = vst [vmem:[#allocation14_spill] sm:$0xff] %v6773_v36  ;;  %v2511_v16 = vmax.f32 %v2509_v5, %v6773_v36 }
 0x704   : > { %v6775_v61 = vpop.f32.mrf.mxu0 }
 0x706   : > { %v6777_v0 = vpop.f32.mrf.mxu0 }
 0x707   : > { %v2512_v47 = vmax.f32 %v2510_v28, %v6777_v0 }
 0x708   : > { %v6783_v49 = vpop.f32.mrf.mxu0 }
 0x70a   : > { %v6787_v52 = vpop.f32.mrf.mxu0 }
 0x70b   : > { %8659 = vst [vmem:[#allocation51_spill] sm:$0xff] %v6787_v52  ;;  %v2513_v58 = vmax.f32 %v2511_v16, %v6787_v52 }
 0x70c   : > { %v6791_v39 = vpop.f32.mrf.mxu0 }
 0x70e   : > { %v6795_v24 = vpop.f32.mrf.mxu0 }
 0x70f   : > { %8660 = vst [vmem:[#allocation52_spill] sm:$0xff] %v6795_v24  ;;  %v2514_v9 = vmax.f32 %v2512_v47, %v6795_v24 }
 0x710   : > { %v6799_v44 = vpop.f32.mrf.mxu0 }
 0x712   : > { %v6803_v51 = vpop.f32.mrf.mxu0 }
 0x713   : > { %8661 = vst [vmem:[#allocation53_spill] sm:$0xff] %v6803_v51  ;;  %v2515_v5 = vmax.f32 %v2513_v58, %v6803_v51  ;;  %v2537_v51 = vmax.f32 %v2535_v45, %v6731_v4 }
 0x714   : > { %v6807_v54 = vpop.f32.mrf.mxu0 }
 0x715   : > { %v2539_v40 = vmax.f32 %v2537_v51, %v6739_v53 }
 0x716   : > { %v6811_v26 = vpop.f32.mrf.mxu0 }
 0x717   : > { %8662 = vst [vmem:[#allocation54_spill] sm:$0xff] %v6811_v26  ;;  %v2516_v28 = vmax.f32 %v2514_v9, %v6811_v26  ;;  %v2542_v9 = vmax.f32 %v2540_v59, %v6751_v43 }
 0x718   : > { %v6815_v1 = vpop.f32.mrf.mxu0 }
 0x719   : > { %v2544_v19 = vmax.f32 %v2542_v9, %v6759_v48 }
 0x71a   : > { %v6821_v27 = vpop.f32.mrf.mxu0 }
 0x71b   : > { %8663 = vst [vmem:[#allocation55_spill] sm:$0xff] %v6821_v27  ;;  %v2517_v16 = vmax.f32 %v2515_v5, %v6821_v27  ;;  %v2541_v27 = vmax.f32 %v2539_v40, %v6747_v22 }
 0x71c   : > { %v6828_v17 = vpop.f32.mrf.mxu0 }
 0x71d   : > { %v2543_v15 = vmax.f32 %v2541_v27, %v6755_v21 }
 0x71e   : > { %v6834_v14 = vpop.f32.mrf.mxu0 }
 0x71f   : > { %v2518_v47 = vmax.f32 %v2516_v28, %v6834_v14  ;;  %v2546_v28 = vmax.f32 %v2544_v19, %v6767_v60  ;;  %v2545_v45 = vmax.f32 %v2543_v15, %v6763_v32 }
 0x720   : > { %v6840_v36 = vpop.f32.mrf.mxu0 }
 0x721   : > { %v2548_v31 = vmax.f32 %v2546_v28, %v6775_v61  ;;  %v2547_v51 = vmax.f32 %v2545_v45, %v6771_v6 }
 0x722   : > { %v6846_v52 = vpop.f32.mrf.mxu0 }
 0x723   : > { %v2519_v58 = vmax.f32 %v2517_v16, %v6846_v52  ;;  %v2549_v40 = vmax.f32 %v2547_v51, %v6783_v49 }
 0x725   : > { %v2520_v24 = vmax.f32 %v2518_v47, %v2519_v58  ;;  %v2550_v58 = vmax.f32 %v2548_v31, %v6791_v39  ;;  %v2551_v27 = vmax.f32 %v2549_v40, %v6799_v44 }
 0x727   : > { %v2521_v5 = vrot.slane %v2520_v24, 4  ;;  %v2552_v9 = vmax.f32 %v2550_v58, %v6807_v54  ;;  %v2553_v15 = vmax.f32 %v2551_v27, %v6815_v1 }
 0x729   : > { %v2522_v26 = vmax.f32 %v2520_v24, %v2521_v5  ;;  %v6866_v24 = vpop.f32.mrf.mxu0  ;;  %v2554_v5 = vmax.f32 %v2552_v9, %v6828_v17  ;;  %v2555_v28 = vmax.f32 %v2553_v15, %v6840_v36 }
 0x72b   : > { %v2523_v16 = vrot.slane %v2522_v26, 2 }
 0x72d   : > { %v2524_v47 = vmax.f32 %v2522_v26, %v2523_v16  ;;  %v2556_v26 = vmax.f32 %v2554_v5, %v6866_v24 }
 0x72f   : > { %v2525_v59 = vrot.slane %v2524_v47, 1  ;;  %v2557_v51 = vmax.f32 %v2555_v28, %v2556_v26 }
 0x731   : > { %v6870_v19 = vmax.f32 %v2524_v47, %v2525_v59  ;;  %v2558_v27 = vrot.slane %v2557_v51, 4 }
 0x733   : > { %v2564_v16 = vsub.f32 %v6681_v63, %v6870_v19  ;;  %v2566_v45 = vsub.f32 %v6685_v25, %v6870_v19  ;;  %v2568_v31 = vsub.f32 %v6689_v55, %v6870_v19  ;;  %v2570_v47 = vsub.f32 %v6693_v13, %v6870_v19 }
 0x734   : > { %v2572_v40 = vsub.f32 %v6697_v42, %v6870_v19  ;;  %v2574_v63 = vsub.f32 %v6701_v37, %v6870_v19  ;;  %v2576_v55 = vsub.f32 %v6705_v34, %v6870_v19  ;;  %v2559_v15 = vmax.f32 %v2557_v51, %v2558_v27  ;;  %v8664_v42 = vld [vmem:[#allocation17_spill] sm:$0xff]  ;;  %v8665_v34 = vld [vmem:[#allocation16_spill] sm:$0xff] }
 0x735   : > { %v2628_v58 = vmul.f32 1.442695, %v2564_v16  ;;  %v2632_v59 = vmul.f32 1.442695, %v2566_v45  ;;  %v2636_v9 = vmul.f32 1.442695, %v2568_v31  ;;  %v2578_v13 = vsub.f32 %v6709_v2, %v6870_v19 }
 0x736   : > { %v2640_v25 = vmul.f32 1.442695, %v2570_v47  ;;  %v2644_v5 = vmul.f32 1.442695, %v2572_v40  ;;  %v2648_v26 = vmul.f32 1.442695, %v2574_v63  ;;  %v2580_v28 = vsub.f32 %v8664_v42, %v6870_v19 }
 0x737   : > { %4318 = vpow2.f32 %v2628_v58  ;;  %v2652_v16 = vmul.f32 1.442695, %v2576_v55  ;;  %v2560_v45 = vrot.slane %v2559_v15, 2  ;;  %v2582_v37 = vsub.f32 %v6717_v35, %v6870_v19  ;;  %v8668_v27 = vld [vmem:[#allocation13_spill] sm:$0xff] }
 0x738   : > { %4320 = vpow2.f32 %v2632_v59  ;;  %v2656_v31 = vmul.f32 1.442695, %v2578_v13  ;;  %v2584_v47 = vsub.f32 %v8665_v34, %v6870_v19  ;;  %v2660_v51 = vmul.f32 1.442695, %v2580_v28 }
 0x739   : > { %4322 = vpow2.f32 %v2636_v9  ;;  %v2561_v58 = vmax.f32 %v2559_v15, %v2560_v45  ;;  %v2586_v59 = vsub.f32 %v6725_v56, %v6870_v19  ;;  %v2664_v40 = vmul.f32 1.442695, %v2582_v37 }
 0x73a   : > { %4324 = vpow2.f32 %v2640_v25  ;;  %v2588_v35 = vsub.f32 %v8668_v27, %v6870_v19  ;;  %v2668_v63 = vmul.f32 1.442695, %v2584_v47  ;;  %v2590_v15 = vsub.f32 %v6733_v38, %v6870_v19 }
 0x73b   : > { %4326 = vpow2.f32 %v2644_v5  ;;  %v2562_v5 = vrot.slane %v2561_v58, 1  ;;  %v2672_v56 = vmul.f32 1.442695, %v2586_v59  ;;  %v2592_v42 = vsub.f32 %v6737_v11, %v6870_v19 }
 0x73c   : > { %4328 = vpow2.f32 %v2648_v26  ;;  %v2676_v28 = vmul.f32 1.442695, %v2588_v35  ;;  %v2680_v34 = vmul.f32 1.442695, %v2590_v15  ;;  %v2596_v11 = vsub.f32 %v6745_v41, %v6870_v19 }
 0x73d   : > { %4330 = vpow2.f32 %v2652_v16  ;;  %v6919_v37 = vmax.f32 %v2561_v58, %v2562_v5  ;;  %v2598_v59 = vsub.f32 %v6749_v12, %v6870_v19  ;;  %v8672_v12 = vld [vmem:[#allocation36_spill] sm:$0xff] }
 0x73e   : > { %4332 = vpow2.f32 %v2656_v31  ;;  %v8671_v31 = vld [vmem:[#allocation37_spill] sm:$0xff]  ;;  %v2600_v15 = vsub.f32 %v8672_v12, %v6870_v19 }
 0x73f   : > { %4334 = vpow2.f32 %v2660_v51  ;;  %v2594_v38 = vsub.f32 %v8671_v31, %v6870_v19  ;;  %v2565_v35 = vsub.f32 %v6683_v62, %v6919_v37  ;;  %v2567_v5 = vsub.f32 %v6687_v50, %v6919_v37 }
 0x740   : > { %4336 = vpow2.f32 %v2664_v40  ;;  %v2684_v40 = vmul.f32 1.442695, %v2592_v42  ;;  %v2569_v62 = vsub.f32 %v6691_v46, %v6919_v37  ;;  %v2700_v46 = vmul.f32 1.442695, %v2600_v15 }
 0x741   : > { %4338 = vpow2.f32 %v2668_v63  ;;  %v2688_v63 = vmul.f32 1.442695, %v2594_v38  ;;  %v2630_v38 = vmul.f32 1.442695, %v2565_v35  ;;  %v2573_v35 = vsub.f32 %v6699_v23, %v6919_v37 }
 0x742   : > { %4340 = vpow2.f32 %v2672_v56  ;;  %v2692_v56 = vmul.f32 1.442695, %v2596_v11  ;;  %v2634_v11 = vmul.f32 1.442695, %v2567_v5  ;;  %v2608_v23 = vsub.f32 %v6769_v3, %v6870_v19 }
 0x743   : > { %4342 = vpow2.f32 %v2676_v28  ;;  %v2579_v3 = vsub.f32 %v6711_v30, %v6919_v37  ;;  %v8678_v30 = vld [vmem:[#allocation51_spill] sm:$0xff] }
 0x744   : > { %v6897_v2 = vpop.eup %4318  ;;  %4344 = vpow2.f32 %v2680_v34  ;;  %v8674_v34 = vld [vmem:[#allocation20_spill] sm:$0xff] }
 0x745   : > { %8666 = vst [vmem:[#allocation17_spill] sm:$0xff] %v6897_v2  ;;  %v6901_v9 = vpop.eup %4320  ;;  %4346 = vpow2.f32 %v2684_v40 }
 0x746   : > { %8667 = vst [vmem:[#allocation16_spill] sm:$0xff] %v6901_v9  ;;  %v2756_v25 = vadd.f32 %v6901_v9, %v6897_v2  ;;  %v6907_v55 = vpop.eup %4322  ;;  %4348 = vpow2.f32 %v2688_v63  ;;  %v2638_v63 = vmul.f32 1.442695, %v2569_v62 }
 0x747   : > { %8669 = vst [vmem:[#allocation13_spill] sm:$0xff] %v6907_v55  ;;  %v6912_v26 = vpop.eup %4324  ;;  %4350 = vpow2.f32 %v2692_v56  ;;  %v2575_v56 = vsub.f32 %v6703_v33, %v6919_v37  ;;  %v8677_v33 = vld [vmem:[#allocation14_spill] sm:$0xff] }
 0x748   : > { %v2757_v13 = vadd.f32 %v6907_v55, %v2756_v25  ;;  %8670 = vst [vmem:[#allocation56_spill] sm:$0xff] %v6912_v26  ;;  %v6917_v45 = vpop.eup %4326 }
 0x749   : > { %v6924_v51 = vpop.eup %4328 }
 0x74a   : > { %v2758_v16 = vadd.f32 %v6912_v26, %v2757_v13  ;;  %v6931_v27 = vpop.eup %4330  ;;  %v2696_v13 = vmul.f32 1.442695, %v2598_v59  ;;  %v8675_v59 = vld [vmem:[#allocation18_spill] sm:$0xff] }
 0x74b   : > { %v6938_v41 = vpop.eup %4332 }
 0x74c   : > { %v2759_v47 = vadd.f32 %v6917_v45, %v2758_v16  ;;  %v6945_v28 = vpop.eup %4334  ;;  %v8673_v16 = vld [vmem:[#allocation19_spill] sm:$0xff]  ;;  %4352 = vpow2.f32 %v2696_v13 }
 0x74d   : > { %v2602_v31 = vsub.f32 %v8673_v16, %v6870_v19  ;;  %v6952_v40 = vpop.eup %4336  ;;  %4354 = vpow2.f32 %v2630_v38  ;;  %v2646_v38 = vmul.f32 1.442695, %v2573_v35  ;;  %v2716_v35 = vmul.f32 1.442695, %v2608_v23 }
 0x74e   : > { %v2760_v58 = vadd.f32 %v6924_v51, %v2759_v47  ;;  %v2571_v47 = vsub.f32 %v8674_v34, %v6919_v37  ;;  %v6959_v12 = vpop.eup %4338  ;;  %4356 = vpow2.f32 %v2634_v11  ;;  %v2610_v11 = vsub.f32 %v8677_v33, %v6870_v19 }
 0x74f   : > { %v2704_v5 = vmul.f32 1.442695, %v2602_v31  ;;  %v6966_v13 = vpop.eup %4340  ;;  %4358 = vpow2.f32 %v2700_v46  ;;  %v2577_v31 = vsub.f32 %v6707_v10, %v6919_v37  ;;  %v2612_v10 = vsub.f32 %v6777_v0, %v6870_v19 }
 0x750   : > { %v2761_v25 = vadd.f32 %v6931_v27, %v2760_v58  ;;  %v2604_v58 = vsub.f32 %v8675_v59, %v6870_v19  ;;  %v2642_v15 = vmul.f32 1.442695, %v2571_v47  ;;  %4360 = vpow2.f32 %v2638_v63  ;;  %v6973_v59 = vpop.eup %4342 }
 0x751   : > { %4362 = vpow2.f32 %v2704_v5  ;;  %v6980_v46 = vpop.eup %4344  ;;  %v2583_v0 = vsub.f32 %v6719_v8, %v6919_v37  ;;  %v2658_v23 = vmul.f32 1.442695, %v2579_v3  ;;  %v8682_v8 = vld [vmem:[#allocation53_spill] sm:$0xff] }
 0x752   : > { %v2762_v42 = vadd.f32 %v6938_v41, %v2761_v25  ;;  %v2708_v62 = vmul.f32 1.442695, %v2604_v58  ;;  %4364 = vpow2.f32 %v2642_v15  ;;  %v2650_v58 = vmul.f32 1.442695, %v2575_v56  ;;  %v6987_v5 = vpop.eup %4346 }
 0x753   : > { %v2720_v56 = vmul.f32 1.442695, %v2610_v11  ;;  %v2585_v11 = vsub.f32 %v6723_v7, %v6919_v37  ;;  %v2618_v3 = vsub.f32 %v8682_v8, %v6870_v19  ;;  %v8685_v7 = vld [vmem:[#allocation54_spill] sm:$0xff] }
 0x754   : > { %v2763_v50 = vadd.f32 %v6945_v28, %v2762_v42  ;;  %v8676_v42 = vld [vmem:[#allocation15_spill] sm:$0xff]  ;;  %4366 = vpow2.f32 %v2708_v62  ;;  %v6994_v62 = vpop.eup %4348 }
 0x755   : > { %v2606_v16 = vsub.f32 %v8676_v42, %v6870_v19  ;;  %v2581_v42 = vsub.f32 %v6715_v20, %v6919_v37  ;;  %4368 = vpow2.f32 %v2646_v38  ;;  %v8679_v20 = vld [vmem:[#allocation52_spill] sm:$0xff]  ;;  %v6998_v38 = vpop.eup %4350 }
 0x756   : > { %v2764_v25 = vadd.f32 %v6952_v40, %v2763_v50  ;;  %8680 = vst [vmem:[#allocation37_spill] sm:$0xff] %v6998_v38 }
 0x757   : > { %v2712_v47 = vmul.f32 1.442695, %v2606_v16  ;;  %v2654_v16 = vmul.f32 1.442695, %v2577_v31  ;;  %v2724_v31 = vmul.f32 1.442695, %v2612_v10 }
 0x758   : > { %v2765_v34 = vadd.f32 %v6959_v12, %v2764_v25 }
 0x759   : > { %4370 = vpow2.f32 %v2712_v47  ;;  %v2662_v47 = vmul.f32 1.442695, %v2581_v42  ;;  %v2620_v42 = vsub.f32 %v8685_v7, %v6870_v19 }
 0x75a   : > { %v2766_v50 = vadd.f32 %v6966_v13, %v2765_v34  ;;  %v2614_v34 = vsub.f32 %v8678_v30, %v6870_v19  ;;  %4372 = vpow2.f32 %v2650_v58  ;;  %v2666_v30 = vmul.f32 1.442695, %v2583_v0 }
 0x75b   : > { %4374 = vpow2.f32 %v2716_v35  ;;  %v2587_v35 = vsub.f32 %v6727_v18, %v6919_v37 }
 0x75c   : > { %v2767_v25 = vadd.f32 %v6973_v59, %v2766_v50  ;;  %v2616_v50 = vsub.f32 %v8679_v20, %v6870_v19  ;;  %4376 = vpow2.f32 %v2654_v16  ;;  %v2728_v58 = vmul.f32 1.442695, %v2614_v34 }
 0x75d   : > { %4378 = vpow2.f32 %v2720_v56  ;;  %v2589_v56 = vsub.f32 %v6731_v4, %v6919_v37 }
 0x75e   : > { %v2768_v63 = vadd.f32 %v6980_v46, %v2767_v25  ;;  %v7003_v25 = vpop.eup %4352  ;;  %4380 = vpow2.f32 %v2658_v23  ;;  %v2732_v16 = vmul.f32 1.442695, %v2616_v50  ;;  %v8686_v23 = vld [vmem:[#allocation55_spill] sm:$0xff]  ;;  %v2591_v50 = vsub.f32 %v6735_v57, %v6919_v37 }
 0x75f   : > { %8681 = vst [vmem:[#allocation36_spill] sm:$0xff] %v7003_v25  ;;  %4382 = vpow2.f32 %v2724_v31  ;;  %v2622_v8 = vsub.f32 %v8686_v23, %v6870_v19  ;;  %v2736_v31 = vmul.f32 1.442695, %v2618_v3  ;;  %v2740_v23 = vmul.f32 1.442695, %v2620_v42 }
 0x760   : > { %v2769_v15 = vadd.f32 %v6987_v5, %v2768_v63  ;;  %v7007_v63 = vpop.eup %4354  ;;  %4384 = vpow2.f32 %v2662_v47  ;;  %v2674_v47 = vmul.f32 1.442695, %v2587_v35  ;;  %v2593_v3 = vsub.f32 %v6739_v53, %v6919_v37 }
 0x761   : > { %8683 = vst [vmem:[#allocation19_spill] sm:$0xff] %v7007_v63  ;;  %4386 = vpow2.f32 %v2728_v58  ;;  %v2595_v42 = vsub.f32 %v6743_v29, %v6919_v37 }
 0x762   : > { %v2770_v33 = vadd.f32 %v6994_v62, %v2769_v15  ;;  %v7012_v15 = vpop.eup %4356  ;;  %4388 = vpow2.f32 %v2666_v30  ;;  %v2686_v29 = vmul.f32 1.442695, %v2593_v3  ;;  %v2601_v3 = vsub.f32 %v6755_v21, %v6919_v37 }
 0x763   : > { %8684 = vst [vmem:[#allocation20_spill] sm:$0xff] %v7012_v15  ;;  %v7018_v34 = vpop.eup %4358  ;;  %v2793_v18 = vadd.f32 %v7012_v15, %v7007_v63  ;;  %4390 = vpow2.f32 %v2732_v16 }
 0x764   : > { %v2771_v10 = vadd.f32 %v6998_v38, %v2770_v33  ;;  %v2670_v33 = vmul.f32 1.442695, %v2585_v11  ;;  %v7023_v0 = vpop.eup %4360 }
 0x765   : > { %v7029_v4 = vpop.eup %4362  ;;  %v2794_v11 = vadd.f32 %v7023_v0, %v2793_v18  ;;  %v2626_v18 = vsub.f32 %v6846_v52, %v6870_v19  ;;  %v2597_v52 = vsub.f32 %v6747_v22, %v6919_v37  ;;  %v2690_v22 = vmul.f32 1.442695, %v2595_v42 }
 0x766   : > { %v2772_v20 = vadd.f32 %v7003_v25, %v2771_v10  ;;  %v7033_v10 = vpop.eup %4364  ;;  %v2624_v25 = vsub.f32 %v6834_v14, %v6870_v19  ;;  %4392 = vpow2.f32 %v2670_v33  ;;  %v2744_v14 = vmul.f32 1.442695, %v2622_v8 }
 0x767   : > { %8687 = vst [vmem:[#allocation18_spill] sm:$0xff] %v7033_v10  ;;  %v7039_v58 = vpop.eup %4366  ;;  %v2795_v35 = vadd.f32 %v7033_v10, %v2794_v11  ;;  %4394 = vpow2.f32 %v2736_v31  ;;  %v2603_v42 = vsub.f32 %v6759_v48, %v6919_v37 }
 0x768   : > { %v2773_v7 = vadd.f32 %v7018_v34, %v2772_v20  ;;  %v2678_v20 = vmul.f32 1.442695, %v2589_v56  ;;  %v7043_v30 = vpop.eup %4368  ;;  %4396 = vpow2.f32 %v2674_v47  ;;  %v2748_v11 = vmul.f32 1.442695, %v2624_v25 }
 0x769   : > { %v7049_v16 = vpop.eup %4370  ;;  %v2796_v56 = vadd.f32 %v7043_v30, %v2795_v35  ;;  %4398 = vpow2.f32 %v2740_v23  ;;  %v2599_v47 = vsub.f32 %v6751_v43, %v6919_v37  ;;  %v2694_v43 = vmul.f32 1.442695, %v2597_v52 }
 0x76a   : > { %v2774_v57 = vadd.f32 %v7029_v4, %v2773_v7  ;;  %v2682_v7 = vmul.f32 1.442695, %v2591_v50  ;;  %v7053_v33 = vpop.eup %4372  ;;  %4400 = vpow2.f32 %v2678_v20  ;;  %v2752_v50 = vmul.f32 1.442695, %v2626_v18 }
 0x76b   : > { %v7057_v19 = vpop.eup %4374  ;;  %v2797_v31 = vadd.f32 %v7053_v33, %v2796_v56  ;;  %4402 = vpow2.f32 %v2744_v14  ;;  %v2698_v21 = vmul.f32 1.442695, %v2599_v47  ;;  %v2605_v52 = vsub.f32 %v6763_v32, %v6919_v37 }
 0x76c   : > { %v2775_v53 = vadd.f32 %v7039_v58, %v2774_v57  ;;  %v7061_v57 = vpop.eup %4376  ;;  %4404 = vpow2.f32 %v2682_v7  ;;  %v2607_v47 = vsub.f32 %v6767_v60, %v6919_v37 }
 0x76d   : > { %v7065_v23 = vpop.eup %4378  ;;  %v2798_v35 = vadd.f32 %v7061_v57, %v2797_v31  ;;  %4406 = vpow2.f32 %v2748_v11 }
 0x76e   : > { %v2776_v8 = vadd.f32 %v7049_v16, %v2775_v53  ;;  %v7069_v53 = vpop.eup %4380  ;;  %4408 = vpow2.f32 %v2686_v29 }
 0x76f   : > { %v7073_v20 = vpop.eup %4382  ;;  %v2799_v14 = vadd.f32 %v7069_v53, %v2798_v35  ;;  %4410 = vpow2.f32 %v2752_v50 }
 0x770   : > { %v2777_v25 = vadd.f32 %v7057_v19, %v2776_v8  ;;  %v7077_v56 = vpop.eup %4384  ;;  %4412 = vpow2.f32 %v2690_v22 }
 0x771   : > { %v7081_v7 = vpop.eup %4386  ;;  %v2800_v8 = vadd.f32 %v7077_v56, %v2799_v14  ;;  %4414 = vpow2.f32 %v2694_v43  ;;  %v2706_v14 = vmul.f32 1.442695, %v2603_v42  ;;  %v2611_v42 = vsub.f32 %v6775_v61, %v6919_v37 }
 0x772   : > { %v2778_v18 = vadd.f32 %v7065_v23, %v2777_v25  ;;  %v7085_v31 = vpop.eup %4388  ;;  %v2702_v25 = vmul.f32 1.442695, %v2601_v3  ;;  %4416 = vpow2.f32 %v2698_v21  ;;  %v2609_v3 = vsub.f32 %v6771_v6, %v6919_v37 }
 0x773   : > { %v7089_v29 = vpop.eup %4390  ;;  %v2801_v48 = vadd.f32 %v7085_v31, %v2800_v8  ;;  %v2710_v8 = vmul.f32 1.442695, %v2605_v52  ;;  %v2613_v52 = vsub.f32 %v6783_v49, %v6919_v37 }
 0x774   : > { %v2779_v11 = vadd.f32 %v7073_v20, %v2778_v18  ;;  %v7093_v35 = vpop.eup %4392  ;;  %4418 = vpow2.f32 %v2702_v25 }
 0x775   : > { %v7097_v22 = vpop.eup %4394  ;;  %v2802_v32 = vadd.f32 %v7093_v35, %v2801_v48  ;;  %4420 = vpow2.f32 %v2706_v14  ;;  %v2714_v48 = vmul.f32 1.442695, %v2607_v47  ;;  %v2615_v47 = vsub.f32 %v6791_v39, %v6919_v37 }
 0x776   : > { %v2780_v50 = vadd.f32 %v7081_v7, %v2779_v11  ;;  %v7101_v38 = vpop.eup %4396  ;;  %4422 = vpow2.f32 %v2710_v8 }
 0x777   : > { %v7105_v43 = vpop.eup %4398  ;;  %v2803_v60 = vadd.f32 %v7101_v38, %v2802_v32  ;;  %v2718_v32 = vmul.f32 1.442695, %v2609_v3  ;;  %4424 = vpow2.f32 %v2714_v48  ;;  %v2617_v3 = vsub.f32 %v6799_v44, %v6919_v37 }
 0x778   : > { %v2781_v18 = vadd.f32 %v7089_v29, %v2780_v50  ;;  %v7109_v9 = vpop.eup %4400  ;;  %v2621_v44 = vsub.f32 %v6815_v1, %v6919_v37  ;;  %v2625_v1 = vsub.f32 %v6840_v36, %v6919_v37 }
 0x779   : > { %v7113_v21 = vpop.eup %4402  ;;  %v2804_v6 = vadd.f32 %v7109_v9, %v2803_v60  ;;  %v2722_v60 = vmul.f32 1.442695, %v2611_v42  ;;  %4426 = vpow2.f32 %v2718_v32  ;;  %v2730_v42 = vmul.f32 1.442695, %v2615_v47 }
 0x77a   : > { %v2782_v11 = vadd.f32 %v7097_v22, %v2781_v18  ;;  %v7117_v2 = vpop.eup %4404  ;;  %v2750_v36 = vmul.f32 1.442695, %v2625_v1 }
 0x77b   : > { %v7121_v25 = vpop.eup %4406  ;;  %v2805_v61 = vadd.f32 %v7117_v2, %v2804_v6  ;;  %4428 = vpow2.f32 %v2722_v60 }
 0x77c   : > { %v2783_v50 = vadd.f32 %v7105_v43, %v2782_v11  ;;  %v7125_v15 = vpop.eup %4408 }
 0x77d   : > { %v7129_v14 = vpop.eup %4410  ;;  %v2806_v49 = vadd.f32 %v7125_v15, %v2805_v61 }
 0x77e   : > { %v2784_v18 = vadd.f32 %v7113_v21, %v2783_v50  ;;  %v7133_v63 = vpop.eup %4412  ;;  %v2726_v50 = vmul.f32 1.442695, %v2613_v52  ;;  %v2734_v52 = vmul.f32 1.442695, %v2617_v3  ;;  %v2742_v3 = vmul.f32 1.442695, %v2621_v44 }
 0x77f   : > { %v2807_v6 = vadd.f32 %v7133_v63, %v2806_v49  ;;  %v7139_v39 = vpop.eup %4414 }
 0x780   : > { %v2785_v11 = vadd.f32 %v7121_v25, %v2784_v18  ;;  %8688 = vst [vmem:[#allocation15_spill] sm:$0xff] %v7139_v39  ;;  %v2619_v18 = vsub.f32 %v6807_v54, %v6919_v37  ;;  %v7144_v26 = vpop.eup %4416  ;;  %4430 = vpow2.f32 %v2726_v50  ;;  %v2623_v54 = vsub.f32 %v6828_v17, %v6919_v37 }
 0x781   : > { %v2808_v61 = vadd.f32 %v7139_v39, %v2807_v6  ;;  %8689 = vst [vmem:[#allocation14_spill] sm:$0xff] %v7144_v26  ;;  %v7149_v49 = vpop.eup %4418  ;;  %4432 = vpow2.f32 %v2730_v42  ;;  %v2627_v17 = vsub.f32 %v6866_v24, %v6919_v37 }
 0x782   : > { %v2786_v8 = vadd.f32 %v7129_v14, %v2785_v11  ;;  %v2738_v47 = vmul.f32 1.442695, %v2619_v18  ;;  %v7154_v6 = vpop.eup %4420  ;;  %4434 = vpow2.f32 %v2734_v52 }
 0x783   : > { %v2809_v32 = vadd.f32 %v7144_v26, %v2808_v61  ;;  %v2746_v61 = vmul.f32 1.442695, %v2623_v54 }
 0x784   : > { %v2787_v48 = vrot.slane %v2786_v8, 4  ;;  %4436 = vpow2.f32 %v2738_v47 }
 0x785   : > { %v2810_v60 = vadd.f32 %v7149_v49, %v2809_v32  ;;  %4438 = vpow2.f32 %v2742_v3 }
 0x786   : > { %v2788_v11 = vadd.f32 %v2787_v48, %v2786_v8  ;;  %v7159_v48 = vpop.eup %4422  ;;  %4440 = vpow2.f32 %v2746_v61 }
 0x787   : > { %v2811_v50 = vadd.f32 %v7154_v6, %v2810_v60  ;;  %v7164_v42 = vpop.eup %4424 }
 0x788   : > { %v2789_v55 = vrot.slane %v2788_v11, 2  ;;  %v7167_v44 = vpop.eup %4426 }
 0x789   : > { %v2812_v18 = vadd.f32 %v7159_v48, %v2811_v50  ;;  %v7170_v54 = vpop.eup %4428 }
 0x78a   : > { %v2790_v8 = vadd.f32 %v2789_v55, %v2788_v11  ;;  %v2754_v11 = vmul.f32 1.442695, %v2627_v17 }
 0x78b   : > { %v2813_v55 = vadd.f32 %v7164_v42, %v2812_v18 }
 0x78c   : > { %v2791_v26 = vrot.slane %v2790_v8, 1 }
 0x78d   : > { %v2814_v52 = vadd.f32 %v7167_v44, %v2813_v55  ;;  %v7173_v37 = vpop.eup %4430 }
 0x78e   : > { %v2792_v32 = vadd.f32 %v2791_v26, %v2790_v8  ;;  %v7176_v47 = vpop.eup %4432 }
 0x78f   : > { %v2815_v24 = vadd.f32 %v7170_v54, %v2814_v52  ;;  %v7179_v1 = vpop.eup %4434 }
 0x790   : > { %4442 = vrcp.f32 %v2792_v32 }
 0x791   : > { %4444 = vpow2.f32 %v2750_v36  ;;  %v2816_v26 = vadd.f32 %v7173_v37, %v2815_v24  ;;  %v7182_v3 = vpop.eup %4436 }
 0x792   : > { %4446 = vpow2.f32 %v2754_v11  ;;  %v4439_v61 = vpop.eup %4438 }
 0x793   : > { %v2817_v60 = vadd.f32 %v7176_v47, %v2816_v26  ;;  %v4441_v17 = vpop.eup %4440 }
 0x795   : > { %v2818_v8 = vadd.f32 %v7179_v1, %v2817_v60 }
 0x797   : > { %v2819_v50 = vadd.f32 %v7182_v3, %v2818_v8 }
 0x799   : > { %v2820_v18 = vadd.f32 %v4439_v61, %v2819_v50 }
 0x79b   : > { %v2821_v36 = vadd.f32 %v4441_v17, %v2820_v18 }
 0x79d   : > { %v7185_v32 = vpop.eup %4442 }
 0x79e   : > { %v2860_v55 = vmul.f32 %v7185_v32, %v6987_v5  ;;  %v2862_v11 = vmul.f32 %v7185_v32, %v6994_v62  ;;  %v4445_v52 = vpop.eup %4444  ;;  %v7193_v8 = vmul.f32 %v7185_v32, %v7121_v25  ;;  %v7197_v50 = vmul.f32 %v7185_v32, %v7129_v14 }
 0x79f   : > { %v2822_v24 = vadd.f32 %v4445_v52, %v2821_v36  ;;  %v4447_v60 = vpop.eup %4446  ;;  %v7201_v5 = vmul.f32 %v7185_v32, %v7105_v43  ;;  %v7205_v62 = vmul.f32 %v7185_v32, %v7113_v21  ;;  %v7211_v25 = vmul.f32 %v7185_v32, %v7089_v29 }
 0x7a0   : > { %v2910_v26 = vpack.c.bf16 %v2862_v11, %v2860_v55  ;;  %v7215_v14 = vmul.f32 %v7185_v32, %v7097_v22  ;;  %v7221_v55 = vmul.f32 %v7185_v32, %v7073_v20  ;;  %v7229_v21 = vmul.f32 %v7185_v32, %v7057_v19 }
 0x7a1   : > { %v2823_v39 = vadd.f32 %v4447_v60, %v2822_v24  ;;  %v7239_v20 = vmul.f32 %v7185_v32, %v7039_v58  ;;  %v7245_v11 = vmul.f32 %v7185_v32, %v7049_v16  ;;  %v7249_v19 = vmul.f32 %v7185_v32, %v7018_v34 }
 0x7a2   : > { %v7253_v24 = vmul.f32 %v7185_v32, %v7029_v4 }
 0x7a3   : > { %v2824_v10 = vrot.slane %v2823_v39, 4  ;;  %v2916_v22 = vpack.c.bf16 %v7245_v11, %v7239_v20  ;;  %v8708_v20 = vld [vmem:[#allocation24_spill] sm:$0xff] }
 0x7a5   : > { %v2825_v18 = vadd.f32 %v2824_v10, %v2823_v39  ;;  %v7225_v10 = vmul.f32 %v7185_v32, %v7081_v7  ;;  %v7235_v39 = vmul.f32 %v7185_v32, %v7065_v23  ;;  %v2856_v7 = vmul.f32 %v7185_v32, %v6973_v59 }
 0x7a7   : > { %v2826_v29 = vrot.slane %v2825_v18, 2  ;;  %v2918_v58 = vpack.c.bf16 %v7235_v39, %v7229_v21  ;;  %v8705_v21 = vld [vmem:[#allocation28_spill] sm:$0xff] }
 0x7a8   : > { %v2988_v39 = vmul.f32 0.17677669, %v8705_v21 }
 0x7a9   : > { %v2827_v23 = vadd.f32 %v2826_v29, %v2825_v18 }
 0x7ab   : > { %v2828_v16 = vrot.slane %v2827_v23, 1 }
 0x7ad   : > { %v2829_v43 = vadd.f32 %v2828_v16, %v2827_v23 }
 0x7af   : > { %4448 = vrcp.f32 %v2829_v43  ;;  %v2858_v43 = vmul.f32 %v7185_v32, %v6980_v46 }
 0x7b1   : > { %v2908_v59 = vpack.c.bf16 %v2858_v43, %v2856_v7 }
 0x7bc   : > { %v7261_v36 = vpop.eup %4448 }
 0x7bd   : > { %v2861_v34 = vmul.f32 %v7261_v36, %v7125_v15  ;;  %v2863_v4 = vmul.f32 %v7261_v36, %v7133_v63  ;;  %v2857_v18 = vmul.f32 %v7261_v36, %v7109_v9  ;;  %v2859_v29 = vmul.f32 %v7261_v36, %v7117_v2 }
 0x7be   : > { %v2853_v15 = vmul.f32 %v7261_v36, %v7093_v35  ;;  %v2855_v63 = vmul.f32 %v7261_v36, %v7101_v38  ;;  %v2852_v9 = vmul.f32 %v7185_v32, %v6959_v12  ;;  %v2854_v2 = vmul.f32 %v7185_v32, %v6966_v13 }
 0x7bf   : > { %v2911_v23 = vpack.c.bf16 %v2863_v4, %v2861_v34  ;;  %v2909_v16 = vpack.c.bf16 %v2859_v29, %v2857_v18  ;;  %v2849_v46 = vmul.f32 %v7261_v36, %v7077_v56  ;;  %v7286_v34 = vmul.f32 %v7261_v36, %v4445_v52 }
 0x7c0   : > { %v7289_v35 = vmul.f32 %v7261_v36, %v4447_v60  ;;  %v2851_v38 = vmul.f32 %v7261_v36, %v7085_v31  ;;  %v7294_v12 = vmul.f32 %v7261_v36, %v4439_v61  ;;  %v7297_v13 = vmul.f32 %v7261_v36, %v4441_v17 }
 0x7c1   : > { %2928 = vmatprep.subr.bf16.mxu1 %v2911_v23  ;;  %v2907_v56 = vpack.c.bf16 %v2855_v63, %v2853_v15  ;;  %v2887_v60 = vmul.f32 %v7261_v36, %v7182_v3  ;;  %v2881_v31 = vmul.f32 %v7261_v36, %v7173_v37  ;;  %v2883_v17 = vmul.f32 %v7261_v36, %v7176_v47 }
 0x7c2   : > { %2929 = vmatpush1.bf16.msra.mxu1 %v2910_v26  ;;  %v7301_v26 = vmul.f32 %v7261_v36, %v7179_v1  ;;  %v2927_v52 = vpack.c.bf16 %v7289_v35, %v7286_v34  ;;  %v2925_v61 = vpack.c.bf16 %v7297_v13, %v7294_v12  ;;  %v2877_v1 = vmul.f32 %v7261_v36, %v7167_v44  ;;  %v8693_v13 = vld [vmem:[#allocation19_spill] sm:$0xff] }
 0x7c3   : > { %2930 = vmatprep.subr.bf16.mxu1 %v2909_v16  ;;  %v2879_v7 = vmul.f32 %v7261_v36, %v7170_v54  ;;  %v2873_v3 = vmul.f32 %v7261_v36, %v7159_v48  ;;  %v2875_v37 = vmul.f32 %v7261_v36, %v7164_v42  ;;  %v2869_v18 = vmul.f32 %v7261_v36, %v7149_v49 }
 0x7c4   : > { %v2923_v4 = vpack.c.bf16 %v2887_v60, %v7301_v26  ;;  %v2921_v47 = vpack.c.bf16 %v2883_v17, %v2881_v31  ;;  %v2871_v44 = vmul.f32 %v7261_v36, %v7154_v6  ;;  %v2906_v43 = vpack.c.bf16 %v2854_v2, %v2852_v9  ;;  %v8694_v26 = vld [vmem:[#allocation20_spill] sm:$0xff]  ;;  %v8695_v60 = vld [vmem:[#allocation17_spill] sm:$0xff] }
 0x7c5   : > { %v2919_v29 = vpack.c.bf16 %v2879_v7, %v2877_v1  ;;  %v2848_v54 = vmul.f32 %v7185_v32, %v6945_v28  ;;  %v2850_v23 = vmul.f32 %v7185_v32, %v6952_v40  ;;  %v2917_v48 = vpack.c.bf16 %v2875_v37, %v2873_v3  ;;  %v8696_v17 = vld [vmem:[#allocation16_spill] sm:$0xff] }
 0x7c6   : > { %2931 = vmatpush1.bf16.msra.mxu1 %v2908_v59  ;;  %v2905_v16 = vpack.c.bf16 %v2851_v38, %v2849_v46  ;;  %v2845_v42 = vmul.f32 %v7261_v36, %v7061_v57  ;;  %v2847_v49 = vmul.f32 %v7261_v36, %v7069_v53  ;;  %v2915_v15 = vpack.c.bf16 %v2871_v44, %v2869_v18  ;;  %v8690_v46 = vld [vmem:[#allocation18_spill] sm:$0xff]  ;;  %v8692_v38 = vld [vmem:[#allocation56_spill] sm:$0xff] }
 0x7c7   : > { %2932 = vmatprep.subr.bf16.mxu1 %v2907_v56  ;;  %v2904_v63 = vpack.c.bf16 %v2850_v23, %v2848_v54  ;;  %v2844_v6 = vmul.f32 %v7185_v32, %v6931_v27  ;;  %v2846_v28 = vmul.f32 %v7185_v32, %v6938_v41  ;;  %v2841_v40 = vmul.f32 %v7261_v36, %v7043_v30  ;;  %v8711_v23 = vld [vmem:[#allocation38_spill] sm:$0xff] }
 0x7c8   : > { %v2903_v9 = vpack.c.bf16 %v2847_v49, %v2845_v42  ;;  %v2843_v57 = vmul.f32 %v7261_v36, %v7053_v33  ;;  %v2840_v2 = vmul.f32 %v7185_v32, %v6917_v45  ;;  %v2842_v59 = vmul.f32 %v7185_v32, %v6924_v51  ;;  %v8691_v33 = vld [vmem:[#allocation13_spill] sm:$0xff]  ;;  %v8714_v42 = vld [vmem:[#allocation35_spill] sm:$0xff]  ;;  %v8717_v49 = vld [vmem:[#allocation26_spill] sm:$0xff] }
 0x7c9   : > { %v2902_v53 = vpack.c.bf16 %v2846_v28, %v2844_v6  ;;  %v2837_v41 = vmul.f32 %v7261_v36, %v7023_v0  ;;  %v2839_v34 = vmul.f32 %v7261_v36, %v8690_v46  ;;  %v2836_v35 = vmul.f32 %v7185_v32, %v8691_v33  ;;  %v8720_v6 = vld [vmem:[#allocation22_spill] sm:$0xff] }
 0x7ca   : > { %2933 = vmatpush1.bf16.msra.mxu1 %v2906_v43  ;;  %v2901_v27 = vpack.c.bf16 %v2843_v57, %v2841_v40  ;;  %v2900_v30 = vpack.c.bf16 %v2842_v59, %v2840_v2  ;;  %v2838_v12 = vmul.f32 %v7185_v32, %v8692_v38  ;;  %v2833_v51 = vmul.f32 %v7261_v36, %v8693_v13  ;;  %v8723_v40 = vld [vmem:[#allocation43_spill] sm:$0xff]  ;;  %v3009_v2 = vpop.trf.xlu0 }
 0x7cb   : > { %2934 = vmatprep.subr.bf16.mxu1 %v2905_v16  ;;  %v2899_v45 = vpack.c.bf16 %v2839_v34, %v2837_v41  ;;  %v2835_v56 = vmul.f32 %v7261_v36, %v8694_v26  ;;  %v2832_v31 = vmul.f32 %v7185_v32, %v8695_v60  ;;  %v2834_v1 = vmul.f32 %v7185_v32, %v8696_v17  ;;  %v8713_v16 = vld [vmem:[#allocation12_spill] sm:$0xff] }
 0x7cc   : > { %v2898_v0 = vpack.c.bf16 %v2838_v12, %v2836_v35  ;;  %v8697_v37 = vpack.c.bf16 %v7197_v50, %v7193_v8  ;;  %v8698_v18 = vpack.c.bf16 %v7205_v62, %v7201_v5  ;;  %v8699_v44 = vpack.c.bf16 %v7215_v14, %v7211_v25  ;;  %v8701_v8 = vld [vmem:[#allocation15_spill] sm:$0xff]  ;;  %v8702_v5 = vld [vmem:[#allocation14_spill] sm:$0xff]  ;;  %v8703_v25 = vld [vmem:[#allocation37_spill] sm:$0xff]  ;;  %v3025_v35 = vpop.trf.xlu1 }
 0x7cd   : > { %v2897_v7 = vpack.c.bf16 %v2835_v56, %v2833_v51  ;;  %v2896_v3 = vpack.c.bf16 %v2834_v1, %v2832_v31  ;;  %v8700_v43 = vpack.c.bf16 %v7225_v10, %v7221_v55  ;;  %v2865_v50 = vmul.f32 %v7261_v36, %v8701_v8  ;;  %v8704_v55 = vld [vmem:[#allocation36_spill] sm:$0xff] }
 0x7ce   : > { %2935 = vmatpush1.bf16.msra.mxu1 %v2904_v63  ;;  %v2867_v62 = vmul.f32 %v7261_v36, %v8702_v5  ;;  %v2864_v14 = vmul.f32 %v7185_v32, %v8703_v25  ;;  %v2866_v10 = vmul.f32 %v7185_v32, %v8704_v55  ;;  %v8710_v32 = vld [vmem:[#allocation42_spill] sm:$0xff]  ;;  %v8719_v63 = vld [vmem:[#allocation23_spill] sm:$0xff]  ;;  %v3010_v59 = vpop.trf.xlu0 }
 0x7cf   : > { %2936 = vmatprep.subr.bf16.mxu1 %v2903_v9  ;;  %v8721_v28 = vpack.c.bf16 %v8719_v63, %v8720_v6  ;;  %v8722_v9 = vld [vmem:[#allocation29_spill] sm:$0xff] }
 0x7d0   : > { %v8724_v57 = vpack.c.bf16 %v8722_v9, %v8723_v40  ;;  %v3026_v38 = vpop.trf.xlu1 }
 0x7d2   : > { %2937 = vmatpush1.bf16.msra.mxu1 %v2902_v53  ;;  %v8725_v53 = vmov 0  }
 0x7d3   : > { %2938 = vmatprep.subr.bf16.mxu1 %v2901_v27  ;;  %v3011_v27 = vpop.trf.xlu0 }
 0x7d4   : > { %v3027_v12 = vpop.trf.xlu1 }
 0x7d6   : > { %2939 = vmatpush1.bf16.msra.mxu1 %v2900_v30 }
 0x7d7   : > { %2940 = vmatprep.subr.bf16.mxu1 %v2899_v45  ;;  %v3012_v41 = vpop.trf.xlu0 }
 0x7d8   : > { %v3028_v45 = vpop.trf.xlu1 }
 0x7da   : > { %2941 = vmatpush1.bf16.msra.mxu1 %v2898_v0 }
 0x7db   : > { %2942 = vmatprep.subr.bf16.mxu1 %v2897_v7  ;;  %v3013_v46 = vpop.trf.xlu0 }
 0x7dc   : > { %v3029_v13 = vpop.trf.xlu1 }
 0x7de   : > { %2943 = vmatpush1.bf16.msra.mxu1 %v2896_v3 }
 0x7df   : > { %2944 = vmatprep.subr.bf16.mxu1 %v2927_v52  ;;  %v8706_v52 = vpack.c.bf16 %v7253_v24, %v7249_v19  ;;  %v8715_v19 = vpack.c.bf16 %v8713_v16, %v8714_v42  ;;  %v8716_v24 = vld [vmem:[#allocation27_spill] sm:$0xff]  ;;  %v3014_v34 = vpop.trf.xlu0 }
 0x7e0   : > { %v3030_v51 = vpop.trf.xlu1 }
 0x7e2   : > { %2945 = vmatpush2.bf16.msra.mxu1 %v8697_v37 }
 0x7e3   : > { %2946 = vmatprep.subr.bf16.mxu1 %v2925_v61  ;;  %v8707_v61 = vld [vmem:[#allocation25_spill] sm:$0xff]  ;;  %v3015_v30 = vpop.trf.xlu0 }
 0x7e4   : > { %v2986_v36 = vmul.f32 0.17677669, %v8707_v61  ;;  %v3031_v26 = vpop.trf.xlu1 }
 0x7e6   : > { %2947 = vmatpush2.bf16.msra.mxu1 %v8698_v18  ;;  %v2992_v11 = vpack.c.bf16 %v2988_v39, %v2986_v36 }
 0x7e7   : > { %2948 = vmatprep.subr.bf16.mxu1 %v2923_v4  ;;  %v2912_v4 = vpack.c.bf16 %v2866_v10, %v2864_v14  ;;  %v3016_v33 = vpop.trf.xlu0 }
 0x7e8   : > { %v3032_v56 = vpop.trf.xlu1 }
 0x7ea   : > { %2949 = vmatpush2.bf16.msra.mxu1 %v8699_v44 }
 0x7eb   : > { %2950 = vmatprep.subr.bf16.mxu1 %v2921_v47  ;;  %v8709_v47 = vld [vmem:[#allocation21_spill] sm:$0xff] }
 0x7ee   : > { %2951 = vmatpush2.bf16.msra.mxu1 %v8700_v43 }
 0x7ef   : > { %2952 = vmatprep.subr.bf16.mxu1 %v2919_v29  ;;  %v2982_v29 = vmul.f32 0.17677669, %v8709_v47 }
 0x7f2   : > { %2953 = vmatpush2.bf16.msra.mxu1 %v2918_v58  ;;  %v2913_v58 = vpack.c.bf16 %v2867_v62, %v2865_v50 }
 0x7f3   : > { %2954 = vmatprep.subr.bf16.mxu1 %v2917_v48  ;;  %v8712_v48 = vpack.c.bf16 %v8710_v32, %v8711_v23 }
 0x7f6   : > { %2955 = vmatpush2.bf16.msra.mxu1 %v2916_v22  ;;  %v2984_v22 = vmul.f32 0.17677669, %v8708_v20 }
 0x7f7   : > { %2956 = vmatprep.subr.bf16.mxu1 %v2915_v15  ;;  %v8718_v15 = vpack.c.bf16 %v8716_v24, %v8717_v49 }
 0x7f8   : > { %v2990_v54 = vpack.c.bf16 %v2984_v22, %v2982_v29 }
 0x7fa   : > { %2957 = vmatpush2.bf16.msra.mxu1 %v8706_v52 }
 0x7fb   : > { %2958 = vmatprep.subr.bf16.mxu1 %v2913_v58 }
 0x7fe   : > { %2959 = vmatpush2.bf16.msra.mxu1 %v2912_v4 }
 0x7ff   : > { %3093 = vmatprep.subr.bf16.mxu1 %v2992_v11 }
 0x801   : > { %2961 = vmatmul.mubr.bf16.vlgmr.msra.gmra.mxu1 %v8712_v48 }
 0x802   : > { %2970 = vmatprep.mubr.bf16.mxu1 %v8715_v19  ;;  %3094 = vmatpush1.bf16.msra.mxu1 %v8718_v15 }
 0x803   : > { %3095 = vmatprep.subr.bf16.mxu1 %v2990_v54 }
 0x806   : > { %3096 = vmatpush1.bf16.msra.mxu1 %v8721_v28 }
 0x809   : > { %2971 = vmatmul.mubr.bf16.gmra.mxu1 %v8724_v57 }
 0x80a   : > { %3113 = vmatprep.mubr.bf16.mxu1 %v8725_v53 }
 0x811   : > { %3989 = vmatmul.mubr.msk.bf16.vlgmr.msra.gmra.mxu1 %vm680_vm2, %v3009_v2 }
 0x812   : > { %3123 = vmatprep.mubr.bf16.mxu1 %v8725_v53 }
 0x819   : > { %3990 = vmatmul.mubr.msk.bf16.gmra.mxu1 %vm680_vm2, %v3010_v59 }
 0x81a   : > { %3133 = vmatprep.mubr.bf16.mxu1 %v8725_v53 }
 0x821   : > { %3991 = vmatmul.mubr.msk.bf16.gmra.mxu1 %vm680_vm2, %v3011_v27 }
 0x822   : > { %3143 = vmatprep.mubr.bf16.mxu1 %v8725_v53 }
 0x829   : > { %3992 = vmatmul.mubr.msk.bf16.gmra.mxu1 %vm680_vm2, %v3012_v41 }
 0x82a   : > { %3153 = vmatprep.mubr.bf16.mxu1 %v8725_v53 }
 0x831   : > { %3993 = vmatmul.mubr.msk.bf16.gmra.mxu1 %vm680_vm2, %v3013_v46 }
 0x832   : > { %3163 = vmatprep.mubr.bf16.mxu1 %v8725_v53 }
 0x839   : > { %3994 = vmatmul.mubr.msk.bf16.gmra.mxu1 %vm680_vm2, %v3014_v34 }
 0x83a   : > { %3173 = vmatprep.mubr.bf16.mxu1 %v8725_v53 }
 0x841   : > { %3995 = vmatmul.mubr.msk.bf16.gmra.mxu1 %vm680_vm2, %v3015_v30 }
 0x842   : > { %3183 = vmatprep.mubr.bf16.mxu1 %v8725_v53 }
 0x849   : > { %3996 = vmatmul.mubr.msk.bf16.gmra.mxu1 %vm680_vm2, %v3016_v33 }
 0x84a   : > { %3193 = vmatprep.mubr.bf16.mxu1 %v8725_v53 }
 0x851   : > { %3997 = vmatmul.mubr.msk.bf16.gmra.mxu1 %vm680_vm2, %v3025_v35 }
 0x852   : > { %3203 = vmatprep.mubr.bf16.mxu1 %v8725_v53 }
 0x859   : > { %3998 = vmatmul.mubr.msk.bf16.gmra.mxu1 %vm680_vm2, %v3026_v38 }
 0x85a   : > { %3213 = vmatprep.mubr.bf16.mxu1 %v8725_v53 }
 0x861   : > { %3999 = vmatmul.mubr.msk.bf16.gmra.mxu1 %vm680_vm2, %v3027_v12 }
 0x862   : > { %3223 = vmatprep.mubr.bf16.mxu1 %v8725_v53 }
 0x869   : > { %4000 = vmatmul.mubr.msk.bf16.gmra.mxu1 %vm680_vm2, %v3028_v45 }
 0x86a   : > { %3233 = vmatprep.mubr.bf16.mxu1 %v8725_v53 }
 0x871   : > { %4001 = vmatmul.mubr.msk.bf16.gmra.mxu1 %vm680_vm2, %v3029_v13 }
 0x872   : > { %3243 = vmatprep.mubr.bf16.mxu1 %v8725_v53 }
 0x879   : > { %4002 = vmatmul.mubr.msk.bf16.gmra.mxu1 %vm680_vm2, %v3030_v51 }
 0x87a   : > { %3253 = vmatprep.mubr.bf16.mxu1 %v8725_v53 }
 0x881   : > { %4003 = vmatmul.mubr.msk.bf16.gmra.mxu1 %vm680_vm2, %v3031_v26 }
 0x882   : > { %3263 = vmatprep.mubr.bf16.mxu1 %v8725_v53 }
 0x889   : > { %4004 = vmatmul.mubr.msk.bf16.gmra.mxu1 %vm680_vm2, %v3032_v56 }
 0x8c1   : > { %v7442_v0 = vpop.f32.mrf.mxu1 }
 0x8c2   : > { %8726 = vst [vmem:[#allocation51_spill] sm:$0xff] %v7442_v0 }
 0x8c3   : > { %v7444_v60 = vpop.f32.mrf.mxu1 }
 0x8c4   : > { %8727 = vst [vmem:[#allocation52_spill] sm:$0xff] %v7444_v60 }
 0x8c5   : > { %v7446_v31 = vpop.f32.mrf.mxu1 }
 0x8c6   : > { %8728 = vst [vmem:[#allocation53_spill] sm:$0xff] %v7446_v31 }
 0x8c7   : > { %v7450_v1 = vpop.f32.mrf.mxu1 }
 0x8c8   : > { %8729 = vst [vmem:[#allocation54_spill] sm:$0xff] %v7450_v1 }
 0x8c9   : > { %v7454_v3 = vpop.f32.mrf.mxu1 }
 0x8ca   : > { %8730 = vst [vmem:[#allocation55_spill] sm:$0xff] %v7454_v3 }
 0x8cb   : > { %v7456_v37 = vpop.f32.mrf.mxu1 }
 0x8cc   : > { %8731 = vst [vmem:[#allocation18_spill] sm:$0xff] %v7456_v37 }
 0x8cd   : > { %v7458_v18 = vpop.f32.mrf.mxu1 }
 0x8ce   : > { %8732 = vst [vmem:[#allocation13_spill] sm:$0xff] %v7458_v18 }
 0x8cf   : > { %v7462_v43 = vpop.f32.mrf.mxu1 }
 0x8d0   : > { %8733 = vst [vmem:[#allocation56_spill] sm:$0xff] %v7462_v43 }
 0x8d1   : > { %v7466_v50 = vpop.f32.mrf.mxu1 }
 0x8d3   : > { %v7468_v5 = vpop.f32.mrf.mxu1 }
 0x8d5   : > { %v7470_v62 = vpop.f32.mrf.mxu1 }
 0x8d7   : > { %v7472_v25 = vpop.f32.mrf.mxu1 }
 0x8d9   : > { %v7474_v14 = vpop.f32.mrf.mxu1 }
 0x8da   : > { %v3274_v26 = vmax.f32 %v7466_v50, %v7474_v14 }
 0x8db   : > { %v7476_v55 = vpop.f32.mrf.mxu1 }
 0x8dd   : > { %v7478_v10 = vpop.f32.mrf.mxu1 }
 0x8de   : > { %v3275_v56 = vmax.f32 %v7470_v62, %v7478_v10 }
 0x8df   : > { %v7480_v21 = vpop.f32.mrf.mxu1 }
 0x8e0   : > { %8734 = vst [vmem:[#allocation19_spill] sm:$0xff] %v7480_v21 }
 0x8e1   : > { %v7482_v39 = vpop.f32.mrf.mxu1 }
 0x8e2   : > { %v3276_v7 = vmax.f32 %v3274_v26, %v7482_v39 }
 0x8e3   : > { %v7484_v58 = vpop.f32.mrf.mxu1 }
 0x8e5   : > { %v7486_v52 = vpop.f32.mrf.mxu1 }
 0x8e6   : > { %v3277_v44 = vmax.f32 %v3275_v56, %v7486_v52 }
 0x8e7   : > { %v7488_v61 = vpop.f32.mrf.mxu1 }
 0x8e9   : > { %v7490_v36 = vpop.f32.mrf.mxu1 }
 0x8ea   : > { %v3278_v0 = vmax.f32 %v3276_v7, %v7490_v36 }
 0x8eb   : > { %v7492_v4 = vpop.f32.mrf.mxu1 }
 0x8ed   : > { %v7494_v20 = vpop.f32.mrf.mxu1 }
 0x8ee   : > { %v3279_v31 = vmax.f32 %v3277_v44, %v7494_v20 }
 0x8ef   : > { %v7496_v22 = vpop.f32.mrf.mxu1 }
 0x8f1   : > { %v7498_v11 = vpop.f32.mrf.mxu1 }
 0x8f2   : > { %8735 = vst [vmem:[#allocation20_spill] sm:$0xff] %v7498_v11  ;;  %v3280_v1 = vmax.f32 %v3278_v0, %v7498_v11 }
 0x8f3   : > { %v7500_v47 = vpop.f32.mrf.mxu1 }
 0x8f5   : > { %v7502_v29 = vpop.f32.mrf.mxu1 }
 0x8f6   : > { %v3281_v3 = vmax.f32 %v3279_v31, %v7502_v29 }
 0x8f7   : > { %v7504_v54 = vpop.f32.mrf.mxu1 }
 0x8f9   : > { %v7506_v32 = vpop.f32.mrf.mxu1 }
 0x8fa   : > { %8736 = vst [vmem:[#allocation17_spill] sm:$0xff] %v7506_v32  ;;  %v3282_v37 = vmax.f32 %v3280_v1, %v7506_v32 }
 0x8fb   : > { %v7508_v23 = vpop.f32.mrf.mxu1 }
 0x8fd   : > { %v7510_v48 = vpop.f32.mrf.mxu1 }
 0x8fe   : > { %v3283_v26 = vmax.f32 %v3281_v3, %v7510_v48 }
 0x8ff   : > { %v7512_v16 = vpop.f32.mrf.mxu1 }
 0x901   : > { %v7514_v42 = vpop.f32.mrf.mxu1 }
 0x902   : > { %8737 = vst [vmem:[#allocation16_spill] sm:$0xff] %v7514_v42  ;;  %v3284_v56 = vmax.f32 %v3282_v37, %v7514_v42 }
 0x903   : > { %v7516_v19 = vpop.f32.mrf.mxu1 }
 0x905   : > { %v7518_v24 = vpop.f32.mrf.mxu1 }
 0x906   : > { %v3285_v7 = vmax.f32 %v3283_v26, %v7518_v24  ;;  %v3312_v26 = vmax.f32 %v7472_v25, %v7480_v21 }
 0x907   : > { %v7520_v49 = vpop.f32.mrf.mxu1 }
 0x909   : > { %v7522_v15 = vpop.f32.mrf.mxu1 }
 0x90a   : > { %v3286_v44 = vmax.f32 %v3284_v56, %v7522_v15 }
 0x90b   : > { %v7524_v63 = vpop.f32.mrf.mxu1 }
 0x90d   : > { %v7526_v6 = vpop.f32.mrf.mxu1 }
 0x90e   : > { %8738 = vst [vmem:[#allocation15_spill] sm:$0xff] %v7526_v6  ;;  %v3287_v0 = vmax.f32 %v3285_v7, %v7526_v6 }
 0x90f   : > { %v7528_v28 = vpop.f32.mrf.mxu1 }
 0x911   : > { %v7530_v9 = vpop.f32.mrf.mxu1 }
 0x912   : > { %v3288_v31 = vmax.f32 %v3286_v44, %v7530_v9  ;;  %v3311_v44 = vmax.f32 %v7468_v5, %v7476_v55 }
 0x913   : > { %v7532_v40 = vpop.f32.mrf.mxu1 }
 0x915   : > { %v7534_v57 = vpop.f32.mrf.mxu1 }
 0x916   : > { %v3289_v1 = vmax.f32 %v3287_v0, %v7534_v57  ;;  %v3314_v0 = vmax.f32 %v3312_v26, %v7488_v61 }
 0x917   : > { %v7536_v2 = vpop.f32.mrf.mxu1 }
 0x918   : > { %v3316_v21 = vmax.f32 %v3314_v0, %v7496_v22 }
 0x919   : > { %v7538_v59 = vpop.f32.mrf.mxu1 }
 0x91a   : > { %8739 = vst [vmem:[#allocation14_spill] sm:$0xff] %v7538_v59  ;;  %v3290_v3 = vmax.f32 %v3288_v31, %v7538_v59  ;;  %v3313_v59 = vmax.f32 %v3311_v44, %v7484_v58  ;;  %v3318_v26 = vmax.f32 %v3316_v21, %v7504_v54 }
 0x91b   : > { %v7540_v27 = vpop.f32.mrf.mxu1 }
 0x91c   : > { %v3320_v0 = vmax.f32 %v3318_v26, %v7512_v16 }
 0x91d   : > { %v7542_v41 = vpop.f32.mrf.mxu1 }
 0x91e   : > { %8740 = vst [vmem:[#allocation37_spill] sm:$0xff] %v7542_v41  ;;  %v3291_v37 = vmax.f32 %v3289_v1, %v7542_v41  ;;  %v3322_v21 = vmax.f32 %v3320_v0, %v7520_v49 }
 0x91f   : > { %v7544_v46 = vpop.f32.mrf.mxu1 }
 0x921   : > { %v7546_v34 = vpop.f32.mrf.mxu1 }
 0x922   : > { %8741 = vst [vmem:[#allocation36_spill] sm:$0xff] %v7546_v34  ;;  %v3292_v56 = vmax.f32 %v3290_v3, %v7546_v34  ;;  %v3315_v34 = vmax.f32 %v3313_v59, %v7492_v4 }
 0x923   : > { %v7548_v30 = vpop.f32.mrf.mxu1 }
 0x924   : > { %v3317_v44 = vmax.f32 %v3315_v34, %v7500_v47  ;;  %v3324_v34 = vmax.f32 %v3322_v21, %v7528_v28 }
 0x925   : > { %v7550_v33 = vpop.f32.mrf.mxu1 }
 0x926   : > { %8742 = vst [vmem:[#allocation28_spill] sm:$0xff] %v7550_v33  ;;  %v3293_v7 = vmax.f32 %v3291_v37, %v7550_v33  ;;  %v3319_v59 = vmax.f32 %v3317_v44, %v7508_v23 }
 0x927   : > { %v7552_v35 = vpop.f32.mrf.mxu1 }
 0x929   : > { %v7554_v38 = vpop.f32.mrf.mxu1 }
 0x92a   : > { %v3294_v31 = vmax.f32 %v3292_v56, %v7554_v38 }
 0x92b   : > { %v7556_v12 = vpop.f32.mrf.mxu1 }
 0x92d   : > { %v7558_v45 = vpop.f32.mrf.mxu1 }
 0x92e   : > { %8743 = vst [vmem:[#allocation25_spill] sm:$0xff] %v7558_v45  ;;  %v3295_v1 = vmax.f32 %v3293_v7, %v7558_v45 }
 0x92f   : > { %v7560_v13 = vpop.f32.mrf.mxu1 }
 0x931   : > { %v7562_v51 = vpop.f32.mrf.mxu1 }
 0x932   : > { %v3296_v3 = vmax.f32 %v3294_v31, %v7562_v51 }
 0x933   : > { %v7568_v17 = vpop.f32.mrf.mxu1 }
 0x935   : > { %v7572_v8 = vpop.f32.mrf.mxu1 }
 0x936   : > { %8744 = vst [vmem:[#allocation24_spill] sm:$0xff] %v7572_v8  ;;  %v3297_v37 = vmax.f32 %v3295_v1, %v7572_v8 }
 0x937   : > { %v7576_v60 = vpop.f32.mrf.mxu1 }
 0x939   : > { %v7580_v18 = vpop.f32.mrf.mxu1 }
 0x93a   : > { %8745 = vst [vmem:[#allocation21_spill] sm:$0xff] %v7580_v18  ;;  %v3298_v56 = vmax.f32 %v3296_v3, %v7580_v18 }
 0x93b   : > { %v7584_v43 = vpop.f32.mrf.mxu1 }
 0x93d   : > { %v7588_v53 = vpop.f32.mrf.mxu1 }
 0x93e   : > { %8746 = vst [vmem:[#allocation42_spill] sm:$0xff] %v7588_v53  ;;  %v3299_v7 = vmax.f32 %v3297_v37, %v7588_v53  ;;  %v3321_v53 = vmax.f32 %v3319_v59, %v7516_v19 }
 0x93f   : > { %v7592_v11 = vpop.f32.mrf.mxu1 }
 0x940   : > { %v3323_v26 = vmax.f32 %v3321_v53, %v7524_v63 }
 0x941   : > { %v7596_v32 = vpop.f32.mrf.mxu1 }
 0x942   : > { %8747 = vst [vmem:[#allocation38_spill] sm:$0xff] %v7596_v32  ;;  %v3300_v31 = vmax.f32 %v3298_v56, %v7596_v32  ;;  %v3326_v56 = vmax.f32 %v3324_v34, %v7536_v2 }
 0x943   : > { %v7600_v42 = vpop.f32.mrf.mxu1 }
 0x944   : > { %v3328_v44 = vmax.f32 %v3326_v56, %v7544_v46 }
 0x945   : > { %v7606_v6 = vpop.f32.mrf.mxu1 }
 0x946   : > { %8748 = vst [vmem:[#allocation12_spill] sm:$0xff] %v7606_v6  ;;  %v3301_v1 = vmax.f32 %v3299_v7, %v7606_v6  ;;  %v3325_v6 = vmax.f32 %v3323_v26, %v7532_v40 }
 0x947   : > { %v7613_v41 = vpop.f32.mrf.mxu1 }
 0x948   : > { %v3327_v0 = vmax.f32 %v3325_v6, %v7540_v27 }
 0x949   : > { %v7619_v33 = vpop.f32.mrf.mxu1 }
 0x94a   : > { %v3302_v3 = vmax.f32 %v3300_v31, %v7619_v33  ;;  %v3330_v31 = vmax.f32 %v3328_v44, %v7552_v35  ;;  %v3329_v59 = vmax.f32 %v3327_v0, %v7548_v30 }
 0x94b   : > { %v7625_v45 = vpop.f32.mrf.mxu1 }
 0x94c   : > { %v3332_v21 = vmax.f32 %v3330_v31, %v7560_v13  ;;  %v3331_v53 = vmax.f32 %v3329_v59, %v7556_v12 }
 0x94d   : > { %v7631_v8 = vpop.f32.mrf.mxu1 }
 0x94e   : > { %v3303_v37 = vmax.f32 %v3301_v1, %v7631_v8  ;;  %v3333_v26 = vmax.f32 %v3331_v53, %v7568_v17 }
 0x950   : > { %v3304_v18 = vmax.f32 %v3302_v3, %v3303_v37  ;;  %v3334_v37 = vmax.f32 %v3332_v21, %v7576_v60  ;;  %v3335_v6 = vmax.f32 %v3333_v26, %v7584_v43 }
 0x952   : > { %v3305_v7 = vrot.slane %v3304_v18, 4  ;;  %v3336_v56 = vmax.f32 %v3334_v37, %v7592_v11  ;;  %v3337_v0 = vmax.f32 %v3335_v6, %v7600_v42 }
 0x954   : > { %v3306_v32 = vmax.f32 %v3304_v18, %v3305_v7  ;;  %v7651_v18 = vpop.f32.mrf.mxu1  ;;  %v3338_v7 = vmax.f32 %v3336_v56, %v7613_v41  ;;  %v3339_v31 = vmax.f32 %v3337_v0, %v7625_v45 }
 0x956   : > { %v3307_v1 = vrot.slane %v3306_v32, 2 }
 0x958   : > { %v3308_v3 = vmax.f32 %v3306_v32, %v3307_v1  ;;  %v3340_v32 = vmax.f32 %v3338_v7, %v7651_v18 }
 0x95a   : > { %v3309_v34 = vrot.slane %v3308_v3, 1  ;;  %v3341_v53 = vmax.f32 %v3339_v31, %v3340_v32 }
 0x95c   : > { %v7655_v44 = vmax.f32 %v3308_v3, %v3309_v34  ;;  %v3342_v6 = vrot.slane %v3341_v53, 4 }
 0x95e   : > { %v3348_v1 = vsub.f32 %v7466_v50, %v7655_v44  ;;  %v3350_v59 = vsub.f32 %v7470_v62, %v7655_v44  ;;  %v3352_v21 = vsub.f32 %v7474_v14, %v7655_v44  ;;  %v3354_v3 = vsub.f32 %v7478_v10, %v7655_v44 }
 0x95f   : > { %v3356_v26 = vsub.f32 %v7482_v39, %v7655_v44  ;;  %v3358_v50 = vsub.f32 %v7486_v52, %v7655_v44  ;;  %v3360_v14 = vsub.f32 %v7490_v36, %v7655_v44  ;;  %v3343_v0 = vmax.f32 %v3341_v53, %v3342_v6  ;;  %v8749_v39 = vld [vmem:[#allocation20_spill] sm:$0xff]  ;;  %v8750_v36 = vld [vmem:[#allocation17_spill] sm:$0xff] }
 0x960   : > { %v3412_v37 = vmul.f32 1.442695, %v3348_v1  ;;  %v3416_v34 = vmul.f32 1.442695, %v3350_v59  ;;  %v3420_v56 = vmul.f32 1.442695, %v3352_v21  ;;  %v3362_v10 = vsub.f32 %v7494_v20, %v7655_v44 }
 0x961   : > { %v3424_v62 = vmul.f32 1.442695, %v3354_v3  ;;  %v3428_v7 = vmul.f32 1.442695, %v3356_v26  ;;  %v3432_v32 = vmul.f32 1.442695, %v3358_v50  ;;  %v3364_v31 = vsub.f32 %v8749_v39, %v7655_v44 }
 0x962   : > { %4450 = vpow2.f32 %v3412_v37  ;;  %v3436_v1 = vmul.f32 1.442695, %v3360_v14  ;;  %v3344_v59 = vrot.slane %v3343_v0, 2  ;;  %v3366_v52 = vsub.f32 %v7502_v29, %v7655_v44  ;;  %v8753_v6 = vld [vmem:[#allocation16_spill] sm:$0xff] }
 0x963   : > { %4452 = vpow2.f32 %v3416_v34  ;;  %v3440_v21 = vmul.f32 1.442695, %v3362_v10  ;;  %v3368_v3 = vsub.f32 %v8750_v36, %v7655_v44  ;;  %v3444_v53 = vmul.f32 1.442695, %v3364_v31 }
 0x964   : > { %4454 = vpow2.f32 %v3420_v56  ;;  %v3345_v37 = vmax.f32 %v3343_v0, %v3344_v59  ;;  %v3370_v34 = vsub.f32 %v7510_v48, %v7655_v44  ;;  %v3448_v26 = vmul.f32 1.442695, %v3366_v52 }
 0x965   : > { %4456 = vpow2.f32 %v3424_v62  ;;  %v3372_v29 = vsub.f32 %v8753_v6, %v7655_v44  ;;  %v3452_v50 = vmul.f32 1.442695, %v3368_v3  ;;  %v3374_v0 = vsub.f32 %v7518_v24, %v7655_v44 }
 0x966   : > { %4458 = vpow2.f32 %v3428_v7  ;;  %v3346_v7 = vrot.slane %v3345_v37, 1  ;;  %v3456_v48 = vmul.f32 1.442695, %v3370_v34  ;;  %v3376_v39 = vsub.f32 %v7522_v15, %v7655_v44 }
 0x967   : > { %4460 = vpow2.f32 %v3432_v32  ;;  %v3460_v31 = vmul.f32 1.442695, %v3372_v29  ;;  %v3464_v36 = vmul.f32 1.442695, %v3374_v0  ;;  %v3380_v15 = vsub.f32 %v7530_v9, %v7655_v44 }
 0x968   : > { %4462 = vpow2.f32 %v3436_v1  ;;  %v7704_v52 = vmax.f32 %v3345_v37, %v3346_v7  ;;  %v3382_v34 = vsub.f32 %v7534_v57, %v7655_v44  ;;  %v8757_v57 = vld [vmem:[#allocation14_spill] sm:$0xff] }
 0x969   : > { %4464 = vpow2.f32 %v3440_v21  ;;  %v8756_v21 = vld [vmem:[#allocation15_spill] sm:$0xff]  ;;  %v3384_v0 = vsub.f32 %v8757_v57, %v7655_v44 }
 0x96a   : > { %4466 = vpow2.f32 %v3444_v53  ;;  %v3378_v24 = vsub.f32 %v8756_v21, %v7655_v44  ;;  %v3349_v29 = vsub.f32 %v7468_v5, %v7704_v52  ;;  %v3351_v7 = vsub.f32 %v7472_v25, %v7704_v52 }
 0x96b   : > { %4468 = vpow2.f32 %v3448_v26  ;;  %v3468_v26 = vmul.f32 1.442695, %v3376_v39  ;;  %v3353_v5 = vsub.f32 %v7476_v55, %v7704_v52  ;;  %v3484_v55 = vmul.f32 1.442695, %v3384_v0 }
 0x96c   : > { %4470 = vpow2.f32 %v3452_v50  ;;  %v3472_v50 = vmul.f32 1.442695, %v3378_v24  ;;  %v3414_v24 = vmul.f32 1.442695, %v3349_v29  ;;  %v3357_v29 = vsub.f32 %v7484_v58, %v7704_v52 }
 0x96d   : > { %4472 = vpow2.f32 %v3456_v48  ;;  %v3476_v48 = vmul.f32 1.442695, %v3380_v15  ;;  %v3418_v15 = vmul.f32 1.442695, %v3351_v7  ;;  %v3392_v58 = vsub.f32 %v7554_v38, %v7655_v44 }
 0x96e   : > { %4474 = vpow2.f32 %v3460_v31  ;;  %v3363_v38 = vsub.f32 %v7496_v22, %v7704_v52  ;;  %v8763_v22 = vld [vmem:[#allocation24_spill] sm:$0xff] }
 0x96f   : > { %v7682_v20 = vpop.eup %4450  ;;  %4476 = vpow2.f32 %v3464_v36  ;;  %v8759_v36 = vld [vmem:[#allocation19_spill] sm:$0xff] }
 0x970   : > { %8751 = vst [vmem:[#allocation35_spill] sm:$0xff] %v7682_v20  ;;  %v7686_v56 = vpop.eup %4452  ;;  %4478 = vpow2.f32 %v3468_v26 }
 0x971   : > { %8752 = vst [vmem:[#allocation27_spill] sm:$0xff] %v7686_v56  ;;  %v3540_v62 = vadd.f32 %v7686_v56, %v7682_v20  ;;  %v7692_v14 = vpop.eup %4454  ;;  %4480 = vpow2.f32 %v3472_v50  ;;  %v3422_v50 = vmul.f32 1.442695, %v3353_v5 }
 0x972   : > { %8754 = vst [vmem:[#allocation26_spill] sm:$0xff] %v7692_v14  ;;  %v7697_v32 = vpop.eup %4456  ;;  %4482 = vpow2.f32 %v3476_v48  ;;  %v3359_v48 = vsub.f32 %v7488_v61, %v7704_v52  ;;  %v8762_v61 = vld [vmem:[#allocation25_spill] sm:$0xff] }
 0x973   : > { %v3541_v10 = vadd.f32 %v7692_v14, %v3540_v62  ;;  %8755 = vst [vmem:[#allocation23_spill] sm:$0xff] %v7697_v32  ;;  %v7702_v59 = vpop.eup %4458 }
 0x974   : > { %v7709_v53 = vpop.eup %4460 }
 0x975   : > { %v3542_v1 = vadd.f32 %v7697_v32, %v3541_v10  ;;  %v7716_v6 = vpop.eup %4462  ;;  %v3480_v10 = vmul.f32 1.442695, %v3382_v34  ;;  %v8760_v34 = vld [vmem:[#allocation36_spill] sm:$0xff] }
 0x976   : > { %v7723_v9 = vpop.eup %4464 }
 0x977   : > { %v3543_v3 = vadd.f32 %v7702_v59, %v3542_v1  ;;  %v7730_v31 = vpop.eup %4466  ;;  %v8758_v1 = vld [vmem:[#allocation37_spill] sm:$0xff]  ;;  %4484 = vpow2.f32 %v3480_v10 }
 0x978   : > { %v3386_v21 = vsub.f32 %v8758_v1, %v7655_v44  ;;  %v7737_v26 = vpop.eup %4468  ;;  %4486 = vpow2.f32 %v3414_v24  ;;  %v3430_v24 = vmul.f32 1.442695, %v3357_v29  ;;  %v3500_v29 = vmul.f32 1.442695, %v3392_v58 }
 0x979   : > { %v3544_v37 = vadd.f32 %v7709_v53, %v3543_v3  ;;  %v3355_v3 = vsub.f32 %v8759_v36, %v7704_v52  ;;  %v7744_v57 = vpop.eup %4470  ;;  %4488 = vpow2.f32 %v3418_v15  ;;  %v3394_v15 = vsub.f32 %v8762_v61, %v7655_v44 }
 0x97a   : > { %v3488_v7 = vmul.f32 1.442695, %v3386_v21  ;;  %v7751_v10 = vpop.eup %4472  ;;  %4490 = vpow2.f32 %v3484_v55  ;;  %v3361_v21 = vsub.f32 %v7492_v4, %v7704_v52  ;;  %v3396_v4 = vsub.f32 %v7562_v51, %v7655_v44 }
 0x97b   : > { %v3545_v62 = vadd.f32 %v7716_v6, %v3544_v37  ;;  %v3388_v37 = vsub.f32 %v8760_v34, %v7655_v44  ;;  %v3426_v0 = vmul.f32 1.442695, %v3355_v3  ;;  %4492 = vpow2.f32 %v3422_v50  ;;  %v7758_v34 = vpop.eup %4474 }
 0x97c   : > { %4494 = vpow2.f32 %v3488_v7  ;;  %v7765_v55 = vpop.eup %4476  ;;  %v3367_v51 = vsub.f32 %v7504_v54, %v7704_v52  ;;  %v3442_v58 = vmul.f32 1.442695, %v3363_v38  ;;  %v8767_v54 = vld [vmem:[#allocation42_spill] sm:$0xff] }
 0x97d   : > { %v3546_v39 = vadd.f32 %v7723_v9, %v3545_v62  ;;  %v3492_v5 = vmul.f32 1.442695, %v3388_v37  ;;  %4496 = vpow2.f32 %v3426_v0  ;;  %v3434_v37 = vmul.f32 1.442695, %v3359_v48  ;;  %v7772_v7 = vpop.eup %4478 }
 0x97e   : > { %v3504_v48 = vmul.f32 1.442695, %v3394_v15  ;;  %v3369_v15 = vsub.f32 %v7508_v23, %v7704_v52  ;;  %v3402_v38 = vsub.f32 %v8767_v54, %v7655_v44  ;;  %v8770_v23 = vld [vmem:[#allocation38_spill] sm:$0xff] }
 0x97f   : > { %v3547_v25 = vadd.f32 %v7730_v31, %v3546_v39  ;;  %v8761_v39 = vld [vmem:[#allocation28_spill] sm:$0xff]  ;;  %4498 = vpow2.f32 %v3492_v5  ;;  %v7779_v5 = vpop.eup %4480 }
 0x980   : > { %v3390_v1 = vsub.f32 %v8761_v39, %v7655_v44  ;;  %v3365_v39 = vsub.f32 %v7500_v47, %v7704_v52  ;;  %4500 = vpow2.f32 %v3430_v24  ;;  %v8764_v47 = vld [vmem:[#allocation21_spill] sm:$0xff]  ;;  %v7783_v24 = vpop.eup %4482 }
 0x981   : > { %v3548_v62 = vadd.f32 %v7737_v26, %v3547_v25  ;;  %8765 = vst [vmem:[#allocation22_spill] sm:$0xff] %v7783_v24 }
 0x982   : > { %v3496_v3 = vmul.f32 1.442695, %v3390_v1  ;;  %v3438_v1 = vmul.f32 1.442695, %v3361_v21  ;;  %v3508_v21 = vmul.f32 1.442695, %v3396_v4 }
 0x983   : > { %v3549_v36 = vadd.f32 %v7744_v57, %v3548_v62 }
 0x984   : > { %4502 = vpow2.f32 %v3496_v3  ;;  %v3446_v3 = vmul.f32 1.442695, %v3365_v39  ;;  %v3404_v39 = vsub.f32 %v8770_v23, %v7655_v44 }
 0x985   : > { %v3550_v25 = vadd.f32 %v7751_v10, %v3549_v36  ;;  %v3398_v36 = vsub.f32 %v8763_v22, %v7655_v44  ;;  %4504 = vpow2.f32 %v3434_v37  ;;  %v3450_v22 = vmul.f32 1.442695, %v3367_v51 }
 0x986   : > { %4506 = vpow2.f32 %v3500_v29  ;;  %v3371_v29 = vsub.f32 %v7512_v16, %v7704_v52 }
 0x987   : > { %v3551_v62 = vadd.f32 %v7758_v34, %v3550_v25  ;;  %v3400_v25 = vsub.f32 %v8764_v47, %v7655_v44  ;;  %4508 = vpow2.f32 %v3438_v1  ;;  %v3512_v37 = vmul.f32 1.442695, %v3398_v36 }
 0x988   : > { %4510 = vpow2.f32 %v3504_v48  ;;  %v3373_v48 = vsub.f32 %v7516_v19, %v7704_v52 }
 0x989   : > { %v3552_v50 = vadd.f32 %v7765_v55, %v3551_v62  ;;  %v7788_v62 = vpop.eup %4484  ;;  %4512 = vpow2.f32 %v3442_v58  ;;  %v3516_v1 = vmul.f32 1.442695, %v3400_v25  ;;  %v8771_v58 = vld [vmem:[#allocation12_spill] sm:$0xff]  ;;  %v3375_v25 = vsub.f32 %v7520_v49, %v7704_v52 }
 0x98a   : > { %8766 = vst [vmem:[#allocation29_spill] sm:$0xff] %v7788_v62  ;;  %4514 = vpow2.f32 %v3508_v21  ;;  %v3406_v54 = vsub.f32 %v8771_v58, %v7655_v44  ;;  %v3520_v21 = vmul.f32 1.442695, %v3402_v38  ;;  %v3524_v58 = vmul.f32 1.442695, %v3404_v39 }
 0x98b   : > { %v3553_v0 = vadd.f32 %v7772_v7, %v3552_v50  ;;  %v7792_v50 = vpop.eup %4486  ;;  %4516 = vpow2.f32 %v3446_v3  ;;  %v3458_v3 = vmul.f32 1.442695, %v3371_v29  ;;  %v3377_v38 = vsub.f32 %v7524_v63, %v7704_v52 }
 0x98c   : > { %8768 = vst [vmem:[#allocation43_spill] sm:$0xff] %v7792_v50  ;;  %4518 = vpow2.f32 %v3512_v37  ;;  %v3379_v39 = vsub.f32 %v7528_v28, %v7704_v52 }
 0x98d   : > { %v3554_v61 = vadd.f32 %v7779_v5, %v3553_v0  ;;  %v7797_v0 = vpop.eup %4488  ;;  %4520 = vpow2.f32 %v3450_v22  ;;  %v3470_v28 = vmul.f32 1.442695, %v3377_v38  ;;  %v3385_v38 = vsub.f32 %v7540_v27, %v7704_v52 }
 0x98e   : > { %8769 = vst [vmem:[#allocation20_spill] sm:$0xff] %v7797_v0  ;;  %v7803_v36 = vpop.eup %4490  ;;  %v3577_v16 = vadd.f32 %v7797_v0, %v7792_v50  ;;  %4522 = vpow2.f32 %v3516_v1 }
 0x98f   : > { %v3555_v4 = vadd.f32 %v7783_v24, %v3554_v61  ;;  %v3454_v61 = vmul.f32 1.442695, %v3369_v15  ;;  %v7808_v51 = vpop.eup %4492 }
 0x990   : > { %v7814_v19 = vpop.eup %4494  ;;  %v3578_v15 = vadd.f32 %v7808_v51, %v3577_v16  ;;  %v3410_v16 = vsub.f32 %v7631_v8, %v7655_v44  ;;  %v3381_v8 = vsub.f32 %v7532_v40, %v7704_v52  ;;  %v3474_v40 = vmul.f32 1.442695, %v3379_v39 }
 0x991   : > { %v3556_v47 = vadd.f32 %v7788_v62, %v3555_v4  ;;  %v7818_v4 = vpop.eup %4496  ;;  %v3408_v62 = vsub.f32 %v7619_v33, %v7655_v44  ;;  %4524 = vpow2.f32 %v3454_v61  ;;  %v3528_v33 = vmul.f32 1.442695, %v3406_v54 }
 0x992   : > { %8772 = vst [vmem:[#allocation17_spill] sm:$0xff] %v7818_v4  ;;  %v7824_v37 = vpop.eup %4498  ;;  %v3579_v29 = vadd.f32 %v7818_v4, %v3578_v15  ;;  %4526 = vpow2.f32 %v3520_v21  ;;  %v3387_v39 = vsub.f32 %v7544_v46, %v7704_v52 }
 0x993   : > { %v3557_v23 = vadd.f32 %v7803_v36, %v3556_v47  ;;  %v3462_v47 = vmul.f32 1.442695, %v3373_v48  ;;  %v7828_v22 = vpop.eup %4500  ;;  %4528 = vpow2.f32 %v3458_v3  ;;  %v3532_v15 = vmul.f32 1.442695, %v3408_v62 }
 0x994   : > { %v7834_v1 = vpop.eup %4502  ;;  %v3580_v48 = vadd.f32 %v7828_v22, %v3579_v29  ;;  %4530 = vpow2.f32 %v3524_v58  ;;  %v3383_v3 = vsub.f32 %v7536_v2, %v7704_v52  ;;  %v3478_v2 = vmul.f32 1.442695, %v3381_v8 }
 0x995   : > { %v3558_v49 = vadd.f32 %v7814_v19, %v3557_v23  ;;  %v3466_v23 = vmul.f32 1.442695, %v3375_v25  ;;  %v7838_v61 = vpop.eup %4504  ;;  %4532 = vpow2.f32 %v3462_v47  ;;  %v3536_v25 = vmul.f32 1.442695, %v3410_v16 }
 0x996   : > { %v7842_v44 = vpop.eup %4506  ;;  %v3581_v21 = vadd.f32 %v7838_v61, %v3580_v48  ;;  %4534 = vpow2.f32 %v3528_v33  ;;  %v3482_v27 = vmul.f32 1.442695, %v3383_v3  ;;  %v3389_v8 = vsub.f32 %v7548_v30, %v7704_v52 }
 0x997   : > { %v3559_v63 = vadd.f32 %v7824_v37, %v3558_v49  ;;  %v7846_v49 = vpop.eup %4508  ;;  %4536 = vpow2.f32 %v3466_v23  ;;  %v3391_v3 = vsub.f32 %v7552_v35, %v7704_v52 }
 0x998   : > { %v7850_v58 = vpop.eup %4510  ;;  %v3582_v29 = vadd.f32 %v7846_v49, %v3581_v21  ;;  %4538 = vpow2.f32 %v3532_v15 }
 0x999   : > { %v3560_v54 = vadd.f32 %v7834_v1, %v3559_v63  ;;  %v7854_v63 = vpop.eup %4512  ;;  %4540 = vpow2.f32 %v3470_v28 }
 0x99a   : > { %v7858_v47 = vpop.eup %4514  ;;  %v3583_v33 = vadd.f32 %v7854_v63, %v3582_v29  ;;  %4542 = vpow2.f32 %v3536_v25 }
 0x99b   : > { %v3561_v62 = vadd.f32 %v7842_v44, %v3560_v54  ;;  %v7862_v48 = vpop.eup %4516  ;;  %4544 = vpow2.f32 %v3474_v40 }
 0x99c   : > { %v7866_v23 = vpop.eup %4518  ;;  %v3584_v54 = vadd.f32 %v7862_v48, %v3583_v33  ;;  %4546 = vpow2.f32 %v3478_v2  ;;  %v3490_v33 = vmul.f32 1.442695, %v3387_v39  ;;  %v3395_v39 = vsub.f32 %v7560_v13, %v7704_v52 }
 0x99d   : > { %v3562_v16 = vadd.f32 %v7850_v58, %v3561_v62  ;;  %v7870_v21 = vpop.eup %4520  ;;  %v3486_v62 = vmul.f32 1.442695, %v3385_v38  ;;  %4548 = vpow2.f32 %v3482_v27  ;;  %v3393_v38 = vsub.f32 %v7556_v12, %v7704_v52 }
 0x99e   : > { %v7874_v28 = vpop.eup %4522  ;;  %v3585_v46 = vadd.f32 %v7870_v21, %v3584_v54  ;;  %v3494_v54 = vmul.f32 1.442695, %v3389_v8  ;;  %v3397_v8 = vsub.f32 %v7568_v17, %v7704_v52 }
 0x99f   : > { %v3563_v15 = vadd.f32 %v7858_v47, %v3562_v16  ;;  %v7878_v29 = vpop.eup %4524  ;;  %4550 = vpow2.f32 %v3486_v62 }
 0x9a0   : > { %v7882_v40 = vpop.eup %4526  ;;  %v3586_v30 = vadd.f32 %v7878_v29, %v3585_v46  ;;  %4552 = vpow2.f32 %v3490_v33  ;;  %v3498_v46 = vmul.f32 1.442695, %v3391_v3  ;;  %v3399_v3 = vsub.f32 %v7576_v60, %v7704_v52 }
 0x9a1   : > { %v3564_v25 = vadd.f32 %v7866_v23, %v3563_v15  ;;  %v7886_v24 = vpop.eup %4528  ;;  %4554 = vpow2.f32 %v3494_v54 }
 0x9a2   : > { %v7890_v2 = vpop.eup %4530  ;;  %v3587_v35 = vadd.f32 %v7886_v24, %v3586_v30  ;;  %v3502_v30 = vmul.f32 1.442695, %v3393_v38  ;;  %4556 = vpow2.f32 %v3498_v46  ;;  %v3401_v38 = vsub.f32 %v7584_v43, %v7704_v52 }
 0x9a3   : > { %v3565_v16 = vadd.f32 %v7874_v28, %v3564_v25  ;;  %v7894_v56 = vpop.eup %4532  ;;  %v3405_v43 = vsub.f32 %v7600_v42, %v7704_v52  ;;  %v3409_v42 = vsub.f32 %v7625_v45, %v7704_v52 }
 0x9a4   : > { %v7898_v27 = vpop.eup %4534  ;;  %v3588_v12 = vadd.f32 %v7894_v56, %v3587_v35  ;;  %v3506_v35 = vmul.f32 1.442695, %v3395_v39  ;;  %4558 = vpow2.f32 %v3502_v30  ;;  %v3514_v39 = vmul.f32 1.442695, %v3399_v3 }
 0x9a5   : > { %v3566_v15 = vadd.f32 %v7882_v40, %v3565_v16  ;;  %v7902_v20 = vpop.eup %4536  ;;  %v3534_v45 = vmul.f32 1.442695, %v3409_v42 }
 0x9a6   : > { %v7906_v62 = vpop.eup %4538  ;;  %v3589_v13 = vadd.f32 %v7902_v20, %v3588_v12  ;;  %4560 = vpow2.f32 %v3506_v35 }
 0x9a7   : > { %v3567_v25 = vadd.f32 %v7890_v2, %v3566_v15  ;;  %v7910_v0 = vpop.eup %4540 }
 0x9a8   : > { %v7914_v33 = vpop.eup %4542  ;;  %v3590_v17 = vadd.f32 %v7910_v0, %v3589_v13 }
 0x9a9   : > { %v3568_v16 = vadd.f32 %v7898_v27, %v3567_v25  ;;  %v7918_v50 = vpop.eup %4544  ;;  %v3510_v25 = vmul.f32 1.442695, %v3397_v8  ;;  %v3518_v8 = vmul.f32 1.442695, %v3401_v38  ;;  %v3526_v38 = vmul.f32 1.442695, %v3405_v43 }
 0x9aa   : > { %v3591_v12 = vadd.f32 %v7918_v50, %v3590_v17  ;;  %v7924_v60 = vpop.eup %4546 }
 0x9ab   : > { %v3569_v15 = vadd.f32 %v7906_v62, %v3568_v16  ;;  %8773 = vst [vmem:[#allocation16_spill] sm:$0xff] %v7924_v60  ;;  %v3403_v16 = vsub.f32 %v7592_v11, %v7704_v52  ;;  %v7929_v32 = vpop.eup %4548  ;;  %4562 = vpow2.f32 %v3510_v25  ;;  %v3407_v11 = vsub.f32 %v7613_v41, %v7704_v52 }
 0x9ac   : > { %v3592_v13 = vadd.f32 %v7924_v60, %v3591_v12  ;;  %8774 = vst [vmem:[#allocation15_spill] sm:$0xff] %v7929_v32  ;;  %v7934_v17 = vpop.eup %4550  ;;  %4564 = vpow2.f32 %v3514_v39  ;;  %v3411_v41 = vsub.f32 %v7651_v18, %v7704_v52 }
 0x9ad   : > { %v3570_v54 = vadd.f32 %v7914_v33, %v3569_v15  ;;  %v3522_v3 = vmul.f32 1.442695, %v3403_v16  ;;  %v7939_v12 = vpop.eup %4552  ;;  %4566 = vpow2.f32 %v3518_v8 }
 0x9ae   : > { %v3593_v30 = vadd.f32 %v7929_v32, %v3592_v13  ;;  %v3530_v13 = vmul.f32 1.442695, %v3407_v11 }
 0x9af   : > { %v3571_v46 = vrot.slane %v3570_v54, 4  ;;  %4568 = vpow2.f32 %v3522_v3 }
 0x9b0   : > { %v3594_v35 = vadd.f32 %v7934_v17, %v3593_v30  ;;  %4570 = vpow2.f32 %v3526_v38 }
 0x9b1   : > { %v3572_v15 = vadd.f32 %v3571_v46, %v3570_v54  ;;  %v7944_v46 = vpop.eup %4554  ;;  %4572 = vpow2.f32 %v3530_v13 }
 0x9b2   : > { %v3595_v25 = vadd.f32 %v7939_v12, %v3594_v35  ;;  %v7949_v39 = vpop.eup %4556 }
 0x9b3   : > { %v3573_v14 = vrot.slane %v3572_v15, 2  ;;  %v7952_v43 = vpop.eup %4558 }
 0x9b4   : > { %v3596_v16 = vadd.f32 %v7944_v46, %v3595_v25  ;;  %v7955_v11 = vpop.eup %4560 }
 0x9b5   : > { %v3574_v54 = vadd.f32 %v3573_v14, %v3572_v15  ;;  %v3538_v15 = vmul.f32 1.442695, %v3411_v41 }
 0x9b6   : > { %v3597_v14 = vadd.f32 %v7949_v39, %v3596_v16 }
 0x9b7   : > { %v3575_v32 = vrot.slane %v3574_v54, 1 }
 0x9b8   : > { %v3598_v8 = vadd.f32 %v7952_v43, %v3597_v14  ;;  %v7958_v52 = vpop.eup %4562 }
 0x9b9   : > { %v3576_v30 = vadd.f32 %v3575_v32, %v3574_v54  ;;  %v7961_v3 = vpop.eup %4564 }
 0x9ba   : > { %v3599_v18 = vadd.f32 %v7955_v11, %v3598_v8  ;;  %v7964_v42 = vpop.eup %4566 }
 0x9bb   : > { %4574 = vrcp.f32 %v3576_v30 }
 0x9bc   : > { %4576 = vpow2.f32 %v3534_v45  ;;  %v3600_v32 = vadd.f32 %v7958_v52, %v3599_v18  ;;  %v7967_v38 = vpop.eup %4568 }
 0x9bd   : > { %4578 = vpow2.f32 %v3538_v15  ;;  %v4571_v13 = vpop.eup %4570 }
 0x9be   : > { %v3601_v35 = vadd.f32 %v7961_v3, %v3600_v32  ;;  %v4573_v41 = vpop.eup %4572 }
 0x9c0   : > { %v3602_v54 = vadd.f32 %v7964_v42, %v3601_v35 }
 0x9c2   : > { %v3603_v25 = vadd.f32 %v7967_v38, %v3602_v54 }
 0x9c4   : > { %v3604_v16 = vadd.f32 %v4571_v13, %v3603_v25 }
 0x9c6   : > { %v3605_v45 = vadd.f32 %v4573_v41, %v3604_v16 }
 0x9c8   : > { %v7970_v30 = vpop.eup %4574 }
 0x9c9   : > { %v3644_v14 = vmul.f32 %v7970_v30, %v7772_v7  ;;  %v3646_v15 = vmul.f32 %v7970_v30, %v7779_v5  ;;  %v4577_v8 = vpop.eup %4576  ;;  %v7978_v54 = vmul.f32 %v7970_v30, %v7906_v62  ;;  %v7982_v25 = vmul.f32 %v7970_v30, %v7914_v33 }
 0x9ca   : > { %v3606_v18 = vadd.f32 %v4577_v8, %v3605_v45  ;;  %v4579_v35 = vpop.eup %4578  ;;  %v7986_v7 = vmul.f32 %v7970_v30, %v7890_v2  ;;  %v7990_v5 = vmul.f32 %v7970_v30, %v7898_v27  ;;  %v7996_v62 = vmul.f32 %v7970_v30, %v7874_v28 }
 0x9cb   : > { %v3694_v32 = vpack.c.bf16 %v3646_v15, %v3644_v14  ;;  %v8000_v33 = vmul.f32 %v7970_v30, %v7882_v40  ;;  %v8006_v14 = vmul.f32 %v7970_v30, %v7858_v47  ;;  %v8014_v27 = vmul.f32 %v7970_v30, %v7842_v44 }
 0x9cc   : > { %v3607_v60 = vadd.f32 %v4579_v35, %v3606_v18  ;;  %v8024_v47 = vmul.f32 %v7970_v30, %v7824_v37  ;;  %v8030_v15 = vmul.f32 %v7970_v30, %v7834_v1  ;;  %v8034_v44 = vmul.f32 %v7970_v30, %v7803_v36 }
 0x9cd   : > { %v8038_v18 = vmul.f32 %v7970_v30, %v7814_v19 }
 0x9ce   : > { %v3608_v4 = vrot.slane %v3607_v60, 4  ;;  %v3700_v40 = vpack.c.bf16 %v8030_v15, %v8024_v47  ;;  %v8793_v47 = vld [vmem:[#allocation47_spill] sm:$0xff] }
 0x9d0   : > { %v3609_v16 = vadd.f32 %v3608_v4, %v3607_v60  ;;  %v8010_v4 = vmul.f32 %v7970_v30, %v7866_v23  ;;  %v8020_v60 = vmul.f32 %v7970_v30, %v7850_v58  ;;  %v3640_v23 = vmul.f32 %v7970_v30, %v7758_v34 }
 0x9d2   : > { %v3610_v28 = vrot.slane %v3609_v16, 2  ;;  %v3702_v37 = vpack.c.bf16 %v8020_v60, %v8014_v27  ;;  %v8790_v60 = vpack.c.bf16 %v8038_v18, %v8034_v44  ;;  %v3783_v44 = vld [vmem:[%s8268_s3] sm:$0xf] }
 0x9d3   : > { %3786 = vperm.xlu0 %4052, %v3783_v44  }
 0x9d4   : > { %v3611_v58 = vadd.f32 %v3610_v28, %v3609_v16 }
 0x9d6   : > { %v3612_v1 = vrot.slane %v3611_v58, 1 }
 0x9d8   : > { %v3613_v2 = vadd.f32 %v3612_v1, %v3611_v58 }
 0x9da   : > { %4580 = vrcp.f32 %v3613_v2  ;;  %v3642_v2 = vmul.f32 %v7970_v30, %v7765_v55 }
 0x9dc   : > { %v3692_v34 = vpack.c.bf16 %v3642_v2, %v3640_v23 }
 0x9e7   : > { %v8046_v45 = vpop.eup %4580 }
 0x9e8   : > { %v3645_v36 = vmul.f32 %v8046_v45, %v7910_v0  ;;  %v3647_v19 = vmul.f32 %v8046_v45, %v7918_v50  ;;  %v3641_v16 = vmul.f32 %v8046_v45, %v7894_v56  ;;  %v3643_v28 = vmul.f32 %v8046_v45, %v7902_v20 }
 0x9e9   : > { %v3637_v0 = vmul.f32 %v8046_v45, %v7878_v29  ;;  %v3639_v50 = vmul.f32 %v8046_v45, %v7886_v24  ;;  %v3636_v56 = vmul.f32 %v7970_v30, %v7744_v57  ;;  %v3638_v20 = vmul.f32 %v7970_v30, %v7751_v10 }
 0x9ea   : > { %v3695_v58 = vpack.c.bf16 %v3647_v19, %v3645_v36  ;;  %v3693_v1 = vpack.c.bf16 %v3643_v28, %v3641_v16  ;;  %v3633_v55 = vmul.f32 %v8046_v45, %v7862_v48  ;;  %v8071_v36 = vmul.f32 %v8046_v45, %v4577_v8 }
 0x9eb   : > { %v8074_v29 = vmul.f32 %v8046_v45, %v4579_v35  ;;  %v3635_v24 = vmul.f32 %v8046_v45, %v7870_v21  ;;  %v8079_v57 = vmul.f32 %v8046_v45, %v4571_v13  ;;  %v8082_v10 = vmul.f32 %v8046_v45, %v4573_v41 }
 0x9ec   : > { %3712 = vmatprep.subr.bf16.mxu0 %v3695_v58  ;;  %v3691_v48 = vpack.c.bf16 %v3639_v50, %v3637_v0  ;;  %v3671_v35 = vmul.f32 %v8046_v45, %v7967_v38  ;;  %v3665_v21 = vmul.f32 %v8046_v45, %v7958_v52  ;;  %v3667_v41 = vmul.f32 %v8046_v45, %v7961_v3 }
 0x9ed   : > { %3713 = vmatpush1.bf16.msra.mxu0 %v3694_v32  ;;  %v8086_v32 = vmul.f32 %v8046_v45, %v7964_v42  ;;  %v3711_v8 = vpack.c.bf16 %v8074_v29, %v8071_v36  ;;  %v3709_v13 = vpack.c.bf16 %v8082_v10, %v8079_v57  ;;  %v3661_v42 = vmul.f32 %v8046_v45, %v7952_v43  ;;  %v8778_v10 = vld [vmem:[#allocation43_spill] sm:$0xff] }
 0x9ee   : > { %3714 = vmatprep.subr.bf16.mxu0 %v3693_v1  ;;  %v3663_v23 = vmul.f32 %v8046_v45, %v7955_v11  ;;  %v3657_v38 = vmul.f32 %v8046_v45, %v7944_v46  ;;  %v3659_v52 = vmul.f32 %v8046_v45, %v7949_v39  ;;  %v3653_v16 = vmul.f32 %v8046_v45, %v7934_v17 }
 0x9ef   : > { %v3707_v19 = vpack.c.bf16 %v3671_v35, %v8086_v32  ;;  %v3705_v3 = vpack.c.bf16 %v3667_v41, %v3665_v21  ;;  %v3655_v43 = vmul.f32 %v8046_v45, %v7939_v12  ;;  %v3690_v2 = vpack.c.bf16 %v3638_v20, %v3636_v56  ;;  %v8779_v32 = vld [vmem:[#allocation20_spill] sm:$0xff]  ;;  %v8780_v35 = vld [vmem:[#allocation35_spill] sm:$0xff] }
 0x9f0   : > { %v3703_v28 = vpack.c.bf16 %v3663_v23, %v3661_v42  ;;  %v3632_v11 = vmul.f32 %v7970_v30, %v7730_v31  ;;  %v3634_v58 = vmul.f32 %v7970_v30, %v7737_v26  ;;  %v3701_v46 = vpack.c.bf16 %v3659_v52, %v3657_v38  ;;  %v8781_v41 = vld [vmem:[#allocation27_spill] sm:$0xff] }
 0x9f1   : > { %3715 = vmatpush1.bf16.msra.mxu0 %v3692_v34  ;;  %v3689_v1 = vpack.c.bf16 %v3635_v24, %v3633_v55  ;;  %v3629_v39 = vmul.f32 %v8046_v45, %v7846_v49  ;;  %v3631_v17 = vmul.f32 %v8046_v45, %v7854_v63  ;;  %v3699_v0 = vpack.c.bf16 %v3655_v43, %v3653_v16  ;;  %v8775_v55 = vld [vmem:[#allocation17_spill] sm:$0xff]  ;;  %v8777_v24 = vld [vmem:[#allocation23_spill] sm:$0xff] }
 0x9f2   : > { %3716 = vmatprep.subr.bf16.mxu0 %v3691_v48  ;;  %v3688_v50 = vpack.c.bf16 %v3634_v58, %v3632_v11  ;;  %v3628_v12 = vmul.f32 %v7970_v30, %v7716_v6  ;;  %v3630_v31 = vmul.f32 %v7970_v30, %v7723_v9  ;;  %v3625_v26 = vmul.f32 %v8046_v45, %v7828_v22 }
 0x9f3   : > { %v3687_v56 = vpack.c.bf16 %v3631_v17, %v3629_v39  ;;  %v3627_v49 = vmul.f32 %v8046_v45, %v7838_v61  ;;  %v3624_v20 = vmul.f32 %v7970_v30, %v7702_v59  ;;  %v3626_v34 = vmul.f32 %v7970_v30, %v7709_v53  ;;  %v8776_v61 = vld [vmem:[#allocation26_spill] sm:$0xff] }
 0x9f4   : > { %v3686_v63 = vpack.c.bf16 %v3630_v31, %v3628_v12  ;;  %v3621_v9 = vmul.f32 %v8046_v45, %v7808_v51  ;;  %v3623_v36 = vmul.f32 %v8046_v45, %v8775_v55  ;;  %v3620_v29 = vmul.f32 %v7970_v30, %v8776_v61  ;;  %v8807_v55 = vld [vmem:[#allocation52_spill] sm:$0xff]  ;;  %v8810_v61 = vld [vmem:[#allocation51_spill] sm:$0xff] }
 0x9f5   : > { %3717 = vmatpush1.bf16.msra.mxu0 %v3690_v2  ;;  %v3685_v6 = vpack.c.bf16 %v3627_v49, %v3625_v26  ;;  %v3684_v22 = vpack.c.bf16 %v3626_v34, %v3624_v20  ;;  %v3622_v57 = vmul.f32 %v7970_v30, %v8777_v24  ;;  %v3617_v53 = vmul.f32 %v8046_v45, %v8778_v10  ;;  %v8800_v26 = vld [vmem:[#allocation56_spill] sm:$0xff]  ;;  %v8801_v49 = vld [vmem:[#allocation18_spill] sm:$0xff]  ;;  %v8803_v20 = vld [vmem:[#allocation13_spill] sm:$0xff] }
 0x9f6   : > { %3718 = vmatprep.subr.bf16.mxu0 %v3689_v1  ;;  %v3683_v59 = vpack.c.bf16 %v3623_v36, %v3621_v9  ;;  %v3619_v48 = vmul.f32 %v8046_v45, %v8779_v32  ;;  %v3616_v21 = vmul.f32 %v7970_v30, %v8780_v35  ;;  %v3618_v42 = vmul.f32 %v7970_v30, %v8781_v41  ;;  %v8804_v34 = vld [vmem:[#allocation55_spill] sm:$0xff]  ;;  %v8806_v9 = vld [vmem:[#allocation54_spill] sm:$0xff]  ;;  %v8822_v41 = vld [vmem:[#allocation33_spill] sm:$0xff] }
 0x9f7   : > { %v3682_v51 = vpack.c.bf16 %v3622_v57, %v3620_v29  ;;  %v8782_v52 = vpack.c.bf16 %v7982_v25, %v7978_v54  ;;  %v8783_v16 = vpack.c.bf16 %v7990_v5, %v7986_v7  ;;  %v8784_v43 = vpack.c.bf16 %v8000_v33, %v7996_v62  ;;  %v8786_v54 = vld [vmem:[#allocation16_spill] sm:$0xff]  ;;  %v8787_v7 = vld [vmem:[#allocation15_spill] sm:$0xff]  ;;  %v8788_v62 = vld [vmem:[#allocation22_spill] sm:$0xff] }
 0x9f8   : > { %v3681_v23 = vpack.c.bf16 %v3619_v48, %v3617_v53  ;;  %v3680_v38 = vpack.c.bf16 %v3618_v42, %v3616_v21  ;;  %v8785_v2 = vpack.c.bf16 %v8010_v4, %v8006_v14  ;;  %v3649_v25 = vmul.f32 %v8046_v45, %v8786_v54  ;;  %v8789_v14 = vld [vmem:[#allocation29_spill] sm:$0xff]  ;;  %v8812_v24 = vld [vmem:[#allocation7_spill] sm:$0xff]  ;;  %v8815_v10 = vld [vmem:[#allocation10_spill] sm:$0xff] }
 0x9f9   : > { %3719 = vmatpush1.bf16.msra.mxu0 %v3688_v50  ;;  %v3651_v5 = vmul.f32 %v8046_v45, %v8787_v7  ;;  %v3648_v33 = vmul.f32 %v7970_v30, %v8788_v62  ;;  %v3650_v4 = vmul.f32 %v7970_v30, %v8789_v14  ;;  %v8791_v45 = vld [vmem:[#allocation32_spill] sm:$0xff]  ;;  %v8799_v30 = vmov 0   ;;  %v8813_v57 = vld [vmem:[#allocation31_spill] sm:$0xff]  ;;  %v8816_v53 = vld [vmem:[#allocation30_spill] sm:$0xff] }
 0x9fa   : > { %3720 = vmatprep.subr.bf16.mxu0 %v3687_v56  ;;  %v8808_v36 = vpack.c.bf16 %v8806_v9, %v8807_v55  ;;  %v8817_v32 = vpack.c.bf16 %v8815_v10, %v8816_v53  ;;  %v8818_v48 = vld [vmem:[#allocation41_spill] sm:$0xff]  ;;  %v8821_v21 = vld [vmem:[#allocation50_spill] sm:$0xff]  ;;  %v8828_v54 = vld [vmem:[#allocation48_spill] sm:$0xff] }
 0x9fb   : > { %v3697_v27 = vpack.c.bf16 %v3651_v5, %v3649_v25  ;;  %v3770_v42 = vpack.c.bf16 %v8822_v41, %v8821_v21  ;;  %v8829_v25 = vld [vmem:[#allocation49_spill] sm:$0xff]  ;;  %v3765_v5 = vld [vmem:[%s8267_s2] sm:$0xf]  ;;  %v8832_v14 = vld [vmem:[#allocation44_spill] sm:$0xff] }
 0x9fc   : > { %v8830_v7 = vpack.c.bf16 %v8828_v54, %v8829_v25  ;;  %v3766_v62 = vpack.c.bf16 %v3765_v5, %v3765_v5 }
 0x9fd   : > { %3721 = vmatpush1.bf16.msra.mxu0 %v3686_v63  ;;  %v8802_v63 = vpack.c.bf16 %v8800_v26, %v8801_v49 }
 0x9fe   : > { %3722 = vmatprep.subr.bf16.mxu0 %v3685_v6  ;;  %v8805_v6 = vpack.c.bf16 %v8803_v20, %v8804_v34 }
 0xa01   : > { %3723 = vmatpush1.bf16.msra.mxu0 %v3684_v22  ;;  %v8809_v22 = vld [vmem:[#allocation53_spill] sm:$0xff] }
 0xa02   : > { %3724 = vmatprep.subr.bf16.mxu0 %v3683_v59  ;;  %v8811_v29 = vpack.c.bf16 %v8809_v22, %v8810_v61  ;;  %v8814_v59 = vpack.c.bf16 %v8812_v24, %v8813_v57 }
 0xa05   : > { %3725 = vmatpush1.bf16.msra.mxu0 %v3682_v51  ;;  %v8819_v51 = vld [vmem:[#allocation39_spill] sm:$0xff] }
 0xa06   : > { %3726 = vmatprep.subr.bf16.mxu0 %v3681_v23  ;;  %v8820_v35 = vpack.c.bf16 %v8818_v48, %v8819_v51  ;;  %v8823_v23 = vld [vmem:[#allocation5_spill] sm:$0xff] }
 0xa09   : > { %3727 = vmatpush1.bf16.msra.mxu0 %v3680_v38  ;;  %v8824_v38 = vld [vmem:[#allocation6_spill] sm:$0xff] }
 0xa0a   : > { %3728 = vmatprep.subr.bf16.mxu0 %v3711_v8  ;;  %v8792_v8 = vld [vmem:[#allocation11_spill] sm:$0xff] }
 0xa0d   : > { %3729 = vmatpush2.bf16.msra.mxu0 %v8782_v52  ;;  %v8825_v52 = vpack.c.bf16 %v8823_v23, %v8824_v38 }
 0xa0e   : > { %3730 = vmatprep.subr.bf16.mxu0 %v3709_v13  ;;  %v3000_v13 = vpack.c.bf16 %v8792_v8, %v8791_v45 }
 0xa11   : > { %3731 = vmatpush2.bf16.msra.mxu0 %v8783_v16  ;;  %v8826_v16 = vld [vmem:[#allocation45_spill] sm:$0xff] }
 0xa12   : > { %3732 = vmatprep.subr.bf16.mxu0 %v3707_v19  ;;  %v8796_v19 = vld [vmem:[#allocation40_spill] sm:$0xff] }
 0xa15   : > { %3733 = vmatpush2.bf16.msra.mxu0 %v8784_v43  ;;  %v8827_v43 = vld [vmem:[#allocation34_spill] sm:$0xff] }
 0xa16   : > { %3734 = vmatprep.subr.bf16.mxu0 %v3705_v3  ;;  %v8797_v3 = vld [vmem:[#allocation8_spill] sm:$0xff] }
 0xa19   : > { %3735 = vmatpush2.bf16.msra.mxu0 %v8785_v2  ;;  %v3768_v2 = vpack.c.bf16 %v8827_v43, %v8826_v16 }
 0xa1a   : > { %3736 = vmatprep.subr.bf16.mxu0 %v3703_v28  ;;  %v8798_v28 = vpack.c.bf16 %v8796_v19, %v8797_v3 }
 0xa1d   : > { %3737 = vmatpush2.bf16.msra.mxu0 %v3702_v37  ;;  %v3696_v37 = vpack.c.bf16 %v3650_v4, %v3648_v33  ;;  %v8831_v33 = vld [vmem:[#allocation46_spill] sm:$0xff] }
 0xa1e   : > { %3738 = vmatprep.subr.bf16.mxu0 %v3701_v46  ;;  %v8833_v4 = vpack.c.bf16 %v8831_v33, %v8832_v14 }
 0xa21   : > { %3739 = vmatpush2.bf16.msra.mxu0 %v3700_v40  ;;  %v8794_v40 = vld [vmem:[#allocation9_spill] sm:$0xff] }
 0xa22   : > { %3740 = vmatprep.subr.bf16.mxu0 %v3699_v0  ;;  %v8795_v15 = vpack.c.bf16 %v8793_v47, %v8794_v40 }
 0xa25   : > { %3741 = vmatpush2.bf16.msra.mxu0 %v8790_v60 }
 0xa26   : > { %3742 = vmatprep.subr.bf16.mxu0 %v3697_v27 }
 0xa29   : > { %3743 = vmatpush2.bf16.msra.mxu0 %v3696_v37 }
 0xa2c   : > { %3745 = vmatmul.mubr.bf16.vlgmr.msra.gmra.mxu0 %v8795_v15 }
 0xa2d   : > { %3754 = vmatprep.mubr.bf16.mxu0 %v3000_v13 }
 0xa34   : > { %3755 = vmatmul.mubr.bf16.gmra.mxu0 %v8798_v28 }
 0xa35   : > { %3821 = vmatprep.mubr.bf16.mxu0 %v8799_v30 }
 0xa4e   : > { %v3787_v60 = vpop.permute.xlu0 %3786 }
 0xaec   : > { %v3746_v18 = vpop.f32.mrf.mxu0 }
 0xaee   : > { %v3748_v11 = vpop.f32.mrf.mxu0 }
 0xaf0   : > { %v3750_v58 = vpop.f32.mrf.mxu0 }
 0xaf1   : > { %v3779_v56 = vpack.c.bf16 %v3750_v58, %v3746_v18 }
 0xaf2   : > { %v3752_v46 = vpop.f32.mrf.mxu0 }
 0xaf3   : > { %v3780_v31 = vpack.c.bf16 %v3752_v46, %v3748_v11 }
 0xaf4   : > { %v3756_v1 = vpop.f32.mrf.mxu0 }
 0xaf6   : > { %v3758_v39 = vpop.f32.mrf.mxu0 }
 0xaf8   : > { %v3760_v17 = vpop.f32.mrf.mxu0 }
 0xaf9   : > { %v3781_v12 = vpack.c.bf16 %v3760_v17, %v3756_v1 }
 0xafa   : > { %v3762_v0 = vpop.f32.mrf.mxu0 }
 0xafb   : > { %v3782_v50 = vpack.c.bf16 %v3762_v0, %v3758_v39 }
 0xafd   : > { %3789 = vmatprep.subr.bf16.mxu0 %v3782_v50 }
 0xafe   : > { %3790 = vmatpush1.bf16.msra.mxu0 %v3781_v12 }
 0xaff   : > { %3791 = vmatprep.subr.bf16.mxu0 %v3780_v31 }
 0xb02   : > { %3792 = vmatpush1.bf16.msra.mxu0 %v3779_v56 }
 0xb03   : > { %3793 = vmatprep.subr.bf16.mxu0 %v8802_v63 }
 0xb06   : > { %3794 = vmatpush1.bf16.msra.mxu0 %v8805_v6 }
 0xb07   : > { %3795 = vmatprep.subr.bf16.mxu0 %v8808_v36 }
 0xb0a   : > { %3796 = vmatpush1.bf16.msra.mxu0 %v8811_v29 }
 0xb0b   : > { %3797 = vmatprep.subr.bf16.mxu0 %v8814_v59 }
 0xb0e   : > { %3798 = vmatpush1.bf16.msra.mxu0 %v8817_v32 }
 0xb0f   : > { %3799 = vmatprep.subr.bf16.mxu0 %v8820_v35 }
 0xb12   : > { %3800 = vmatpush1.bf16.msra.mxu0 %v8825_v52 }
 0xb13   : > { %3801 = vmatprep.subr.bf16.mxu0 %v3770_v42 }
 0xb16   : > { %3802 = vmatpush1.bf16.msra.mxu0 %v8830_v7 }
 0xb17   : > { %3803 = vmatprep.subr.bf16.mxu0 %v3768_v2 }
 0xb1a   : > { %3804 = vmatpush1.bf16.msra.mxu0 %v8833_v4 }
 0xb1d   : > { %3822 = vmatmul.mubr.bf16.vlgmr.msra.gmra.mxu0 %v3766_v62 }
 0xbdd   : > { %v3823_v27 = vpop.f32.mrf.mxu0 }
 0xbde   : > { %v3824_v45 = vadd.f32 %v3823_v27, %v3787_v60 }
 0xbdf   : > { %v3825_v37 = vpop.f32.mrf.mxu0 }
 0xbe0   : > { %v3826_v8 = vadd.f32 %v3825_v37, %v3787_v60 }
 0xbe1   : > { %v3827_v13 = vpop.f32.mrf.mxu0 }
 0xbe2   : > { %v3832_v47 = vcombine.low %v3824_v45, %v3826_v8 }
 0xbe3   : > { %v3828_v40 = vpop.f32.mrf.mxu0 }
 0xbe4   : > { %3834 = vst [vmem:[%s190_s7] sm:$0xff] %v3832_v47 }
 0xbe5   : > { %4595 = shalt.err (!%p4592_p3)
}
 0xbe6   : > { %s4596_s22 = scalar_lea.hbm %s8230_s11, 128  ;;  %s4600_s28 = scalar_lea.hbm %s8269_s4, 256 }
 0xbe7   : > { %p4597_p4 = scmp.ne.s32.totalorder %s8230_s11, %s4596_s22  ;;  %p4601_p9 = scmp.lt.s32.totalorder %s8230_s11, %s8269_s4 }
 0xbe8   : > { %p4602_p10 = scmp.lt.s32.totalorder %s4600_s28, %s4596_s22 }
 0xbe9   : > { %p4598_p7 = pnand %p4597_p4, %p4709_p5 }
 0xbea   : > { %p4603_p11 = por %p4602_p10, %p4601_p9 }
 0xbeb   : > { %p4599_p8 = pneg %p4598_p7 }
 0xbed   : > { %p4604_p12 = pnand %p4603_p11, %p4599_p8 }
 0xbef   : > { %4607 = shalt.err (!%p4604_p12)
}
 0xbf0   : > { %4012 = dma.vmem_to_hbm [thread:$0]  (%p4709_p5), %s3851_s8, 128, %s8230_s11, %s3836_s12  }
 0xbf1 PF: > { %p4018_p13 = scmp.ge.s32.totalorder %s4642_s18, 2  ;;  %s3862_s5 = sand.u32 1, %s4630_s15  }
 0xbf2   : > { %s3863_s6 = scalar_lea.sflag [#allocation3], %s3862_s5 }
 0xbf3   : > { %p4015_p0 = pnand %p4018_p13, %p4713_p6 }
 0xbf5   : > { %p4016_p1 = pneg %p4015_p0 }
 0xbf7   : > { %4625 = dma.done.wait (%p4016_p1), %s3863_s6, 128  }
 0xbf8   : > { %4627 = vsyncadd (%p4016_p1), %s3863_s6, 4294967168  ;;  %p14_p2 = scmp.ge.s32.totalorder %s4696_s21, 4   ;;  %s8834_s15 = smov %s4634_s16 }
 0xbf9   : > { %s8835_s16 = smov %s4638_s17  ;;  %s8836_s17 = smov %s4707_s24 }
 0xbfa   : > { %s8837_s18 = smov %s4696_s21  ;;  %16 = sbr.rel (!%p14_p2) target bundleno = 3 (0x3), region = 71 }
 0xbff   :  { %3868 = vsyncpa [#allocation3], 1 }
 0xc00   :  { %3870 = vsyncpa [#allocation3 + $0x1], 1 }

</bundles_post_ra>
